<compile_context>
chip_gen: v5e
topology: v5e:2x2
jax: 0.10.0
libtpu: 0.0.40
codegen_flags: <defaults>
</compile_context>

<pallas_src>
import jax
import jax.numpy as jnp
from jax import lax
from jax.experimental import pallas as pl
from jax.experimental.pallas import tpu as pltpu

EXPANSION = 4
BN_EPS = 1e-5
LANE = 128


def _round_up(n, m=LANE):
    return ((n + m - 1) // m) * m


def _pad_axis(a, size, axis):
    pad = size - a.shape[axis]
    if pad == 0:
        return a
    widths = [(0, 0)] * a.ndim
    widths[axis] = (0, pad)
    return jnp.pad(a, widths)


def _vmem_limit_bytes():
    phys = 64 * 1024 * 1024
    try:
        phys = int(pltpu.get_tpu_info().vmem_capacity_bytes)
    except Exception:
        pass
    # leave >= 16 MiB headroom below physical; never exceed ~100 MiB scoped.
    return int(max(32 * 1024 * 1024,
                   min(phys - 16 * 1024 * 1024, 100 * 1024 * 1024)))


# ----------------------------------------------------------------------------
# Pallas kernel
# ----------------------------------------------------------------------------
def _make_kernel(H, W, Cp, Pp, Op, has_shortcut):
    HW = H * W

    def body(x_ref, s1_ref, b1_ref, w1_ref, b2_ref, w2_ref, b3_ref, w3_ref,
             wsc_ref, out_ref):
        # ---- BN1 + ReLU -> bf16 (kept live; feeds conv1 now, shortcut later)
        x2 = x_ref[0].reshape(HW, Cp)                                  # f32
        o1b = jnp.maximum(x2 * s1_ref[...] + b1_ref[...], 0.0).astype(jnp.bfloat16)

        # ---- conv1 (1x1, BN2 scale pre-folded into w1) + BN2 shift + ReLU ----
        h1 = jnp.dot(o1b, w1_ref[...], preferred_element_type=jnp.float32)
        a2 = jnp.maximum(h1 + b2_ref[...], 0.0)                        # (HW, Pp) f32

        # ---- conv2 (3x3, pad=1): dy-grouped im2col, 3 accumulating matmuls ---
        # W shift (dx): XLU roll of the flattened activation + a tiny (1, W, 1)
        # multiplicative edge mask for the wrapped column.  H shift (dy):
        # zero-row pad + cheap leading-axis slices.  All taps are built in bf16.
        wcol = lax.broadcasted_iota(jnp.int32, (1, W, 1), 1)
        edge_mask = {
            -1: (wcol != 0).astype(jnp.bfloat16),        # dx=-1 wraps at first col
            1: (wcol != (W - 1)).astype(jnp.bfloat16),   # dx=+1 wraps at last col
        }
        zrow = jnp.zeros((1, W, Pp), jnp.bfloat16)

        def dx_shift(dx):
            if dx == 0:
                return a2.astype(jnp.bfloat16).reshape(H, W, Pp)
            # TODO(synk): roll stays f32 on purpose (avoid packed-sublane bf16
            #             rotate lowering); cast to bf16 right after so masked /
            #             padded temporaries are half size.
            rolled = pltpu.roll(a2, shift=(-dx) % HW, axis=0)
            return rolled.astype(jnp.bfloat16).reshape(H, W, Pp) * edge_mask[dx]

        padded = {dx: jnp.concatenate([zrow, dx_shift(dx), zrow], axis=0)
                  for dx in (-1, 0, 1)}                                # (H+2, W, Pp) bf16

        acc = None
        for kidx, dy in enumerate((-1, 0, 1)):
            slab = jnp.concatenate(
                [padded[dx][1 + dy:1 + dy + H] for dx in (-1, 0, 1)],
                axis=-1).reshape(HW, 3 * Pp)                           # bf16
            part = jnp.dot(slab, w2_ref[kidx],
                           preferred_element_type=jnp.float32)         # (HW, Pp)
            acc = part if acc is None else acc + part

        # ---- BN3 shift (scale pre-folded into w2) + ReLU + conv3 --------------
        a3 = jnp.maximum(acc + b3_ref[...], 0.0).astype(jnp.bfloat16)
        h3 = jnp.dot(a3, w3_ref[...], preferred_element_type=jnp.float32)  # (HW, Op)

        # ---- shortcut (deferred) + residual add -------------------------------
        if wsc_ref is not None:
            sc = jnp.dot(o1b, wsc_ref[...], preferred_element_type=jnp.float32)
        else:
            sc = x_ref[0].reshape(HW, Op)   # identity path: Cp == Op
        out_ref[0] = (h3 + sc).reshape(H, W, Op).astype(out_ref.dtype)

    if has_shortcut:
        def kernel(x_ref, s1, b1, w1, b2, w2, b3, w3, wsc, out_ref):
            body(x_ref, s1, b1, w1, b2, w2, b3, w3, wsc, out_ref)
    else:
        def kernel(x_ref, s1, b1, w1, b2, w2, b3, w3, out_ref):
            body(x_ref, s1, b1, w1, b2, w2, b3, w3, None, out_ref)
    return kernel


# ----------------------------------------------------------------------------
# Wrapper: layout transforms, BN folding, channel padding, weight reshapes
# ----------------------------------------------------------------------------
def preact_bottleneck_pallas(x_nchw, params, planes, stride=1):
    assert stride == 1, "kernel supports stride == 1"

    N, Cin, H, W = x_nchw.shape
    Cout = EXPANSION * planes
    has_shortcut = (stride != 1) or (Cin != Cout)

    Cp, Pp, Op = _round_up(Cin), _round_up(planes), _round_up(Cout)

    # NHWC with channels zero-padded to a lane-dense multiple of 128.
    x = jnp.transpose(x_nchw, (0, 2, 3, 1)).astype(jnp.float32)
    x = _pad_axis(x, Cp, 3)

    def bn_fold(p):
        scale = (p["gamma"] / jnp.sqrt(p["var"] + BN_EPS)).astype(jnp.float32)
        shift = (p["beta"] - p["mean"] * scale).astype(jnp.float32)
        return scale, shift

    s1, b1 = bn_fold(params["bn1"])
    s2, b2 = bn_fold(params["bn2"])
    s3, b3 = bn_fold(params["bn3"])

    # PyTorch conv weights are OIHW; build matmul layouts, fold BN2/BN3 scales.
    w1 = jnp.transpose(params["conv1"][:, :, 0, 0], (1, 0)) * s2[None, :]         # (Cin, planes)
    w2 = jnp.transpose(params["conv2"], (2, 3, 1, 0)) * s3[None, None, None, :]   # (3,3,in,out)
    w3 = jnp.transpose(params["conv3"][:, :, 0, 0], (1, 0))                       # (planes, Cout)

    w1 = _pad_axis(_pad_axis(w1, Cp, 0), Pp, 1).astype(jnp.bfloat16)              # (Cp, Pp)
    w2 = _pad_axis(_pad_axis(w2, Pp, 2), Pp, 3).reshape(3, 3 * Pp, Pp)
    w2 = w2.astype(jnp.bfloat16)                                                  # (3, 3*Pp, Pp)
    w3 = _pad_axis(_pad_axis(w3, Pp, 0), Op, 1).astype(jnp.bfloat16)              # (Pp, Op)

    s1p = _pad_axis(s1[None, :], Cp, 1)
    b1p = _pad_axis(b1[None, :], Cp, 1)
    b2p = _pad_axis(b2[None, :], Pp, 1)
    b3p = _pad_axis(b3[None, :], Pp, 1)

    # Grid-invariant operands: whole-array VMEM residency, single-buffered
    # (no block windowing -> no per-step double buffering).
    const_spec = pl.BlockSpec(memory_space=pltpu.MemorySpace.VMEM)

    args = [x, s1p, b1p, w1, b2p, w2, b3p, w3]
    in_specs = [pl.BlockSpec((1, H, W, Cp), lambda n: (n, 0, 0, 0))] + [const_spec] * 7
    if has_shortcut:
        wsc = jnp.transpose(params["shortcut"][:, :, 0, 0], (1, 0))
        wsc = _pad_axis(_pad_axis(wsc, Cp, 0), Op, 1).astype(jnp.bfloat16)        # (Cp, Op)
        args.append(wsc)
        in_specs.append(const_spec)

    kernel = _make_kernel(H, W, Cp, Pp, Op, has_shortcut)

    out_nhwc = pl.pallas_call(
        kernel,
        out_shape=jax.ShapeDtypeStruct((N, H, W, Op), jnp.float32),
        grid=(N,),
        in_specs=in_specs,
        out_specs=pl.BlockSpec((1, H, W, Op), lambda n: (n, 0, 0, 0)),
        compiler_params=pltpu.CompilerParams(
            dimension_semantics=("parallel",),
            vmem_limit_bytes=_vmem_limit_bytes(),
        ),
    )(*args)

    # strip channel padding, back to NCHW
    return jnp.transpose(out_nhwc[..., :Cout], (0, 3, 1, 2))


# ----------------------------------------------------------------------------
# Pure-JAX reference (fp32, for correctness check only)
# ----------------------------------------------------------------------------
def preact_bottleneck_ref(x, params, planes, stride=1):
    def bn(y, p):
        m = p["mean"][None, :, None, None]
        v = p["var"][None, :, None, None]
        g = p["gamma"][None, :, None, None]
        b = p["beta"][None, :, None, None]
        return (y - m) / jnp.sqrt(v + BN_EPS) * g + b

    def conv(y, w, stride=1, pad=0):
        return lax.conv_general_dilated(
            y, w, (stride, stride), [(pad, pad), (pad, pad)],
            dimension_numbers=("NCHW", "OIHW", "NCHW"))

    Cout = EXPANSION * planes
    out = jax.nn.relu(bn(x, params["bn1"]))
    if stride != 1 or x.shape[1] != Cout:
        shortcut = conv(out, params["shortcut"], stride=stride)
    else:
        shortcut = x
    out = conv(out, params["conv1"])
    out = conv(jax.nn.relu(bn(out, params["bn2"])), params["conv2"], stride=stride, pad=1)
    out = conv(jax.nn.relu(bn(out, params["bn3"])), params["conv3"])
    return out + shortcut


# ----------------------------------------------------------------------------
# Deterministic parameter init (shapes match the PyTorch module __init__)
# ----------------------------------------------------------------------------
def init_params(key, in_planes, planes, stride=1):
    Cout = EXPANSION * planes
    ks = jax.random.split(key, 16)

    def bn_params(k, c):
        k1, k2, k3, k4 = jax.random.split(k, 4)
        return {
            "gamma": jax.random.uniform(k1, (c,), jnp.float32, 0.5, 1.5),
            "beta": 0.1 * jax.random.normal(k2, (c,), jnp.float32),
            "mean": 0.1 * jax.random.normal(k3, (c,), jnp.float32),
            "var": jax.random.uniform(k4, (c,), jnp.float32, 0.5, 1.5),
        }

    params = {
        "bn1": bn_params(ks[0], in_planes),
        "conv1": 0.2 * jax.random.normal(ks[1], (planes, in_planes, 1, 1), jnp.float32),
        "bn2": bn_params(ks[2], planes),
        "conv2": 0.2 * jax.random.normal(ks[3], (planes, planes, 3, 3), jnp.float32),
        "bn3": bn_params(ks[4], planes),
        "conv3": 0.2 * jax.random.normal(ks[5], (Cout, planes, 1, 1), jnp.float32),
    }
    if stride != 1 or in_planes != Cout:
        params["shortcut"] = 0.2 * jax.random.normal(
            ks[6], (Cout, in_planes, 1, 1), jnp.float32)
    return params


# ----------------------------------------------------------------------------
if __name__ == "__main__":
    key = jax.random.PRNGKey(0)
    N, planes, H, W = 2, 4, 16, 16

    # 1) projection-shortcut path (in_planes != expansion*planes)
    in_planes = 8
    kx, kp, key = jax.random.split(key, 3)
    x = jax.random.normal(kx, (N, in_planes, H, W), jnp.float32)   # NCHW, like PyTorch
    params = init_params(kp, in_planes, planes)
    out = jax.block_until_ready(preact_bottleneck_pallas(x, params, planes))
    ref = jax.block_until_ready(preact_bottleneck_ref(x, params, planes))
    assert out.shape == (N, EXPANSION * planes, H, W), out.shape
    # bf16 MXU operands (fp32 accumulation) -> looser tolerance than pure fp32.
    assert jnp.allclose(out, ref, rtol=5e-2, atol=5e-2), float(jnp.max(jnp.abs(out - ref)))

    # 2) identity-shortcut path (in_planes == expansion*planes)
    in_planes2 = EXPANSION * planes
    kx2, kp2 = jax.random.split(key)
    x2 = jax.random.normal(kx2, (N, in_planes2, H, W), jnp.float32)
    params2 = init_params(kp2, in_planes2, planes)
    out2 = jax.block_until_ready(preact_bottleneck_pallas(x2, params2, planes))
    ref2 = jax.block_until_ready(preact_bottleneck_ref(x2, params2, planes))
    assert out2.shape == (N, EXPANSION * planes, H, W), out2.shape
    assert jnp.allclose(out2, ref2, rtol=5e-2, atol=5e-2), float(jnp.max(jnp.abs(out2 - ref2)))

    print("KERNEL_OK")
</pallas_src>

<mosaic_0001>
module attributes {stable_mosaic.version = 11 : i64} {
  func.func @kernel(%arg0: i32, %arg1: memref<1x16x16x128xf32, #tpu.memory_space<vmem>>, %arg2: memref<1x128xf32, #tpu.memory_space<vmem>>, %arg3: memref<1x128xf32, #tpu.memory_space<vmem>>, %arg4: memref<128x128xbf16, #tpu.memory_space<vmem>>, %arg5: memref<1x128xf32, #tpu.memory_space<vmem>>, %arg6: memref<3x384x128xbf16, #tpu.memory_space<vmem>>, %arg7: memref<1x128xf32, #tpu.memory_space<vmem>>, %arg8: memref<128x128xbf16, #tpu.memory_space<vmem>>, %arg9: memref<128x128xbf16, #tpu.memory_space<vmem>>, %arg10: memref<1x16x16x128xf32, #tpu.memory_space<vmem>>) attributes {dimension_semantics = [#tpu.dimension_semantics<parallel>], iteration_bounds = array<i64: 2>, scalar_prefetch = 0 : i64, scratch_operands = 0 : i64, tpu.core_type = #tpu.core_type<tc>, window_params = [{transform_indices = @transform_0, window_bounds = array<i64: 1, 16, 16, 128>}, {pipeline_mode = #tpu.pipeline_mode<synchronous>, transform_indices = @transform_1, window_bounds = array<i64: 1, 128>}, {pipeline_mode = #tpu.pipeline_mode<synchronous>, transform_indices = @transform_2, window_bounds = array<i64: 1, 128>}, {pipeline_mode = #tpu.pipeline_mode<synchronous>, transform_indices = @transform_3, window_bounds = array<i64: 128, 128>}, {pipeline_mode = #tpu.pipeline_mode<synchronous>, transform_indices = @transform_4, window_bounds = array<i64: 1, 128>}, {pipeline_mode = #tpu.pipeline_mode<synchronous>, transform_indices = @transform_5, window_bounds = array<i64: 3, 384, 128>}, {pipeline_mode = #tpu.pipeline_mode<synchronous>, transform_indices = @transform_6, window_bounds = array<i64: 1, 128>}, {pipeline_mode = #tpu.pipeline_mode<synchronous>, transform_indices = @transform_7, window_bounds = array<i64: 128, 128>}, {pipeline_mode = #tpu.pipeline_mode<synchronous>, transform_indices = @transform_8, window_bounds = array<i64: 128, 128>}, {transform_indices = @transform_9, window_bounds = array<i64: 1, 16, 16, 128>}]} {
    %c0 = arith.constant 0 : index
    %c0_0 = arith.constant 0 : index
    %c0_1 = arith.constant 0 : index
    %c0_2 = arith.constant 0 : index
    %0 = vector.load %arg1[%c0, %c0_0, %c0_1, %c0_2] : memref<1x16x16x128xf32, #tpu.memory_space<vmem>>, vector<1x16x16x128xf32>
    %1 = vector.shape_cast %0 : vector<1x16x16x128xf32> to vector<16x16x128xf32>
    %2 = vector.shape_cast %1 : vector<16x16x128xf32> to vector<256x128xf32>
    %c0_3 = arith.constant 0 : index
    %c0_4 = arith.constant 0 : index
    %3 = vector.load %arg2[%c0_3, %c0_4] : memref<1x128xf32, #tpu.memory_space<vmem>>, vector<1x128xf32>
    %4 = vector.broadcast %3 : vector<1x128xf32> to vector<256x128xf32>
    %5 = arith.mulf %2, %4 : vector<256x128xf32>
    %c0_5 = arith.constant 0 : index
    %c0_6 = arith.constant 0 : index
    %6 = vector.load %arg3[%c0_5, %c0_6] : memref<1x128xf32, #tpu.memory_space<vmem>>, vector<1x128xf32>
    %7 = vector.broadcast %6 : vector<1x128xf32> to vector<256x128xf32>
    %8 = arith.addf %5, %7 : vector<256x128xf32>
    %cst = arith.constant 0.000000e+00 : f32
    %9 = vector.broadcast %cst : f32 to vector<256x128xf32>
    %10 = arith.maximumf %8, %9 : vector<256x128xf32>
    %11 = arith.truncf %10 : vector<256x128xf32> to vector<256x128xbf16>
    %c0_7 = arith.constant 0 : index
    %c0_8 = arith.constant 0 : index
    %12 = vector.load %arg4[%c0_7, %c0_8] : memref<128x128xbf16, #tpu.memory_space<vmem>>, vector<128x128xbf16>
    %cst_9 = arith.constant dense<0.000000e+00> : vector<256x128xf32>
    %13 = tpu.matmul %11, %12, %cst_9 {dimension_numbers = #tpu.dot_dimension_numbers<[1], [0], [0], [1], [0, 0, 1, 1], [], []>} : vector<256x128xbf16>, vector<128x128xbf16>, vector<256x128xf32> -> vector<256x128xf32>
    %c0_10 = arith.constant 0 : index
    %c0_11 = arith.constant 0 : index
    %14 = vector.load %arg5[%c0_10, %c0_11] : memref<1x128xf32, #tpu.memory_space<vmem>>, vector<1x128xf32>
    %15 = vector.broadcast %14 : vector<1x128xf32> to vector<256x128xf32>
    %16 = arith.addf %13, %15 : vector<256x128xf32>
    %cst_12 = arith.constant 0.000000e+00 : f32
    %17 = vector.broadcast %cst_12 : f32 to vector<256x128xf32>
    %18 = arith.maximumf %16, %17 : vector<256x128xf32>
    %19 = tpu.iota {dimensions = array<i32: 1>} : vector<1x16x1xi32>
    %c0_i32 = arith.constant 0 : i32
    %20 = vector.broadcast %c0_i32 : i32 to vector<1x16x1xi32>
    %21 = arith.cmpi ne, %19, %20 : vector<1x16x1xi32>
    %22 = arith.extui %21 : vector<1x16x1xi1> to vector<1x16x1xi32>
    %23 = arith.sitofp %22 : vector<1x16x1xi32> to vector<1x16x1xf32>
    %24 = arith.truncf %23 : vector<1x16x1xf32> to vector<1x16x1xbf16>
    %c15_i32 = arith.constant 15 : i32
    %25 = vector.broadcast %c15_i32 : i32 to vector<1x16x1xi32>
    %26 = arith.cmpi ne, %19, %25 : vector<1x16x1xi32>
    %27 = arith.extui %26 : vector<1x16x1xi1> to vector<1x16x1xi32>
    %28 = arith.sitofp %27 : vector<1x16x1xi32> to vector<1x16x1xf32>
    %29 = arith.truncf %28 : vector<1x16x1xf32> to vector<1x16x1xbf16>
    %cst_13 = arith.constant 0.000000e+00 : bf16
    %30 = vector.broadcast %cst_13 : bf16 to vector<1x16x128xbf16>
    %c1_i32 = arith.constant 1 : i32
    %31 = tpu.dynamic_rotate %18 by %c1_i32 dim 0 : vector<256x128xf32>, i32 -> vector<256x128xf32>
    %32 = arith.truncf %31 : vector<256x128xf32> to vector<256x128xbf16>
    %33 = vector.shape_cast %32 : vector<256x128xbf16> to vector<16x16x128xbf16>
    %34 = vector.broadcast %24 : vector<1x16x1xbf16> to vector<16x16x128xbf16>
    %35 = arith.mulf %33, %34 : vector<16x16x128xbf16>
    %36 = tpu.concatenate %30, %35, %30 in 0 : vector<1x16x128xbf16>, vector<16x16x128xbf16>, vector<1x16x128xbf16> -> vector<18x16x128xbf16>
    %37 = arith.truncf %18 : vector<256x128xf32> to vector<256x128xbf16>
    %38 = vector.shape_cast %37 : vector<256x128xbf16> to vector<16x16x128xbf16>
    %39 = tpu.concatenate %30, %38, %30 in 0 : vector<1x16x128xbf16>, vector<16x16x128xbf16>, vector<1x16x128xbf16> -> vector<18x16x128xbf16>
    %c255_i32 = arith.constant 255 : i32
    %40 = tpu.dynamic_rotate %18 by %c255_i32 dim 0 : vector<256x128xf32>, i32 -> vector<256x128xf32>
    %41 = arith.truncf %40 : vector<256x128xf32> to vector<256x128xbf16>
    %42 = vector.shape_cast %41 : vector<256x128xbf16> to vector<16x16x128xbf16>
    %43 = vector.broadcast %29 : vector<1x16x1xbf16> to vector<16x16x128xbf16>
    %44 = arith.mulf %42, %43 : vector<16x16x128xbf16>
    %45 = tpu.concatenate %30, %44, %30 in 0 : vector<1x16x128xbf16>, vector<16x16x128xbf16>, vector<1x16x128xbf16> -> vector<18x16x128xbf16>
    %46 = vector.extract_strided_slice %36 {offsets = [0, 0, 0], sizes = [16, 16, 128], strides = [1, 1, 1]} : vector<18x16x128xbf16> to vector<16x16x128xbf16>
    %47 = vector.extract_strided_slice %39 {offsets = [0, 0, 0], sizes = [16, 16, 128], strides = [1, 1, 1]} : vector<18x16x128xbf16> to vector<16x16x128xbf16>
    %48 = vector.extract_strided_slice %45 {offsets = [0, 0, 0], sizes = [16, 16, 128], strides = [1, 1, 1]} : vector<18x16x128xbf16> to vector<16x16x128xbf16>
    %49 = tpu.concatenate %46, %47, %48 in 2 : vector<16x16x128xbf16>, vector<16x16x128xbf16>, vector<16x16x128xbf16> -> vector<16x16x384xbf16>
    %50 = vector.shape_cast %49 : vector<16x16x384xbf16> to vector<256x384xbf16>
    %c0_14 = arith.constant 0 : index
    %c0_15 = arith.constant 0 : index
    %c0_16 = arith.constant 0 : index
    %51 = vector.load %arg6[%c0_14, %c0_15, %c0_16] : memref<3x384x128xbf16, #tpu.memory_space<vmem>>, vector<1x384x128xbf16>
    %52 = vector.shape_cast %51 : vector<1x384x128xbf16> to vector<384x128xbf16>
    %cst_17 = arith.constant dense<0.000000e+00> : vector<256x128xf32>
    %53 = tpu.matmul %50, %52, %cst_17 {dimension_numbers = #tpu.dot_dimension_numbers<[1], [0], [0], [1], [0, 0, 1, 1], [], []>} : vector<256x384xbf16>, vector<384x128xbf16>, vector<256x128xf32> -> vector<256x128xf32>
    %54 = vector.extract_strided_slice %36 {offsets = [1, 0, 0], sizes = [16, 16, 128], strides = [1, 1, 1]} : vector<18x16x128xbf16> to vector<16x16x128xbf16>
    %55 = vector.extract_strided_slice %39 {offsets = [1, 0, 0], sizes = [16, 16, 128], strides = [1, 1, 1]} : vector<18x16x128xbf16> to vector<16x16x128xbf16>
    %56 = vector.extract_strided_slice %45 {offsets = [1, 0, 0], sizes = [16, 16, 128], strides = [1, 1, 1]} : vector<18x16x128xbf16> to vector<16x16x128xbf16>
    %57 = tpu.concatenate %54, %55, %56 in 2 : vector<16x16x128xbf16>, vector<16x16x128xbf16>, vector<16x16x128xbf16> -> vector<16x16x384xbf16>
    %58 = vector.shape_cast %57 : vector<16x16x384xbf16> to vector<256x384xbf16>
    %c1 = arith.constant 1 : index
    %c0_18 = arith.constant 0 : index
    %c0_19 = arith.constant 0 : index
    %59 = vector.load %arg6[%c1, %c0_18, %c0_19] : memref<3x384x128xbf16, #tpu.memory_space<vmem>>, vector<1x384x128xbf16>
    %60 = vector.shape_cast %59 : vector<1x384x128xbf16> to vector<384x128xbf16>
    %cst_20 = arith.constant dense<0.000000e+00> : vector<256x128xf32>
    %61 = tpu.matmul %58, %60, %cst_20 {dimension_numbers = #tpu.dot_dimension_numbers<[1], [0], [0], [1], [0, 0, 1, 1], [], []>} : vector<256x384xbf16>, vector<384x128xbf16>, vector<256x128xf32> -> vector<256x128xf32>
    %62 = arith.addf %53, %61 : vector<256x128xf32>
    %63 = vector.extract_strided_slice %36 {offsets = [2, 0, 0], sizes = [16, 16, 128], strides = [1, 1, 1]} : vector<18x16x128xbf16> to vector<16x16x128xbf16>
    %64 = vector.extract_strided_slice %39 {offsets = [2, 0, 0], sizes = [16, 16, 128], strides = [1, 1, 1]} : vector<18x16x128xbf16> to vector<16x16x128xbf16>
    %65 = vector.extract_strided_slice %45 {offsets = [2, 0, 0], sizes = [16, 16, 128], strides = [1, 1, 1]} : vector<18x16x128xbf16> to vector<16x16x128xbf16>
    %66 = tpu.concatenate %63, %64, %65 in 2 : vector<16x16x128xbf16>, vector<16x16x128xbf16>, vector<16x16x128xbf16> -> vector<16x16x384xbf16>
    %67 = vector.shape_cast %66 : vector<16x16x384xbf16> to vector<256x384xbf16>
    %c2 = arith.constant 2 : index
    %c0_21 = arith.constant 0 : index
    %c0_22 = arith.constant 0 : index
    %68 = vector.load %arg6[%c2, %c0_21, %c0_22] : memref<3x384x128xbf16, #tpu.memory_space<vmem>>, vector<1x384x128xbf16>
    %69 = vector.shape_cast %68 : vector<1x384x128xbf16> to vector<384x128xbf16>
    %cst_23 = arith.constant dense<0.000000e+00> : vector<256x128xf32>
    %70 = tpu.matmul %67, %69, %cst_23 {dimension_numbers = #tpu.dot_dimension_numbers<[1], [0], [0], [1], [0, 0, 1, 1], [], []>} : vector<256x384xbf16>, vector<384x128xbf16>, vector<256x128xf32> -> vector<256x128xf32>
    %71 = arith.addf %62, %70 : vector<256x128xf32>
    %c0_24 = arith.constant 0 : index
    %c0_25 = arith.constant 0 : index
    %72 = vector.load %arg7[%c0_24, %c0_25] : memref<1x128xf32, #tpu.memory_space<vmem>>, vector<1x128xf32>
    %73 = vector.broadcast %72 : vector<1x128xf32> to vector<256x128xf32>
    %74 = arith.addf %71, %73 : vector<256x128xf32>
    %cst_26 = arith.constant 0.000000e+00 : f32
    %75 = vector.broadcast %cst_26 : f32 to vector<256x128xf32>
    %76 = arith.maximumf %74, %75 : vector<256x128xf32>
    %77 = arith.truncf %76 : vector<256x128xf32> to vector<256x128xbf16>
    %c0_27 = arith.constant 0 : index
    %c0_28 = arith.constant 0 : index
    %78 = vector.load %arg8[%c0_27, %c0_28] : memref<128x128xbf16, #tpu.memory_space<vmem>>, vector<128x128xbf16>
    %cst_29 = arith.constant dense<0.000000e+00> : vector<256x128xf32>
    %79 = tpu.matmul %77, %78, %cst_29 {dimension_numbers = #tpu.dot_dimension_numbers<[1], [0], [0], [1], [0, 0, 1, 1], [], []>} : vector<256x128xbf16>, vector<128x128xbf16>, vector<256x128xf32> -> vector<256x128xf32>
    %c0_30 = arith.constant 0 : index
    %c0_31 = arith.constant 0 : index
    %80 = vector.load %arg9[%c0_30, %c0_31] : memref<128x128xbf16, #tpu.memory_space<vmem>>, vector<128x128xbf16>
    %cst_32 = arith.constant dense<0.000000e+00> : vector<256x128xf32>
    %81 = tpu.matmul %11, %80, %cst_32 {dimension_numbers = #tpu.dot_dimension_numbers<[1], [0], [0], [1], [0, 0, 1, 1], [], []>} : vector<256x128xbf16>, vector<128x128xbf16>, vector<256x128xf32> -> vector<256x128xf32>
    %82 = arith.addf %79, %81 : vector<256x128xf32>
    %83 = vector.shape_cast %82 : vector<256x128xf32> to vector<16x16x128xf32>
    %c0_33 = arith.constant 0 : index
    %c0_34 = arith.constant 0 : index
    %c0_35 = arith.constant 0 : index
    %c0_36 = arith.constant 0 : index
    %84 = vector.load %arg10[%c0_33, %c0_34, %c0_35, %c0_36] : memref<1x16x16x128xf32, #tpu.memory_space<vmem>>, vector<1x16x16x128xf32>
    %85 = vector.shape_cast %84 : vector<1x16x16x128xf32> to vector<16x16x128xf32>
    %86 = vector.shape_cast %83 : vector<16x16x128xf32> to vector<1x16x16x128xf32>
    tpu.vector_store %arg10[%c0_33, %c0_34, %c0_35, %c0_36], %86 {strides = array<i32>} : memref<1x16x16x128xf32, #tpu.memory_space<vmem>>, vector<1x16x16x128xf32>,
    return
  }
  func.func @transform_0(%arg0: i32) -> (i32, i32, i32, i32) {
    %c0_i32 = arith.constant 0 : i32
    %c0_i32_0 = arith.constant 0 : i32
    %c0_i32_1 = arith.constant 0 : i32
    %c0_i32_2 = arith.constant 0 : i32
    return %arg0, %c0_i32, %c0_i32_0, %c0_i32_1 : i32, i32, i32, i32
  }
  func.func @transform_1(%arg0: i32) -> (i32, i32) {
    %c0_i32 = arith.constant 0 : i32
    %c0_i32_0 = arith.constant 0 : i32
    %c0_i32_1 = arith.constant 0 : i32
    return %c0_i32, %c0_i32_0 : i32, i32
  }
  func.func @transform_2(%arg0: i32) -> (i32, i32) {
    %c0_i32 = arith.constant 0 : i32
    %c0_i32_0 = arith.constant 0 : i32
    %c0_i32_1 = arith.constant 0 : i32
    return %c0_i32, %c0_i32_0 : i32, i32
  }
  func.func @transform_3(%arg0: i32) -> (i32, i32) {
    %c0_i32 = arith.constant 0 : i32
    %c0_i32_0 = arith.constant 0 : i32
    %c0_i32_1 = arith.constant 0 : i32
    return %c0_i32, %c0_i32_0 : i32, i32
  }
  func.func @transform_4(%arg0: i32) -> (i32, i32) {
    %c0_i32 = arith.constant 0 : i32
    %c0_i32_0 = arith.constant 0 : i32
    %c0_i32_1 = arith.constant 0 : i32
    return %c0_i32, %c0_i32_0 : i32, i32
  }
  func.func @transform_5(%arg0: i32) -> (i32, i32, i32) {
    %c0_i32 = arith.constant 0 : i32
    %c0_i32_0 = arith.constant 0 : i32
    %c0_i32_1 = arith.constant 0 : i32
    %c0_i32_2 = arith.constant 0 : i32
    return %c0_i32, %c0_i32_0, %c0_i32_1 : i32, i32, i32
  }
  func.func @transform_6(%arg0: i32) -> (i32, i32) {
    %c0_i32 = arith.constant 0 : i32
    %c0_i32_0 = arith.constant 0 : i32
    %c0_i32_1 = arith.constant 0 : i32
    return %c0_i32, %c0_i32_0 : i32, i32
  }
  func.func @transform_7(%arg0: i32) -> (i32, i32) {
    %c0_i32 = arith.constant 0 : i32
    %c0_i32_0 = arith.constant 0 : i32
    %c0_i32_1 = arith.constant 0 : i32
    return %c0_i32, %c0_i32_0 : i32, i32
  }
  func.func @transform_8(%arg0: i32) -> (i32, i32) {
    %c0_i32 = arith.constant 0 : i32
    %c0_i32_0 = arith.constant 0 : i32
    %c0_i32_1 = arith.constant 0 : i32
    return %c0_i32, %c0_i32_0 : i32, i32
  }
  func.func @transform_9(%arg0: i32) -> (i32, i32, i32, i32) {
    %c0_i32 = arith.constant 0 : i32
    %c0_i32_0 = arith.constant 0 : i32
    %c0_i32_1 = arith.constant 0 : i32
    %c0_i32_2 = arith.constant 0 : i32
    return %arg0, %c0_i32, %c0_i32_0, %c0_i32_1 : i32, i32, i32, i32
  }
}

</mosaic_0001>

<bundles_post_ra>
// kernel: tpu_custom_call.1
= control target key start
LH: loop header
LB: loop body
LE: loop exit
PB: predicated region body
PF: predicated region fallthrough
CT: control target
= control target key end

     0   :  { %s5969_s0 = inlined_call_operand.hbm [shape: f32[2,16,16,128], index: 0, kind: input, shape index: {}]   ;;  %s5970_s1 = inlined_call_operand.hbm [shape: f32[1,128], index: 1, kind: input, shape index: {}]   ;;  %s5971_s2 = inlined_call_operand.vmem [shape: f32[1,128], index: 2, kind: input, shape index: {}]   ;;  %s5972_s3 = inlined_call_operand.hbm [shape: bf16[128,128], index: 3, kind: input, shape index: {}]   ;;  %s5973_s4 = inlined_call_operand.vmem [shape: f32[1,128], index: 4, kind: input, shape index: {}]   ;;  %s5974_s5 = inlined_call_operand.hbm [shape: bf16[3,384,128], index: 5, kind: input, shape index: {}]   ;;  %s5975_s6 = inlined_call_operand.vmem [shape: f32[1,128], index: 6, kind: input, shape index: {}]   ;;  %s5976_s7 = inlined_call_operand.hbm [shape: bf16[128,128], index: 7, kind: input, shape index: {}]   ;;  %s5977_s8 = inlined_call_operand.hbm [shape: bf16[128,128], index: 8, kind: input, shape index: {}]   ;;  %s5978_s9 = inlined_call_operand.hbm [shape: f32[2,16,16,128], index: 9, kind: output, shape index: {}]  }
   0x1   :  { %6051 = sst [smem:[#allocation86_spill]] %s5970_s1 }
   0x2   :  { %6052 = sst [smem:[#allocation87_spill]] %s5972_s3 }
   0x3   :  { %6053 = sst [smem:[#allocation88_spill]] %s5974_s5 }
   0x4   :  { %6054 = sst [smem:[#allocation89_spill]] %s5976_s7 }
   0x5   :  { %14 = vsyncpa [#allocation3], 0 }
   0x6   :  { %16 = vsyncpa [#allocation3 + $0x1], 0 }
   0x7   :  { %17 = vsyncpa [#allocation6], 0 }
   0x8   :  { %18 = vsyncpa [#allocation9], 0 }
   0x9   :  { %19 = vsyncpa [#allocation12], 0 }
   0xa   :  { %20 = vsyncpa [#allocation4], 0 }
   0xb   :  { %22 = vsyncpa [#allocation4 + $0x1], 0  ;;  %s4418_s30 = smov 0   ;;  %s4420_s10 = smov 0  }
   0xc   :  { %s4422_s11 = smov 0   ;;  %s4424_s12 = smov 0  }
   0xd LB: > { %s6055_s1 = sld [smem:[#allocation86_spill]]  ;;  %s4442_s16 = sadd.s32 4294967295, %s4352_s12   ;;  %s4352_s12 = sphi %s4424_s12, %s6285_s12   ;;  %s4348_s11 = sphi %s4422_s11, %s6284_s11   ;;  %s4344_s10 = sphi %s4420_s10, %s6283_s10   ;;  %s4340_s30 = sphi %s4418_s30, %s6282_s30  }
   0xe   : > { %p3476_p0 = scmp.ge.s32.totalorder %s4352_s12, 1  ;;  %p49_p1 = scmp.eq.s32.totalorder %s4442_s16, 0 }
   0xf   : > { %p253_p2 = scmp.lt.s32.totalorder %s4352_s12, 3  ;;  %s4354_s18 = smov [#allocation5]  }
  0x10   : > { %s267_s19 = sshll.u32 %s4354_s18, 4  ;;  %s6057_s5 = sld [smem:[#allocation88_spill]]  ;;  %s268_s19 = int_to_ptr.vmem [resolvable:$true] %s267_s19 }
  0x11   : > { %p4447_p3 = pnand %p3476_p0, %p253_p2  ;;  %s6059_s3 = sld [smem:[#allocation87_spill]] }
  0x12   : > { %s4355_s27 = smov [#allocation8]   ;;  %s4356_s29 = smov 64  }
  0x13   : > { %s265_s15 = sshll.u32 %s6055_s1, 4  ;;  %p4007_p5 = pneg %p4447_p3  ;;  %s266_s15 = int_to_ptr.hbm [resolvable:$true] %s265_s15 }
  0x14   : > { %s298_s28 = sshll.u32 %s4355_s27, 4  ;;  %s4357_s13 = smov 4   ;;  %s299_s28 = int_to_ptr.vmem [resolvable:$true] %s298_s28 }
  0x15   : > { %p4459_p6 = pnand %p4007_p5, %p49_p1  ;;  %s6060_s7 = sld [smem:[#allocation89_spill]] }
  0x16   : > { %s296_s22 = sshll.u32 %s6057_s5, 4  ;;  %s4358_s21 = smov [#allocation7]   ;;  %s297_s22 = int_to_ptr.hbm [resolvable:$true] %s296_s22 }
  0x17   : > { %s279_s26 = sshll.u32 %s6059_s3, 4  ;;  %s281_s24 = sshll.u32 %s4358_s21, 4  ;;  %s280_s26 = int_to_ptr.hbm [resolvable:$true] %s279_s26  ;;  %s282_s24 = int_to_ptr.vmem [resolvable:$true] %s281_s24 }
  0x18   : > { %4010 = dma.hbm_to_vmem [thread:$0]  (!%p4459_p6), %s266_s15, 16, %s268_s19, [#allocation6]  }
  0x19   : > { %4016 = dma.hbm_to_vmem [thread:$0]  (!%p4459_p6), %s297_s22, 9216, %s299_s28, [#allocation9], %s4356_s29, %s4356_s29, %s4357_s13  }
  0x1a   : > { %4013 = dma.hbm_to_vmem [thread:$0]  (!%p4459_p6), %s280_s26, 1024, %s282_s24, [#allocation6], %s4356_s29, %s4356_s29, %s4357_s13  }
  0x1b   : > { %s313_s20 = sshll.u32 %s6060_s7, 4  ;;  %s4359_s15 = smov [#allocation10]   ;;  %s314_s20 = int_to_ptr.hbm [resolvable:$true] %s313_s20 }
  0x1c   : > { %s315_s19 = sshll.u32 %s4359_s15, 4  ;;  %s327_s27 = sshll.u32 %s5977_s8, 4  ;;  %s316_s19 = int_to_ptr.vmem [resolvable:$true] %s315_s19  ;;  %s328_s27 = int_to_ptr.hbm [resolvable:$true] %s327_s27 }
  0x1d   : > { %4019 = dma.hbm_to_vmem [thread:$0]  (!%p4459_p6), %s314_s20, 1024, %s316_s19, [#allocation9], %s4356_s29, %s4356_s29, %s4357_s13  }
  0x1e   : > { %s4360_s28 = smov [#allocation11]   ;;  %s3475_s26 = sadd.s32 4294967294, %s4352_s12  }
  0x1f   : > { %s329_s14 = sshll.u32 %s4360_s28, 4  ;;  %s4484_s18 = sadd.s32 1, %s4352_s12   ;;  %s330_s14 = int_to_ptr.vmem [resolvable:$true] %s329_s14 }
  0x20   : > { %4022 = dma.hbm_to_vmem [thread:$0]  (!%p4459_p6), %s328_s27, 1024, %s330_s14, [#allocation12], %s4356_s29, %s4356_s29, %s4357_s13  }
  0x21   : > { %s35_s21 = sadd.s32 1, %s4348_s11  ;;  %s32_s24 = ssub.s32 %s4352_s12, %s4484_s18 }
  0x22   : > { %p42_p7 = scmp.ne.s32.totalorder %s4348_s11, %s4344_s10  ;;  %p33_p8 = scmp.eq.s32.totalorder %s32_s24, 0 }
  0x23   : > { %p43_p9 = scmp.eq.s32.totalorder %s4352_s12, 0  ;;  %p48_p10 = scmp.ne.s32.totalorder %s4344_s10, %s4340_s30 }
  0x24   : > { %p240_p11 = scmp.eq.s32.totalorder %s4442_s16, 1  ;;  %p246_p2 = scmp.eq.s32.totalorder %s3475_s26, 1 }
  0x25   : > { %s4496_s20 = scalar_select %p33_p8, %s4348_s11, %s35_s21  }
  0x26   : > { %p4498_p12 = por %p43_p9, %p42_p7  ;;  %p4504_p13 = por %p49_p1, %p48_p10 }
  0x27   : > { %p4508_p0 = por %p240_p11, %p42_p7  ;;  %p4036_p5 = scmp.lt.s32.totalorder %s4352_s12, 2 }
  0x28   : > { %s343_s13 = sand.u32 1, %s4348_s11   ;;  %p4514_p6 = por %p246_p2, %p48_p10 }
  0x29   : > { %s3483_s22 = sshll.u32 %s343_s13, 8  ;;  %s3885_s25 = sshll.u32 %s4352_s12, 8 }
  0x2a   : > { %s352_s14 = scalar_lea.hbm %s5969_s0, %s3885_s25  ;;  %s347_s24 = scalar_lea.vmem [#allocation2], %s3483_s22 }
  0x2b   : > { %s353_s21 = sshll.u32 %s352_s14, 4  ;;  %s355_s1 = sshll.u32 %s347_s24, 4  ;;  %s354_s21 = int_to_ptr.hbm [resolvable:$true] %s353_s21  ;;  %s356_s1 = int_to_ptr.vmem [resolvable:$true] %s355_s1 }
  0x2c   : > { %p4524_p7 = pnand %p4036_p5, %p4498_p12  ;;  %s344_s3 = scalar_lea.sflag [#allocation3], %s343_s13 }
  0x2d   : > { %s4244_s5 = sshra.s32 %s354_s21, 4  ;;  %s4251_s27 = scalar_lea.hbm %s5969_s0, 512  ;;  %s4245_s5 = int_to_ptr.hbm [resolvable:$true] %s4244_s5 }
  0x2e   : > { %s4246_s7 = scalar_lea.hbm %s4245_s5, 256  ;;  %p4248_p9 = pneg %p4524_p7 }
  0x2f   : > { %p4247_p8 = scmp.ne.s32.totalorder %s4245_s5, %s4246_s7  ;;  %p4252_p12 = scmp.lt.s32.totalorder %s4245_s5, %s5969_s0 }
  0x30   : > { %p4253_p2 = scmp.lt.s32.totalorder %s4251_s27, %s4246_s7 }
  0x31   : > { %p4249_p10 = pnand %p4248_p9, %p4247_p8 }
  0x32   : > { %p4254_p5 = por %p4253_p2, %p4252_p12 }
  0x33   : > { %p4250_p11 = pneg %p4249_p10 }
  0x35   : > { %p4255_p4 = pnand %p4254_p5, %p4250_p11 }
  0x37   : > { %4258 = shalt.err (!%p4255_p4)
}
  0x38   : > { %s4361_s13 = smov 128   ;;  %s4362_s14 = smov 8  }
  0x39   : > { %4026 = dma.hbm_to_vmem [thread:$0]  (!%p4524_p7), %s354_s21, 4096, %s356_s1, %s344_s3, %s4361_s13, %s4361_s13, %s4362_s14  }
  0x3a   : > { %367 = sbr.rel (%p4447_p3) target bundleno = 1540 (0x604), region = 56 }
  0x3f   : > { %s4541_s24 = sand.u32 1, %s4344_s10  }
  0x40   : > { %s3487_s5 = sshll.u32 %s4541_s24, 8  ;;  %s370_s7 = scalar_lea.sflag [#allocation3], %s4541_s24 }
  0x41   : > { %s4547_s25 = scalar_lea.vmem [#allocation2], %s3487_s5 }
  0x42   : > { %4319 = dma.done.wait (%p4504_p13), %s370_s7, 4096  }
  0x43   : > { %4321 = vsyncadd (%p4504_p13), %s370_s7, 4294963200 }
  0x44   : > { %4323 = dma.done.wait (%p49_p1), [#allocation6], 1040  }
  0x45   : > { %4325 = vsyncadd (%p49_p1), [#allocation6], 4294966256 }
  0x46   : > { %4327 = dma.done.wait (%p49_p1), [#allocation9], 10240  }
  0x47   : > { %4329 = vsyncadd (%p49_p1), [#allocation9], 4294957056 }
  0x48   : > { %4331 = dma.done.wait (%p49_p1), [#allocation12], 1024  }
  0x49   : > { %4333 = vsyncadd (%p49_p1), [#allocation12], 4294966272  ;;  %v3893_v0 = vld [vmem:[#allocation7 + $0x38] sm:$0xff]  ;;  %v3892_v1 = vld [vmem:[#allocation7 + $0x30] sm:$0xff]  ;;  %s5827_s28 = scalar_lea.vmem [#allocation13], %s3487_s5  ;;  %s3982_s15 = sshll.u32 %s4442_s16, 8 }
  0x4a   : > { %655 = vmatpush.bf16.msra.mxu0 %v3893_v0  ;;  %v3891_v2 = vld [vmem:[#allocation7 + $0x28] sm:$0xff]  ;;  %v3890_v3 = vld [vmem:[#allocation7 + $0x20] sm:$0xff]  ;;  %v4565_v4 = vld [vmem:[#allocation5] ss:$0 sm:$0xff]  ;;  %s3350_s5 = scalar_lea.hbm %s5978_s9, %s3982_s15  ;;  %s3351_s7 = sshll.u32 %s5827_s28, 4  ;;  %s3352_s7 = int_to_ptr.vmem [resolvable:$true] %s3351_s7 }
  0x4b   : > { %v3889_v5 = vld [vmem:[#allocation7 + $0x18] sm:$0xff]  ;;  %v436_v7 = vld [vmem:[%s4547_s25 + $0x8] sm:$0xff]  ;;  %v3888_v11 = vld [vmem:[#allocation7 + $0x10] sm:$0xff]  ;;  %s3339_s1 = scalar_lea.sflag [#allocation4], %s4541_s24  ;;  %s4294_s21 = scalar_lea.hbm %s5978_s9, 512 }
  0x4c   : > { %v435_v6 = vld [vmem:[%s4547_s25] sm:$0xff]  ;;  %v472_v9 = vmul.f32 %v4565_v4, %v436_v7  ;;  %v3887_v14 = vld [vmem:[#allocation7 + $0x8] sm:$0xff]  ;;  %v438_v20 = vld [vmem:[%s4547_s25 + $0x18] sm:$0xff] }
  0x4d   : > { %v471_v8 = vmul.f32 %v4565_v4, %v435_v6  ;;  %v4574_v10 = vld [vmem:[%s5971_s2] ss:$0 sm:$0xff]  ;;  %v3886_v17 = vld [vmem:[#allocation7] sm:$0xff]  ;;  %v437_v19 = vld [vmem:[%s4547_s25 + $0x10] sm:$0xff]  ;;  %v474_v22 = vmul.f32 %v4565_v4, %v438_v20 }
  0x4e   : > { %656 = vmatpush.bf16.msra.mxu0 %v3892_v1  ;;  %v508_v13 = vadd.f32 %v4574_v10, %v472_v9  ;;  %v473_v21 = vmul.f32 %v4565_v4, %v437_v19  ;;  %v439_v28 = vld [vmem:[%s4547_s25 + $0x20] sm:$0xff]  ;;  %v440_v29 = vld [vmem:[%s4547_s25 + $0x28] sm:$0xff]  ;;  %v441_v37 = vld [vmem:[%s4547_s25 + $0x30] sm:$0xff] }
  0x4f   : > { %v507_v12 = vadd.f32 %v4574_v10, %v471_v8  ;;  %v510_v24 = vadd.f32 %v4574_v10, %v474_v22  ;;  %v475_v30 = vmul.f32 %v4565_v4, %v439_v28  ;;  %v476_v31 = vmul.f32 %v4565_v4, %v440_v29  ;;  %v442_v38 = vld [vmem:[%s4547_s25 + $0x38] sm:$0xff]  ;;  %v443_v46 = vld [vmem:[%s4547_s25 + $0x40] sm:$0xff]  ;;  %v444_v47 = vld [vmem:[%s4547_s25 + $0x48] sm:$0xff] }
  0x50   : > { %v540_v16 = vmax.f32 %v508_v13, 0.0  ;;  %v509_v23 = vadd.f32 %v4574_v10, %v473_v21  ;;  %v477_v39 = vmul.f32 %v4565_v4, %v441_v37  ;;  %v478_v40 = vmul.f32 %v4565_v4, %v442_v38  ;;  %v445_v55 = vld [vmem:[%s4547_s25 + $0x50] sm:$0xff]  ;;  %v446_v56 = vld [vmem:[%s4547_s25 + $0x58] sm:$0xff]  ;;  %v447_v0 = vld [vmem:[%s4547_s25 + $0x60] sm:$0xff] }
  0x51   : > { %v539_v15 = vmax.f32 %v507_v12, 0.0  ;;  %v542_v26 = vmax.f32 %v510_v24, 0.0  ;;  %v511_v32 = vadd.f32 %v4574_v10, %v475_v30  ;;  %v512_v33 = vadd.f32 %v4574_v10, %v476_v31  ;;  %v448_v1 = vld [vmem:[%s4547_s25 + $0x68] sm:$0xff]  ;;  %v3932_v6 = vld [vmem:[#allocation8 + $0x130] sm:$0xff]  ;;  %v3941_v21 = vld [vmem:[#allocation8 + $0x178] sm:$0xff] }
  0x52   : > { %657 = vmatpush.bf16.msra.mxu0 %v3891_v2  ;;  %v541_v25 = vmax.f32 %v509_v23, 0.0  ;;  %v513_v41 = vadd.f32 %v4574_v10, %v477_v39  ;;  %v514_v42 = vadd.f32 %v4574_v10, %v478_v40  ;;  %v479_v48 = vmul.f32 %v4565_v4, %v443_v46  ;;  %v3933_v2 = vld [vmem:[#allocation8 + $0x138] sm:$0xff]  ;;  %v3931_v9 = vld [vmem:[#allocation8 + $0x128] sm:$0xff]  ;;  %v3930_v13 = vld [vmem:[#allocation8 + $0x120] sm:$0xff]  ;;  %1924 = vmatpush.bf16.msra.mxu3 %v3941_v21 }
  0x53   : > { %v4578_v18 = vpack.c.bf16 %v540_v16, %v539_v15  ;;  %v543_v34 = vmax.f32 %v511_v32, 0.0  ;;  %v544_v35 = vmax.f32 %v512_v33, 0.0  ;;  %v480_v49 = vmul.f32 %v4565_v4, %v444_v47  ;;  %1835 = vmatpush.bf16.msra.mxu2 %v3933_v2  ;;  %v449_v15 = vld [vmem:[%s4547_s25 + $0x70] sm:$0xff]  ;;  %v450_v16 = vld [vmem:[%s4547_s25 + $0x78] sm:$0xff]  ;;  %v3926_v31 = vld [vmem:[#allocation8 + $0x100] sm:$0xff] }
  0x54   : > { %v4587_v27 = vpack.c.bf16 %v542_v26, %v541_v25  ;;  %v545_v43 = vmax.f32 %v513_v41, 0.0  ;;  %v546_v44 = vmax.f32 %v514_v42, 0.0  ;;  %v515_v50 = vadd.f32 %v4574_v10, %v479_v48  ;;  %v3928_v22 = vld [vmem:[#allocation8 + $0x110] sm:$0xff]  ;;  %v3927_v26 = vld [vmem:[#allocation8 + $0x108] sm:$0xff]  ;;  %v3938_v33 = vld [vmem:[#allocation8 + $0x160] sm:$0xff] }
  0x55   : > { %6066 = vst [vmem:[#allocation19_spill] sm:$0xff] %v4578_v18  ;;  %v4596_v36 = vpack.c.bf16 %v544_v35, %v543_v34  ;;  %v516_v51 = vadd.f32 %v4574_v10, %v480_v49  ;;  %v481_v57 = vmul.f32 %v4565_v4, %v445_v55  ;;  %v482_v58 = vmul.f32 %v4565_v4, %v446_v56  ;;  %v3940_v25 = vld [vmem:[#allocation8 + $0x170] sm:$0xff]  ;;  %v3939_v30 = vld [vmem:[#allocation8 + $0x168] sm:$0xff]  ;;  %v451_v34 = vld [vmem:[%s4547_s25 + $0x80] sm:$0xff] }
  0x56   : > { %658 = vmatpush.bf16.msra.mxu0 %v3890_v3  ;;  %6067 = vst [vmem:[#allocation20_spill] sm:$0xff] %v4587_v27  ;;  %v4605_v45 = vpack.c.bf16 %v546_v44, %v545_v43  ;;  %v547_v52 = vmax.f32 %v515_v50, 0.0  ;;  %v483_v3 = vmul.f32 %v4565_v4, %v447_v0  ;;  %v485_v19 = vmul.f32 %v4565_v4, %v449_v15  ;;  %v452_v35 = vld [vmem:[%s4547_s25 + $0x88] sm:$0xff]  ;;  %v3937_v39 = vld [vmem:[#allocation8 + $0x158] sm:$0xff]  ;;  %v3936_v43 = vld [vmem:[#allocation8 + $0x150] sm:$0xff] }
  0x57   : > { %6068 = vst [vmem:[#allocation21_spill] sm:$0xff] %v4596_v36  ;;  %v548_v53 = vmax.f32 %v516_v51, 0.0  ;;  %v517_v59 = vadd.f32 %v4574_v10, %v481_v57  ;;  %v518_v60 = vadd.f32 %v4574_v10, %v482_v58  ;;  %1836 = vmatpush.bf16.msra.mxu2 %v3932_v6  ;;  %v486_v20 = vmul.f32 %v4565_v4, %v450_v16  ;;  %v3935_v48 = vld [vmem:[#allocation8 + $0x148] sm:$0xff]  ;;  %v4658_v51 = vld [vmem:[%s5973_s4] ss:$0 sm:$0xff]  ;;  %v454_v55 = vld [vmem:[%s4547_s25 + $0x98] sm:$0xff] }
  0x58   : > { %6069 = vst [vmem:[#allocation22_spill] sm:$0xff] %v4605_v45  ;;  %v519_v7 = vadd.f32 %v4574_v10, %v483_v3  ;;  %v521_v23 = vadd.f32 %v4574_v10, %v485_v19  ;;  %1925 = vmatpush.bf16.msra.mxu3 %v3940_v25  ;;  %v487_v37 = vmul.f32 %v4565_v4, %v451_v34  ;;  %v776_v40 = vlaneseq  ;;  %v3934_v56 = vld [vmem:[#allocation8 + $0x140] sm:$0xff] }
  0x59   : > { %v4614_v54 = vpack.c.bf16 %v548_v53, %v547_v52  ;;  %v549_v61 = vmax.f32 %v517_v59, 0.0  ;;  %v550_v62 = vmax.f32 %v518_v60, 0.0  ;;  %v522_v24 = vadd.f32 %v4574_v10, %v486_v20  ;;  %v453_v53 = vld [vmem:[%s4547_s25 + $0x90] sm:$0xff]  ;;  %v455_v19 = vld [vmem:[%s4547_s25 + $0xa0] sm:$0xff]  ;;  %v456_v20 = vld [vmem:[%s4547_s25 + $0xa8] sm:$0xff] }
  0x5a   : > { %659 = vmatpush.bf16.msra.mxu0 %v3889_v5  ;;  %v484_v5 = vmul.f32 %v4565_v4, %v448_v1  ;;  %v553_v28 = vmax.f32 %v521_v23, 0.0  ;;  %v488_v38 = vmul.f32 %v4565_v4, %v452_v35  ;;  %v523_v41 = vadd.f32 %v4574_v10, %v487_v37 }
  0x5b   : > { %6070 = vst [vmem:[#allocation23_spill] sm:$0xff] %v4614_v54  ;;  %v4623_v63 = vpack.c.bf16 %v550_v62, %v549_v61  ;;  %1837 = vmatpush.bf16.msra.mxu2 %v3931_v9  ;;  %v554_v29 = vmax.f32 %v522_v24, 0.0  ;;  %v4650_v44 = vshrl.u32 %v776_v40, 7  ;;  %v4363_v49 = vmov 0.0  }
  0x5c   : > { %v520_v8 = vadd.f32 %v4574_v10, %v484_v5  ;;  %1926 = vmatpush.bf16.msra.mxu3 %v3939_v30  ;;  %v524_v42 = vadd.f32 %v4574_v10, %v488_v38  ;;  %v555_v46 = vmax.f32 %v523_v41, 0.0  ;;  %v489_v58 = vmul.f32 %v4565_v4, %v453_v53 }
  0x5d   : > { %6071 = vst [vmem:[#allocation24_spill] sm:$0xff] %v4623_v63  ;;  %v4641_v32 = vpack.c.bf16 %v554_v29, %v553_v28  ;;  %vm779_vm0 = vcmp.ne.s32.totalorder %v4650_v44, 0  ;;  %v490_v59 = vmul.f32 %v4565_v4, %v454_v55  ;;  %vm827_vm1 = vcmp.lt.s32.totalorder %v4650_v44, 1 }
  0x5e   : > { %660 = vmatpush.bf16.msra.mxu0 %v3888_v11  ;;  %v551_v11 = vmax.f32 %v519_v7, 0.0  ;;  %v552_v12 = vmax.f32 %v520_v8, 0.0  ;;  %v556_v47 = vmax.f32 %v524_v42, 0.0  ;;  %v4653_v50 = vsel %vm779_vm0, 1.0, %v4363_v49 }
  0x5f   : > { %1838 = vmatpush.bf16.msra.mxu2 %v3930_v13  ;;  %6073 = vst [vmem:[#allocation26_spill] sm:$0xff] %v4641_v32  ;;  %v525_v61 = vadd.f32 %v4574_v10, %v489_v58  ;;  %v526_v62 = vadd.f32 %v4574_v10, %v490_v59  ;;  %vm1246_vm2 = vcmp.lt.s32.totalorder %v4650_v44, 7  ;;  %v491_v28 = vmul.f32 %v4565_v4, %v455_v19 }
  0x60   : > { %1927 = vmatpush.bf16.msra.mxu3 %v3938_v33  ;;  %v4660_v52 = vpack.c.bf16 %v556_v47, %v555_v46  ;;  %v492_v29 = vmul.f32 %v4565_v4, %v456_v20  ;;  %v778_v30 = vadd.s32 8, %v4650_v44  ;;  %v4364_v33 = vmov 1.0|1.0  }
  0x61   : > { %v557_v3 = vmax.f32 %v525_v61, 0.0  ;;  %v558_v5 = vmax.f32 %v526_v62, 0.0  ;;  %v4701_v34 = vunpack.c.l.bf16 %v4364_v33 }
  0x62   : > { %661 = vmatpush.bf16.msra.mxu0 %v3887_v14  ;;  %v4632_v14 = vpack.c.bf16 %v552_v12, %v551_v11  ;;  %6074 = vst [vmem:[#allocation27_spill] sm:$0xff] %v4660_v52  ;;  %v528_v40 = vadd.f32 %v4574_v10, %v492_v29  ;;  %vm788_vm3 = vcmp.ne.s32.totalorder %v778_v30, 15 }
  0x63   : > { %v4679_v15 = vpack.c.bf16 %v558_v5, %v557_v3  ;;  %v4711_v55 = vsel %vm788_vm3, 1.0, %v4363_v49 }
  0x64   : > { %6072 = vst [vmem:[#allocation25_spill] sm:$0xff] %v4632_v14  ;;  %1928 = vmatpush.bf16.msra.mxu3 %v3937_v39  ;;  %v527_v39 = vadd.f32 %v4574_v10, %v491_v28  ;;  %v560_v58 = vmax.f32 %v528_v40, 0.0 }
  0x65   : > { %6075 = vst [vmem:[#allocation28_spill] sm:$0xff] %v4679_v15 }
  0x66   : > { %662 = vmatpush.bf16.msra.mxu0 %v3886_v17  ;;  %v3929_v17 = vld [vmem:[#allocation8 + $0x118] sm:$0xff] }
  0x67   : > { %1839 = vmatpush.bf16.msra.mxu2 %v3929_v17 }
  0x68   : > { %1929 = vmatpush.bf16.msra.mxu3 %v3936_v43 }
  0x69   : > { %663 = vmatmul.bf16.vlgmr.msra.gmra.mxu0 %v4578_v18 }
  0x6b   : > { %1840 = vmatpush.bf16.msra.mxu2 %v3928_v22 }
  0x6c   : > { %1930 = vmatpush.bf16.msra.mxu3 %v3935_v48 }
  0x6f   : > { %1841 = vmatpush.bf16.msra.mxu2 %v3927_v26 }
  0x70   : > { %1931 = vmatpush.bf16.msra.mxu3 %v3934_v56 }
  0x73   : > { %1842 = vmatpush.bf16.msra.mxu2 %v3926_v31 }
  0x79   : > { %668 = vmatmul.bf16.gmra.mxu0 %v4587_v27 }
  0x89   : > { %673 = vmatmul.bf16.gmra.mxu0 %v4596_v36 }
  0x99   : > { %678 = vmatmul.bf16.gmra.mxu0 %v4605_v45 }
  0xa9   : > { %683 = vmatmul.bf16.gmra.mxu0 %v4614_v54 }
  0xb9   : > { %688 = vmatmul.bf16.gmra.mxu0 %v4623_v63 }
  0xc9   : > { %693 = vmatmul.bf16.gmra.mxu0 %v4632_v14 }
  0xd9   : > { %698 = vmatmul.bf16.gmra.mxu0 %v4641_v32 }
  0xe6   : > { %v664_v57 = vpop.f32.mrf.mxu0 }
  0xe7   : > { %v665_v60 = vadd.f32 %v4658_v51, %v664_v57  ;;  %v559_v57 = vmax.f32 %v527_v39, 0.0 }
  0xe9   : > { %703 = vmatmul.bf16.gmra.mxu0 %v4660_v52  ;;  %v4670_v0 = vmax.f32 %v665_v60, 0.0 }
  0xeb   : > { %v1086_v7 = vpack.c.bf16 %v4670_v0, %v4670_v0  ;;  %v5980_v8 = vrot.slane %v4670_v0, 7  ;;  %v5979_v9 = vrot.slane %v4670_v0, 1 }
  0xed   : > { %v1150_v16 = vunpack.c.l.b16 %v1086_v7 }
  0xee   : > { %v666_v1 = vpop.f32.mrf.mxu0 }
  0xef   : > { %v667_v2 = vadd.f32 %v4658_v51, %v666_v1 }
  0xf1   : > { %v745_v6 = vmax.f32 %v667_v2, 0.0 }
  0xf3   : > { %v796_v11 = vrot.slane %v745_v6, 7  ;;  %v1215_v12 = vrot.slane %v745_v6, 1  ;;  %v1087_v13 = vpack.c.bf16 %v745_v6, %v745_v6  ;;  %v4714_v6 = vpack.c.bf16 %v560_v58, %v559_v57 }
  0xf5   : > { %v1151_v17 = vunpack.c.l.b16 %v1087_v13  ;;  %v1277_v21 = vsel %vm1246_vm2, %v5979_v9, %v1215_v12  ;;  %v4691_v22 = vsel %vm827_vm1, %v5980_v8, %v796_v11  ;;  %6077 = vst [vmem:[#allocation30_spill] sm:$0xff] %v4714_v6 }
  0xf6   : > { %v669_v23 = vpop.f32.mrf.mxu0  ;;  %v1279_v24 = vpack.c.bf16 %v1277_v21, %v1277_v21 }
  0xf7   : > { %v670_v25 = vadd.f32 %v4658_v51, %v669_v23  ;;  %v4694_v26 = vpack.c.b16 %v1151_v17, %v1150_v16  ;;  %v458_v16 = vld [vmem:[%s4547_s25 + $0xb8] sm:$0xff] }
  0xf8   : > { %v1311_v35 = vunpack.c.l.bf16 %v1279_v24  ;;  %v494_v33 = vmul.f32 %v4565_v4, %v458_v16 }
  0xf9   : > { %6076 = vst [vmem:[#allocation29_spill] sm:$0xff] %v4694_v26  ;;  %v746_v31 = vmax.f32 %v670_v25, 0.0  ;;  %708 = vmatmul.bf16.gmra.mxu0 %v4679_v15  ;;  %1843 = vmatmul.bf16.vlgmr.msra.gmra.mxu2 %v4694_v26 }
  0xfa   : > { %v1345_v42 = vmul.f32 %v1311_v35, %v4701_v34 }
  0xfb   : > { %v797_v37 = vrot.slane %v746_v31, 7  ;;  %v1216_v38 = vrot.slane %v746_v31, 1  ;;  %v1088_v56 = vpack.c.bf16 %v746_v31, %v746_v31 }
  0xfc   : > { %v1377_v61 = vpack.c.bf16 %v1345_v42, %v1345_v42 }
  0xfd   : > { %v1276_v41 = vsel %vm1246_vm2, %v1215_v12, %v1216_v38  ;;  %v857_v43 = vsel %vm827_vm1, %v796_v11, %v797_v37  ;;  %v1152_v7 = vunpack.c.l.b16 %v1088_v56  ;;  %v457_v12 = vld [vmem:[%s4547_s25 + $0xb0] sm:$0xff] }
  0xfe   : > { %v671_v46 = vpop.f32.mrf.mxu0  ;;  %v1280_v47 = vpack.c.bf16 %v1276_v41, %v1276_v41  ;;  %v862_v48 = vpack.c.bf16 %v857_v43, %v857_v43  ;;  %v1441_v13 = vunpack.c.l.b16 %v1377_v61  ;;  %v493_v30 = vmul.f32 %v4565_v4, %v457_v12 }
  0xff   : > { %v672_v53 = vadd.f32 %v4658_v51, %v671_v46  ;;  %v530_v46 = vadd.f32 %v4574_v10, %v494_v33 }
 0x100   : > { %v1312_v59 = vunpack.c.l.bf16 %v1280_v47  ;;  %v894_v1 = vunpack.c.l.bf16 %v862_v48  ;;  %v529_v43 = vadd.f32 %v4574_v10, %v493_v30  ;;  %v460_v30 = vld [vmem:[%s4547_s25 + $0xc8] sm:$0xff] }
 0x101   : > { %v747_v60 = vmax.f32 %v672_v53, 0.0 }
 0x102   : > { %v1346_v62 = vmul.f32 %v4711_v55, %v1312_v59  ;;  %v928_v25 = vmul.f32 %v4653_v50, %v894_v1  ;;  %v561_v1 = vmax.f32 %v529_v43, 0.0 }
 0x103   : > { %v798_v2 = vrot.slane %v747_v60, 7  ;;  %v1217_v3 = vrot.slane %v747_v60, 1  ;;  %v1089_v5 = vpack.c.bf16 %v747_v60, %v747_v60 }
 0x104   : > { %v1378_v11 = vpack.c.bf16 %v1346_v62, %v1346_v62  ;;  %v960_v40 = vpack.c.bf16 %v928_v25, %v928_v25 }
 0x105   : > { %v1153_v49 = vunpack.c.l.b16 %v1089_v5  ;;  %v1275_v17 = vsel %vm1246_vm2, %v1216_v38, %v1217_v3  ;;  %v856_v19 = vsel %vm827_vm1, %v797_v37, %v798_v2 }
 0x106   : > { %v674_v20 = vpop.f32.mrf.mxu0  ;;  %v1442_v21 = vunpack.c.l.b16 %v1378_v11  ;;  %v1281_v23 = vpack.c.bf16 %v1275_v17, %v1275_v17  ;;  %v863_v24 = vpack.c.bf16 %v856_v19, %v856_v19  ;;  %v1024_v59 = vunpack.c.l.b16 %v960_v40 }
 0x107   : > { %v675_v28 = vadd.f32 %v4658_v51, %v674_v20  ;;  %v4724_v29 = vpack.c.b16 %v1153_v49, %v1152_v7  ;;  %v562_v7 = vmax.f32 %v530_v46, 0.0 }
 0x108   : > { %v4727_v31 = vpack.c.b16 %v1442_v21, %v1441_v13  ;;  %v895_v35 = vunpack.c.l.bf16 %v863_v24  ;;  %v1313_v37 = vunpack.c.l.bf16 %v1281_v23  ;;  %v459_v24 = vld [vmem:[%s4547_s25 + $0xc0] sm:$0xff] }
 0x109   : > { %6078 = vst [vmem:[#allocation31_spill] sm:$0xff] %v4724_v29  ;;  %v748_v38 = vmax.f32 %v675_v28, 0.0  ;;  %713 = vmatmul.bf16.gmra.mxu0 %v4714_v6  ;;  %1848 = vmatmul.bf16.gmra.mxu2 %v4724_v29  ;;  %v4745_v20 = vpack.c.bf16 %v562_v7, %v561_v1 }
 0x10a   : > { %1932 = vmatmul.bf16.vlgmr.msra.gmra.mxu3 %v4727_v31  ;;  %v929_v39 = vmul.f32 %v4701_v34, %v895_v35  ;;  %v1347_v53 = vmul.f32 %v1313_v37, %v4701_v34 }
 0x10b   : > { %v799_v41 = vrot.slane %v748_v38, 7  ;;  %v1218_v42 = vrot.slane %v748_v38, 1  ;;  %v1090_v5 = vpack.c.bf16 %v748_v38, %v748_v38  ;;  %6079 = vst [vmem:[#allocation32_spill] sm:$0xff] %v4745_v20 }
 0x10c   : > { %v961_v47 = vpack.c.bf16 %v929_v39, %v929_v39  ;;  %v1379_v49 = vpack.c.bf16 %v1347_v53, %v1347_v53 }
 0x10d   : > { %v1274_v48 = vsel %vm1246_vm2, %v1217_v3, %v1218_v42  ;;  %v855_v56 = vsel %vm827_vm1, %v798_v2, %v799_v41  ;;  %v1154_v21 = vunpack.c.l.b16 %v1090_v5 }
 0x10e   : > { %v676_v57 = vpop.f32.mrf.mxu0  ;;  %v1282_v58 = vpack.c.bf16 %v1274_v48, %v1274_v48  ;;  %v1025_v60 = vunpack.c.l.b16 %v961_v47  ;;  %v864_v61 = vpack.c.bf16 %v855_v56, %v855_v56  ;;  %v1443_v28 = vunpack.c.l.b16 %v1379_v49 }
 0x10f   : > { %v677_v62 = vadd.f32 %v4658_v51, %v676_v57  ;;  %v495_v48 = vmul.f32 %v4565_v4, %v459_v24  ;;  %v496_v56 = vmul.f32 %v4565_v4, %v460_v30 }
 0x110   : > { %v1314_v11 = vunpack.c.l.bf16 %v1282_v58  ;;  %v4742_v12 = vpack.c.b16 %v1025_v60, %v1024_v59  ;;  %v896_v2 = vunpack.c.l.bf16 %v864_v61 }
 0x111   : > { %v749_v3 = vmax.f32 %v677_v62, 0.0  ;;  %v531_v62 = vadd.f32 %v4574_v10, %v495_v48  ;;  %v532_v1 = vadd.f32 %v4574_v10, %v496_v56  ;;  %v461_v56 = vld [vmem:[%s4547_s25 + $0xd0] sm:$0xff] }
 0x112   : > { %v1348_v13 = vmul.f32 %v4711_v55, %v1314_v11  ;;  %v930_v43 = vmul.f32 %v4653_v50, %v896_v2 }
 0x113   : > { %v800_v16 = vrot.slane %v749_v3, 7  ;;  %v1219_v17 = vrot.slane %v749_v3, 1  ;;  %v1091_v19 = vpack.c.bf16 %v749_v3, %v749_v3  ;;  %v563_v24 = vmax.f32 %v531_v62, 0.0 }
 0x114   : > { %v1380_v23 = vpack.c.bf16 %v1348_v13, %v1348_v13  ;;  %v962_v59 = vpack.c.bf16 %v930_v43, %v930_v43 }
 0x115   : > { %v1155_v25 = vunpack.c.l.b16 %v1091_v19  ;;  %v1273_v33 = vsel %vm1246_vm2, %v1218_v42, %v1219_v17  ;;  %v854_v35 = vsel %vm827_vm1, %v799_v41, %v800_v16 }
 0x116   : > { %v679_v38 = vpop.f32.mrf.mxu0  ;;  %v1444_v37 = vunpack.c.l.b16 %v1380_v23  ;;  %v1283_v39 = vpack.c.bf16 %v1273_v33, %v1273_v33  ;;  %v865_v40 = vpack.c.bf16 %v854_v35, %v854_v35  ;;  %v1026_v2 = vunpack.c.l.b16 %v962_v59 }
 0x117   : > { %v680_v46 = vadd.f32 %v4658_v51, %v679_v38  ;;  %v4755_v47 = vpack.c.b16 %v1155_v25, %v1154_v21 }
 0x118   : > { %v4758_v53 = vpack.c.b16 %v1444_v37, %v1443_v28  ;;  %v897_v42 = vunpack.c.l.bf16 %v865_v40  ;;  %v1315_v41 = vunpack.c.l.bf16 %v1283_v39  ;;  %v564_v28 = vmax.f32 %v532_v1, 0.0 }
 0x119   : > { %6080 = vst [vmem:[#allocation33_spill] sm:$0xff] %v4755_v47  ;;  %v750_v57 = vmax.f32 %v680_v46, 0.0  ;;  %718 = vmatmul.bf16.gmra.mxu0 %v4745_v20  ;;  %1853 = vmatmul.bf16.gmra.mxu2 %v4755_v47  ;;  %v3925_v47 = vld [vmem:[#allocation8 + $0xf8] sm:$0xff] }
 0x11a   : > { %6081 = vst [vmem:[#allocation34_spill] sm:$0xff] %v4758_v53  ;;  %1937 = vmatmul.bf16.gmra.mxu3 %v4758_v53  ;;  %v931_v58 = vmul.f32 %v4701_v34, %v897_v42  ;;  %v1349_v11 = vmul.f32 %v1315_v41, %v4701_v34  ;;  %v4776_v43 = vpack.c.bf16 %v564_v28, %v563_v24  ;;  %v462_v41 = vld [vmem:[%s4547_s25 + $0xd8] sm:$0xff] }
 0x11b   : > { %v801_v60 = vrot.slane %v750_v57, 7  ;;  %v1220_v61 = vrot.slane %v750_v57, 1  ;;  %v1092_v25 = vpack.c.bf16 %v750_v57, %v750_v57  ;;  %1746 = vmatpush.bf16.msra.mxu1 %v3925_v47 }
 0x11c   : > { %v963_v5 = vpack.c.bf16 %v931_v58, %v931_v58  ;;  %v1381_v35 = vpack.c.bf16 %v1349_v11, %v1349_v11  ;;  %6082 = vst [vmem:[#allocation35_spill] sm:$0xff] %v4776_v43 }
 0x11d   : > { %v1272_v7 = vsel %vm1246_vm2, %v1219_v17, %v1220_v61  ;;  %v853_v3 = vsel %vm827_vm1, %v800_v16, %v801_v60  ;;  %v1156_v46 = vunpack.c.l.b16 %v1092_v25 }
 0x11e   : > { %v681_v49 = vpop.f32.mrf.mxu0  ;;  %v1284_v13 = vpack.c.bf16 %v1272_v7, %v1272_v7  ;;  %v1027_v19 = vunpack.c.l.b16 %v963_v5  ;;  %v866_v21 = vpack.c.bf16 %v853_v3, %v853_v3  ;;  %v1445_v57 = vunpack.c.l.b16 %v1381_v35 }
 0x11f   : > { %v682_v23 = vadd.f32 %v4658_v51, %v681_v49 }
 0x120   : > { %v1316_v30 = vunpack.c.l.bf16 %v1284_v13  ;;  %v4773_v33 = vpack.c.b16 %v1027_v19, %v1026_v2  ;;  %v898_v16 = vunpack.c.l.bf16 %v866_v21  ;;  %v497_v13 = vmul.f32 %v4565_v4, %v461_v56 }
 0x121   : > { %v751_v17 = vmax.f32 %v682_v23, 0.0  ;;  %v498_v19 = vmul.f32 %v4565_v4, %v462_v41 }
 0x122   : > { %v1350_v38 = vmul.f32 %v4711_v55, %v1316_v30  ;;  %v932_v11 = vmul.f32 %v4653_v50, %v898_v16  ;;  %v533_v30 = vadd.f32 %v4574_v10, %v497_v13 }
 0x123   : > { %v802_v37 = vrot.slane %v751_v17, 7  ;;  %v1221_v39 = vrot.slane %v751_v17, 1  ;;  %v1093_v40 = vpack.c.bf16 %v751_v17, %v751_v17  ;;  %v534_v17 = vadd.f32 %v4574_v10, %v498_v19 }
 0x124   : > { %v1382_v48 = vpack.c.bf16 %v1350_v38, %v1350_v38  ;;  %v964_v24 = vpack.c.bf16 %v932_v11, %v932_v11 }
 0x125   : > { %v1157_v42 = vunpack.c.l.b16 %v1093_v40  ;;  %v1271_v58 = vsel %vm1246_vm2, %v1220_v61, %v1221_v39  ;;  %v852_v59 = vsel %vm827_vm1, %v801_v60, %v802_v37 }
 0x126   : > { %v684_v62 = vpop.f32.mrf.mxu0  ;;  %v1446_v1 = vunpack.c.l.b16 %v1382_v48  ;;  %v1285_v5 = vpack.c.bf16 %v1271_v58, %v1271_v58  ;;  %v867_v7 = vpack.c.bf16 %v852_v59, %v852_v59  ;;  %v1028_v56 = vunpack.c.l.b16 %v964_v24  ;;  %v463_v24 = vld [vmem:[%s4547_s25 + $0xe0] sm:$0xff] }
 0x127   : > { %v685_v3 = vadd.f32 %v4658_v51, %v684_v62  ;;  %v4786_v49 = vpack.c.b16 %v1157_v42, %v1156_v46  ;;  %v565_v58 = vmax.f32 %v533_v30, 0.0  ;;  %v566_v62 = vmax.f32 %v534_v17, 0.0  ;;  %v464_v17 = vld [vmem:[%s4547_s25 + $0xe8] sm:$0xff] }
 0x128   : > { %v4789_v2 = vpack.c.b16 %v1446_v1, %v1445_v57  ;;  %v899_v61 = vunpack.c.l.bf16 %v867_v7  ;;  %v1317_v60 = vunpack.c.l.bf16 %v1285_v5 }
 0x129   : > { %6083 = vst [vmem:[#allocation36_spill] sm:$0xff] %v4786_v49  ;;  %v752_v21 = vmax.f32 %v685_v3, 0.0  ;;  %723 = vmatmul.bf16.gmra.mxu0 %v4776_v43  ;;  %1858 = vmatmul.bf16.gmra.mxu2 %v4786_v49 }
 0x12a   : > { %6084 = vst [vmem:[#allocation37_spill] sm:$0xff] %v4789_v2  ;;  %1942 = vmatmul.bf16.gmra.mxu3 %v4789_v2  ;;  %v933_v23 = vmul.f32 %v4701_v34, %v899_v61  ;;  %v1351_v16 = vmul.f32 %v1317_v60, %v4701_v34  ;;  %v4807_v61 = vpack.c.bf16 %v566_v62, %v565_v58 }
 0x12b   : > { %v803_v25 = vrot.slane %v752_v21, 7  ;;  %v1222_v28 = vrot.slane %v752_v21, 1  ;;  %v1094_v59 = vpack.c.bf16 %v752_v21, %v752_v21 }
 0x12c   : > { %v965_v35 = vpack.c.bf16 %v933_v23, %v933_v23  ;;  %v1383_v7 = vpack.c.bf16 %v1351_v16, %v1351_v16  ;;  %6085 = vst [vmem:[#allocation38_spill] sm:$0xff] %v4807_v61 }
 0x12d   : > { %v1270_v38 = vsel %vm1246_vm2, %v1221_v39, %v1222_v28  ;;  %v851_v40 = vsel %vm827_vm1, %v802_v37, %v803_v25  ;;  %v1158_v60 = vunpack.c.l.b16 %v1094_v59  ;;  %v500_v59 = vmul.f32 %v4565_v4, %v464_v17 }
 0x12e   : > { %v686_v46 = vpop.f32.mrf.mxu0  ;;  %v1286_v48 = vpack.c.bf16 %v1270_v38, %v1270_v38  ;;  %v1029_v42 = vunpack.c.l.b16 %v965_v35  ;;  %v868_v57 = vpack.c.bf16 %v851_v40, %v851_v40  ;;  %v1447_v21 = vunpack.c.l.b16 %v1383_v7 }
 0x12f   : > { %v687_v41 = vadd.f32 %v4658_v51, %v686_v46 }
 0x130   : > { %v1318_v1 = vunpack.c.l.bf16 %v1286_v48  ;;  %v4804_v5 = vpack.c.b16 %v1029_v42, %v1028_v56  ;;  %v900_v37 = vunpack.c.l.bf16 %v868_v57 }
 0x131   : > { %v753_v39 = vmax.f32 %v687_v41, 0.0  ;;  %v499_v41 = vmul.f32 %v4565_v4, %v463_v24 }
 0x132   : > { %v1352_v11 = vmul.f32 %v4711_v55, %v1318_v1  ;;  %v934_v56 = vmul.f32 %v4653_v50, %v900_v37 }
 0x133   : > { %v804_v3 = vrot.slane %v753_v39, 7  ;;  %v1223_v13 = vrot.slane %v753_v39, 1  ;;  %v1095_v19 = vpack.c.bf16 %v753_v39, %v753_v39  ;;  %v535_v37 = vadd.f32 %v4574_v10, %v499_v41 }
 0x134   : > { %v1384_v23 = vpack.c.bf16 %v1352_v11, %v1352_v11  ;;  %v966_v39 = vpack.c.bf16 %v934_v56, %v934_v56 }
 0x135   : > { %v1159_v30 = vunpack.c.l.b16 %v1095_v19  ;;  %v1269_v35 = vsel %vm1246_vm2, %v1222_v28, %v1223_v13  ;;  %v850_v38 = vsel %vm827_vm1, %v803_v25, %v804_v3  ;;  %v536_v19 = vadd.f32 %v4574_v10, %v500_v59 }
 0x136   : > { %v689_v16 = vpop.f32.mrf.mxu0  ;;  %v1448_v40 = vunpack.c.l.b16 %v1384_v23  ;;  %v1287_v46 = vpack.c.bf16 %v1269_v35, %v1269_v35  ;;  %v869_v48 = vpack.c.bf16 %v850_v38, %v850_v38  ;;  %v1030_v35 = vunpack.c.l.b16 %v966_v39 }
 0x137   : > { %v690_v42 = vadd.f32 %v4658_v51, %v689_v16  ;;  %v4817_v57 = vpack.c.b16 %v1159_v30, %v1158_v60  ;;  %v568_v56 = vmax.f32 %v536_v19, 0.0  ;;  %v466_v19 = vld [vmem:[%s4547_s25 + $0xf8] sm:$0xff] }
 0x138   : > { %v4820_v58 = vpack.c.b16 %v1448_v40, %v1447_v21  ;;  %v901_v28 = vunpack.c.l.bf16 %v869_v48  ;;  %v1319_v25 = vunpack.c.l.bf16 %v1287_v46  ;;  %v567_v46 = vmax.f32 %v535_v37, 0.0 }
 0x139   : > { %6086 = vst [vmem:[#allocation39_spill] sm:$0xff] %v4817_v57  ;;  %v754_v62 = vmax.f32 %v690_v42, 0.0  ;;  %728 = vmatmul.bf16.gmra.mxu0 %v4807_v61  ;;  %1863 = vmatmul.bf16.gmra.mxu2 %v4817_v57  ;;  %v3899_v57 = vld [vmem:[#allocation8 + $0x28] sm:$0xff] }
 0x13a   : > { %6087 = vst [vmem:[#allocation40_spill] sm:$0xff] %v4820_v58  ;;  %1947 = vmatmul.bf16.gmra.mxu3 %v4820_v58  ;;  %v935_v1 = vmul.f32 %v4701_v34, %v901_v28  ;;  %v1353_v24 = vmul.f32 %v1319_v25, %v4701_v34 }
 0x13b   : > { %v805_v7 = vrot.slane %v754_v62, 7  ;;  %v1224_v11 = vrot.slane %v754_v62, 1  ;;  %v1096_v48 = vpack.c.bf16 %v754_v62, %v754_v62 }
 0x13c   : > { %v967_v60 = vpack.c.bf16 %v935_v1, %v935_v1  ;;  %v1385_v59 = vpack.c.bf16 %v1353_v24, %v1353_v24 }
 0x13d   : > { %v1268_v23 = vsel %vm1246_vm2, %v1223_v13, %v1224_v11  ;;  %v849_v30 = vsel %vm827_vm1, %v804_v3, %v805_v7 }
 0x13e   : > { %v691_v21 = vpop.f32.mrf.mxu0  ;;  %v1288_v17 = vpack.c.bf16 %v1268_v23, %v1268_v23  ;;  %v1031_v38 = vunpack.c.l.b16 %v967_v60  ;;  %v870_v16 = vpack.c.bf16 %v849_v30, %v849_v30  ;;  %v4838_v60 = vpack.c.bf16 %v568_v56, %v567_v46 }
 0x13f   : > { %v692_v40 = vadd.f32 %v4658_v51, %v691_v21  ;;  %v1160_v23 = vunpack.c.l.b16 %v1096_v48  ;;  %v465_v21 = vld [vmem:[%s4547_s25 + $0xf0] sm:$0xff]  ;;  %v1449_v62 = vunpack.c.l.b16 %v1385_v59  ;;  %v502_v59 = vmul.f32 %v4565_v4, %v466_v19  ;;  %s3353_s25 = sshll.u32 %s3350_s5, 4  ;;  %s3354_s25 = int_to_ptr.hbm [resolvable:$true] %s3353_s25 }
 0x140   : > { %v1320_v42 = vunpack.c.l.bf16 %v1288_v17  ;;  %v4835_v41 = vpack.c.b16 %v1031_v38, %v1030_v35  ;;  %v902_v3 = vunpack.c.l.bf16 %v870_v16  ;;  %6088 = vst [vmem:[#allocation41_spill] sm:$0xff] %v4838_v60  ;;  %v501_v56 = vmul.f32 %v4565_v4, %v465_v21  ;;  %s4288_s3 = sshra.s32 %s3354_s25, 4  ;;  %s4289_s3 = int_to_ptr.hbm [resolvable:$true] %s4288_s3 }
 0x141   : > { %v755_v13 = vmax.f32 %v692_v40, 0.0  ;;  %s4290_s16 = scalar_lea.hbm %s4289_s3, 256  ;;  %p4295_p13 = scmp.lt.s32.totalorder %s4289_s3, %s5978_s9 }
 0x142   : > { %v1354_v28 = vmul.f32 %v4711_v55, %v1320_v42  ;;  %v936_v42 = vmul.f32 %v4653_v50, %v902_v3  ;;  %v537_v21 = vadd.f32 %v4574_v10, %v501_v56  ;;  %p4291_p1 = scmp.ne.s32.totalorder %s4289_s3, %s4290_s16  ;;  %p4296_p7 = scmp.lt.s32.totalorder %s4294_s21, %s4290_s16 }
 0x143   : > { %v806_v25 = vrot.slane %v755_v13, 7  ;;  %v1225_v1 = vrot.slane %v755_v13, 1  ;;  %v1097_v39 = vpack.c.bf16 %v755_v13, %v755_v13 }
 0x144   : > { %v1386_v30 = vpack.c.bf16 %v1354_v28, %v1354_v28  ;;  %p4292_p3 = pnand %p4291_p1, %p4508_p0  ;;  %p4297_p8 = por %p4296_p7, %p4295_p13 }
 0x145   : > { %v1161_v37 = vunpack.c.l.b16 %v1097_v39  ;;  %v1267_v17 = vsel %vm1246_vm2, %v1224_v11, %v1225_v1  ;;  %v848_v24 = vsel %vm827_vm1, %v805_v7, %v806_v25  ;;  %v968_v39 = vpack.c.bf16 %v936_v42, %v936_v42 }
 0x146   : > { %v694_v35 = vpop.f32.mrf.mxu0  ;;  %v1450_v38 = vunpack.c.l.b16 %v1386_v30  ;;  %v1289_v16 = vpack.c.bf16 %v1267_v17, %v1267_v17  ;;  %v871_v40 = vpack.c.bf16 %v848_v24, %v848_v24  ;;  %p4293_p4 = pneg %p4292_p3 }
 0x147   : > { %v695_v46 = vadd.f32 %v4658_v51, %v694_v35  ;;  %v4848_v48 = vpack.c.b16 %v1161_v37, %v1160_v23  ;;  %v538_v37 = vadd.f32 %v4574_v10, %v502_v59 }
 0x148   : > { %v4851_v13 = vpack.c.b16 %v1450_v38, %v1449_v62  ;;  %v903_v11 = vunpack.c.l.bf16 %v871_v40  ;;  %v1321_v7 = vunpack.c.l.bf16 %v1289_v16  ;;  %v1032_v38 = vunpack.c.l.b16 %v968_v39  ;;  %p4298_p9 = pnand %p4297_p8, %p4293_p4 }
 0x149   : > { %6089 = vst [vmem:[#allocation42_spill] sm:$0xff] %v4848_v48  ;;  %v756_v28 = vmax.f32 %v695_v46, 0.0  ;;  %733 = vmatmul.bf16.gmra.mxu0 %v4838_v60  ;;  %1868 = vmatmul.bf16.gmra.mxu2 %v4848_v48  ;;  %v569_v46 = vmax.f32 %v537_v21, 0.0 }
 0x14a   : > { %6090 = vst [vmem:[#allocation43_spill] sm:$0xff] %v4851_v13  ;;  %1952 = vmatmul.bf16.gmra.mxu3 %v4851_v13  ;;  %v937_v3 = vmul.f32 %v4701_v34, %v903_v11  ;;  %v1355_v19 = vmul.f32 %v1321_v7, %v4701_v34  ;;  %v570_v11 = vmax.f32 %v538_v37, 0.0 }
 0x14b   : > { %v807_v23 = vrot.slane %v756_v28, 7  ;;  %v1226_v30 = vrot.slane %v756_v28, 1  ;;  %v1098_v56 = vpack.c.bf16 %v756_v28, %v756_v28 }
 0x14c   : > { %v969_v62 = vpack.c.bf16 %v937_v3, %v937_v3 }
 0x14d   : > { %v1266_v4 = vsel %vm1246_vm2, %v1225_v1, %v1226_v30  ;;  %v847_v17 = vsel %vm827_vm1, %v806_v25, %v807_v23  ;;  %v1387_v1 = vpack.c.bf16 %v1355_v19, %v1355_v19  ;;  %v1162_v39 = vunpack.c.l.b16 %v1098_v56 }
 0x14e   : > { %v696_v24 = vpop.f32.mrf.mxu0  ;;  %v1290_v35 = vpack.c.bf16 %v1266_v4, %v1266_v4  ;;  %v1033_v16 = vunpack.c.l.b16 %v969_v62  ;;  %v872_v40 = vpack.c.bf16 %v847_v17, %v847_v17  ;;  %v4869_v4 = vpack.c.bf16 %v570_v11, %v569_v46 }
 0x14f   : > { %v697_v42 = vadd.f32 %v4658_v51, %v696_v24  ;;  %v1451_v24 = vunpack.c.l.b16 %v1387_v1 }
 0x150   : > { %v1322_v10 = vunpack.c.l.bf16 %v1290_v35  ;;  %v4866_v59 = vpack.c.b16 %v1033_v16, %v1032_v38  ;;  %v904_v9 = vunpack.c.l.bf16 %v872_v40  ;;  %6091 = vst [vmem:[#allocation44_spill] sm:$0xff] %v4869_v4 }
 0x151   : > { %v757_v3 = vmax.f32 %v697_v42, 0.0 }
 0x152   : > { %v1356_v7 = vmul.f32 %v4711_v55, %v1322_v10  ;;  %v938_v16 = vmul.f32 %v4653_v50, %v904_v9 }
 0x153   : > { %v808_v8 = vrot.slane %v757_v3, 7  ;;  %v1227_v25 = vrot.slane %v757_v3, 1  ;;  %v1099_v60 = vpack.c.bf16 %v757_v3, %v757_v3 }
 0x154   : > { %v1388_v62 = vpack.c.bf16 %v1356_v7, %v1356_v7  ;;  %v970_v11 = vpack.c.bf16 %v938_v16, %v938_v16 }
 0x155   : > { %v1163_v17 = vunpack.c.l.b16 %v1099_v60  ;;  %v1265_v28 = vsel %vm1246_vm2, %v1226_v30, %v1227_v25  ;;  %v846_v21 = vsel %vm827_vm1, %v807_v23, %v808_v8 }
 0x156   : > { %v699_v37 = vpop.f32.mrf.mxu0  ;;  %v1452_v19 = vunpack.c.l.b16 %v1388_v62  ;;  %v1291_v35 = vpack.c.bf16 %v1265_v28, %v1265_v28  ;;  %v873_v38 = vpack.c.bf16 %v846_v21, %v846_v21 }
 0x157   : > { %v700_v40 = vadd.f32 %v4658_v51, %v699_v37  ;;  %v4877_v42 = vpack.c.b16 %v1163_v17, %v1162_v39 }
 0x158   : > { %v4879_v46 = vpack.c.b16 %v1452_v19, %v1451_v24  ;;  %v905_v60 = vunpack.c.l.bf16 %v873_v38  ;;  %v1323_v30 = vunpack.c.l.bf16 %v1291_v35  ;;  %v1034_v24 = vunpack.c.l.b16 %v970_v11 }
 0x159   : > { %6092 = vst [vmem:[#allocation45_spill] sm:$0xff] %v4877_v42  ;;  %v758_v56 = vmax.f32 %v700_v40, 0.0  ;;  %738 = vmatmul.bf16.gmra.mxu0 %v4869_v4  ;;  %1873 = vmatmul.bf16.gmra.mxu2 %v4877_v42 }
 0x15a   : > { %6093 = vst [vmem:[#allocation46_spill] sm:$0xff] %v4879_v46  ;;  %1957 = vmatmul.bf16.gmra.mxu3 %v4879_v46  ;;  %v939_v23 = vmul.f32 %v4701_v34, %v905_v60  ;;  %v1357_v7 = vmul.f32 %v1323_v30, %v4701_v34 }
 0x15b   : > { %v809_v10 = vrot.slane %v758_v56, 7  ;;  %v1228_v9 = vrot.slane %v758_v56, 1  ;;  %v1100_v19 = vpack.c.bf16 %v758_v56, %v758_v56 }
 0x15c   : > { %v971_v3 = vpack.c.bf16 %v939_v23, %v939_v23  ;;  %v1389_v40 = vpack.c.bf16 %v1357_v7, %v1357_v7 }
 0x15d   : > { %v1264_v1 = vsel %vm1246_vm2, %v1227_v25, %v1228_v9  ;;  %v845_v39 = vsel %vm827_vm1, %v808_v8, %v809_v10  ;;  %v1164_v8 = vunpack.c.l.b16 %v1100_v19 }
 0x15e   : > { %v701_v62 = vpop.f32.mrf.mxu0  ;;  %v1292_v17 = vpack.c.bf16 %v1264_v1, %v1264_v1  ;;  %v1035_v28 = vunpack.c.l.b16 %v971_v3  ;;  %v874_v21 = vpack.c.bf16 %v845_v39, %v845_v39  ;;  %v1453_v11 = vunpack.c.l.b16 %v1389_v40 }
 0x15f   : > { %v702_v37 = vadd.f32 %v4658_v51, %v701_v62 }
 0x160   : > { %v1324_v35 = vunpack.c.l.bf16 %v1292_v17  ;;  %v4891_v38 = vpack.c.b16 %v1035_v28, %v1034_v24  ;;  %v906_v60 = vunpack.c.l.bf16 %v874_v21 }
 0x161   : > { %v759_v16 = vmax.f32 %v702_v37, 0.0 }
 0x162   : > { %v1358_v25 = vmul.f32 %v4711_v55, %v1324_v35  ;;  %v940_v24 = vmul.f32 %v4653_v50, %v906_v60 }
 0x163   : > { %v810_v30 = vrot.slane %v759_v16, 7  ;;  %v1229_v23 = vrot.slane %v759_v16, 1  ;;  %v1101_v4 = vpack.c.bf16 %v759_v16, %v759_v16 }
 0x164   : > { %v1390_v61 = vpack.c.bf16 %v1358_v25, %v1358_v25 }
 0x165   : > { %v1165_v1 = vunpack.c.l.b16 %v1101_v4  ;;  %v1263_v3 = vsel %vm1246_vm2, %v1228_v9, %v1229_v23  ;;  %v844_v56 = vsel %vm827_vm1, %v809_v10, %v810_v30 }
 0x166   : > { %v704_v39 = vpop.f32.mrf.mxu0  ;;  %v1454_v62 = vunpack.c.l.b16 %v1390_v61  ;;  %v1293_v17 = vpack.c.bf16 %v1263_v3, %v1263_v3  ;;  %v875_v7 = vpack.c.bf16 %v844_v56, %v844_v56  ;;  %v972_v61 = vpack.c.bf16 %v940_v24, %v940_v24 }
 0x167   : > { %v705_v28 = vadd.f32 %v4658_v51, %v704_v39  ;;  %v4900_v21 = vpack.c.b16 %v1165_v1, %v1164_v8 }
 0x168   : > { %v4902_v37 = vpack.c.b16 %v1454_v62, %v1453_v11  ;;  %v907_v4 = vunpack.c.l.bf16 %v875_v7  ;;  %v1325_v9 = vunpack.c.l.bf16 %v1293_v17  ;;  %v1036_v3 = vunpack.c.l.b16 %v972_v61 }
 0x169   : > { %6094 = vst [vmem:[#allocation47_spill] sm:$0xff] %v4900_v21  ;;  %v760_v19 = vmax.f32 %v705_v28, 0.0  ;;  %1878 = vmatmul.bf16.gmra.mxu2 %v4900_v21  ;;  %v3901_v21 = vld [vmem:[#allocation8 + $0x38] sm:$0xff] }
 0x16a   : > { %6095 = vst [vmem:[#allocation48_spill] sm:$0xff] %v4902_v37  ;;  %1962 = vmatmul.bf16.gmra.mxu3 %v4902_v37  ;;  %v941_v10 = vmul.f32 %v4701_v34, %v907_v4  ;;  %v1359_v60 = vmul.f32 %v1325_v9, %v4701_v34  ;;  %2157 = vmatpush.bf16.msrb.mxu0 %v3901_v21 }
 0x16b   : > { %v811_v35 = vrot.slane %v760_v19, 7  ;;  %v1230_v16 = vrot.slane %v760_v19, 1  ;;  %v1102_v17 = vpack.c.bf16 %v760_v19, %v760_v19 }
 0x16c   : > { %v973_v40 = vpack.c.bf16 %v941_v10, %v941_v10  ;;  %v1391_v4 = vpack.c.bf16 %v1359_v60, %v1359_v60 }
 0x16d   : > { %v1262_v25 = vsel %vm1246_vm2, %v1229_v23, %v1230_v16  ;;  %v843_v8 = vsel %vm827_vm1, %v810_v30, %v811_v35  ;;  %v1166_v30 = vunpack.c.l.b16 %v1102_v17 }
 0x16e   : > { %v706_v1 = vpop.f32.mrf.mxu0  ;;  %v1294_v11 = vpack.c.bf16 %v1262_v25, %v1262_v25  ;;  %v1037_v56 = vunpack.c.l.b16 %v973_v40  ;;  %v876_v39 = vpack.c.bf16 %v843_v8, %v843_v8  ;;  %v1455_v61 = vunpack.c.l.b16 %v1391_v4 }
 0x16f   : > { %v707_v62 = vadd.f32 %v4658_v51, %v706_v1 }
 0x170   : > { %v1326_v7 = vunpack.c.l.bf16 %v1294_v11  ;;  %v4913_v24 = vpack.c.b16 %v1037_v56, %v1036_v3  ;;  %v908_v10 = vunpack.c.l.bf16 %v876_v39 }
 0x171   : > { %v761_v28 = vmax.f32 %v707_v62, 0.0 }
 0x172   : > { %v1360_v23 = vmul.f32 %v4711_v55, %v1326_v7  ;;  %v942_v3 = vmul.f32 %v4653_v50, %v908_v10 }
 0x173   : > { %v812_v9 = vrot.slane %v761_v28, 7  ;;  %v1231_v43 = vrot.slane %v761_v28, 1  ;;  %v1103_v20 = vpack.c.bf16 %v761_v28, %v761_v28 }
 0x174   : > { %v1392_v6 = vpack.c.bf16 %v1360_v23, %v1360_v23 }
 0x175   : > { %v1167_v25 = vunpack.c.l.b16 %v1103_v20  ;;  %v1261_v40 = vsel %vm1246_vm2, %v1230_v16, %v1231_v43  ;;  %v842_v19 = vsel %vm827_vm1, %v811_v35, %v812_v9 }
 0x176   : > { %v709_v8 = vpop.f32.mrf.mxu0  ;;  %v1456_v1 = vunpack.c.l.b16 %v1392_v6  ;;  %v1295_v11 = vpack.c.bf16 %v1261_v40, %v1261_v40  ;;  %v877_v60 = vpack.c.bf16 %v842_v19, %v842_v19  ;;  %v974_v6 = vpack.c.bf16 %v942_v3, %v942_v3 }
 0x177   : > { %v710_v56 = vadd.f32 %v4658_v51, %v709_v8  ;;  %v4922_v39 = vpack.c.b16 %v1167_v25, %v1166_v30 }
 0x178   : > { %v4924_v62 = vpack.c.b16 %v1456_v1, %v1455_v61  ;;  %v909_v20 = vunpack.c.l.bf16 %v877_v60  ;;  %v1327_v16 = vunpack.c.l.bf16 %v1295_v11  ;;  %v1038_v19 = vunpack.c.l.b16 %v974_v6 }
 0x179   : > { %6096 = vst [vmem:[#allocation49_spill] sm:$0xff] %v4922_v39  ;;  %v762_v17 = vmax.f32 %v710_v56, 0.0  ;;  %1883 = vmatmul.bf16.gmra.mxu2 %v4922_v39 }
 0x17a   : > { %6097 = vst [vmem:[#allocation50_spill] sm:$0xff] %v4924_v62  ;;  %1967 = vmatmul.bf16.gmra.mxu3 %v4924_v62  ;;  %v943_v35 = vmul.f32 %v4701_v34, %v909_v20  ;;  %v1361_v30 = vmul.f32 %v1327_v16, %v4701_v34 }
 0x17b   : > { %v813_v7 = vrot.slane %v762_v17, 7  ;;  %v1232_v28 = vrot.slane %v762_v17, 1  ;;  %v1104_v60 = vpack.c.bf16 %v762_v17, %v762_v17 }
 0x17c   : > { %v4929_v4 = vpop.f32.mrf.mxu2  ;;  %v975_v23 = vpack.c.bf16 %v943_v35, %v943_v35  ;;  %v1393_v35 = vpack.c.bf16 %v1361_v30, %v1361_v30 }
 0x17d   : > { %v1260_v10 = vsel %vm1246_vm2, %v1231_v43, %v1232_v28  ;;  %v841_v25 = vsel %vm827_vm1, %v812_v9, %v813_v7 }
 0x17e   : > { %v711_v61 = vpop.f32.mrf.mxu0  ;;  %v1296_v40 = vpack.c.bf16 %v1260_v10, %v1260_v10  ;;  %v1039_v8 = vunpack.c.l.b16 %v975_v23  ;;  %v878_v1 = vpack.c.bf16 %v841_v25, %v841_v25  ;;  %v1168_v10 = vunpack.c.l.b16 %v1104_v60 }
 0x17f   : > { %v712_v11 = vadd.f32 %v4658_v51, %v711_v61  ;;  %v1457_v25 = vunpack.c.l.b16 %v1393_v35 }
 0x180   : > { %v1328_v3 = vunpack.c.l.bf16 %v1296_v40  ;;  %v4937_v56 = vpack.c.b16 %v1039_v8, %v1038_v19  ;;  %v910_v15 = vunpack.c.l.bf16 %v878_v1 }
 0x181   : > { %v763_v20 = vmax.f32 %v712_v11, 0.0 }
 0x182   : > { %v1362_v43 = vmul.f32 %v4711_v55, %v1328_v3  ;;  %v944_v1 = vmul.f32 %v4653_v50, %v910_v15 }
 0x183   : > { %v814_v16 = vrot.slane %v763_v20, 7  ;;  %v1233_v52 = vrot.slane %v763_v20, 1  ;;  %v1105_v32 = vpack.c.bf16 %v763_v20, %v763_v20 }
 0x184   : > { %v4940_v9 = vpop.f32.mrf.mxu2  ;;  %v1394_v6 = vpack.c.bf16 %v1362_v43, %v1362_v43  ;;  %v976_v35 = vpack.c.bf16 %v944_v1, %v944_v1 }
 0x185   : > { %v1169_v23 = vunpack.c.l.b16 %v1105_v32  ;;  %v1259_v17 = vsel %vm1246_vm2, %v1232_v28, %v1233_v52  ;;  %v840_v61 = vsel %vm827_vm1, %v813_v7, %v814_v16 }
 0x186   : > { %v714_v40 = vpop.f32.mrf.mxu0  ;;  %v1458_v30 = vunpack.c.l.b16 %v1394_v6  ;;  %v1297_v19 = vpack.c.bf16 %v1259_v17, %v1259_v17  ;;  %v879_v8 = vpack.c.bf16 %v840_v61, %v840_v61 }
 0x187   : > { %v715_v11 = vadd.f32 %v4658_v51, %v714_v40  ;;  %v4948_v3 = vpack.c.b16 %v1169_v23, %v1168_v10 }
 0x188   : > { %v4950_v60 = vpack.c.b16 %v1458_v30, %v1457_v25  ;;  %v911_v32 = vunpack.c.l.bf16 %v879_v8  ;;  %v1329_v28 = vunpack.c.l.bf16 %v1297_v19  ;;  %v1040_v19 = vunpack.c.l.b16 %v976_v35 }
 0x189   : > { %6098 = vst [vmem:[#allocation51_spill] sm:$0xff] %v4948_v3  ;;  %v764_v20 = vmax.f32 %v715_v11, 0.0  ;;  %1888 = vmatmul.bf16.gmra.mxu2 %v4948_v3 }
 0x18a   : > { %6099 = vst [vmem:[#allocation52_spill] sm:$0xff] %v4950_v60  ;;  %1972 = vmatmul.bf16.gmra.mxu3 %v4950_v60  ;;  %v945_v7 = vmul.f32 %v4701_v34, %v911_v32  ;;  %v1363_v23 = vmul.f32 %v1329_v28, %v4701_v34 }
 0x18b   : > { %v815_v43 = vrot.slane %v764_v20, 7  ;;  %v1234_v6 = vrot.slane %v764_v20, 1  ;;  %v1106_v32 = vpack.c.bf16 %v764_v20, %v764_v20 }
 0x18c   : > { %v4955_v17 = vpop.f32.mrf.mxu2  ;;  %v977_v15 = vpack.c.bf16 %v945_v7, %v945_v7  ;;  %v1395_v54 = vpack.c.bf16 %v1363_v23, %v1363_v23 }
 0x18d   : > { %v4957_v61 = vpop.f32.mrf.mxu3  ;;  %v1258_v10 = vsel %vm1246_vm2, %v1233_v52, %v1234_v6  ;;  %v839_v25 = vsel %vm827_vm1, %v814_v16, %v815_v43 }
 0x18e   : > { %v716_v40 = vpop.f32.mrf.mxu0  ;;  %v1298_v30 = vpack.c.bf16 %v1258_v10, %v1258_v10  ;;  %v1041_v8 = vunpack.c.l.b16 %v977_v15  ;;  %v880_v1 = vpack.c.bf16 %v839_v25, %v839_v25  ;;  %v1170_v10 = vunpack.c.l.b16 %v1106_v32 }
 0x18f   : > { %v717_v11 = vadd.f32 %v4658_v51, %v716_v40  ;;  %v1459_v51 = vunpack.c.l.b16 %v1395_v54 }
 0x190   : > { %v1330_v14 = vunpack.c.l.bf16 %v1298_v30  ;;  %v4965_v7 = vpack.c.b16 %v1041_v8, %v1040_v19  ;;  %v912_v45 = vunpack.c.l.bf16 %v880_v1  ;;  %v4980_v8 = vld [vmem:[%s5973_s4] ss:$0 sm:$0xff] }
 0x191   : > { %v765_v63 = vmax.f32 %v717_v11, 0.0 }
 0x192   : > { %v1364_v52 = vmul.f32 %v4711_v55, %v1330_v14 }
 0x193   : > { %v816_v28 = vrot.slane %v765_v63, 7  ;;  %v1235_v36 = vrot.slane %v765_v63, 1  ;;  %v1107_v27 = vpack.c.bf16 %v765_v63, %v765_v63  ;;  %v946_v63 = vmul.f32 %v4653_v50, %v912_v45 }
 0x194   : > { %v4968_v16 = vpop.f32.mrf.mxu2  ;;  %v1396_v35 = vpack.c.bf16 %v1364_v52, %v1364_v52 }
 0x195   : > { %v4970_v15 = vpop.f32.mrf.mxu3  ;;  %v1171_v25 = vunpack.c.l.b16 %v1107_v27  ;;  %v1257_v20 = vsel %vm1246_vm2, %v1234_v6, %v1235_v36  ;;  %v838_v23 = vsel %vm827_vm1, %v815_v43, %v816_v28  ;;  %v978_v32 = vpack.c.bf16 %v946_v63, %v946_v63 }
 0x196   : > { %v719_v40 = vpop.f32.mrf.mxu0  ;;  %v1460_v14 = vunpack.c.l.b16 %v1396_v35  ;;  %v1299_v30 = vpack.c.bf16 %v1257_v20, %v1257_v20  ;;  %v881_v19 = vpack.c.bf16 %v838_v23, %v838_v23 }
 0x197   : > { %v720_v27 = vadd.f32 %v4980_v8, %v719_v40  ;;  %v4983_v54 = vpack.c.b16 %v1171_v25, %v1170_v10 }
 0x198   : > { %v4985_v1 = vpack.c.b16 %v1460_v14, %v1459_v51  ;;  %v913_v6 = vunpack.c.l.bf16 %v881_v19  ;;  %v1331_v43 = vunpack.c.l.bf16 %v1299_v30  ;;  %v1042_v19 = vunpack.c.l.b16 %v978_v32 }
 0x199   : > { %6100 = vst [vmem:[#allocation53_spill] sm:$0xff] %v4983_v54  ;;  %v766_v11 = vmax.f32 %v720_v27, 0.0  ;;  %1893 = vmatmul.bf16.gmra.mxu2 %v4983_v54 }
 0x19a   : > { %6101 = vst [vmem:[#allocation54_spill] sm:$0xff] %v4985_v1  ;;  %1977 = vmatmul.bf16.gmra.mxu3 %v4985_v1  ;;  %v947_v45 = vmul.f32 %v4701_v34, %v913_v6  ;;  %v1365_v25 = vmul.f32 %v1331_v43, %v4701_v34 }
 0x19b   : > { %v817_v52 = vrot.slane %v766_v11, 7  ;;  %v1236_v35 = vrot.slane %v766_v11, 1  ;;  %v1108_v18 = vpack.c.bf16 %v766_v11, %v766_v11 }
 0x19c   : > { %v4990_v20 = vpop.f32.mrf.mxu2  ;;  %v979_v23 = vpack.c.bf16 %v947_v45, %v947_v45  ;;  %v1397_v39 = vpack.c.bf16 %v1365_v25, %v1365_v25  ;;  %v3900_v25 = vld [vmem:[#allocation8 + $0x30] sm:$0xff] }
 0x19d   : > { %v4992_v40 = vpop.f32.mrf.mxu3  ;;  %v1256_v10 = vsel %vm1246_vm2, %v1235_v36, %v1236_v35  ;;  %v837_v51 = vsel %vm827_vm1, %v816_v28, %v817_v52  ;;  %v1172_v32 = vunpack.c.l.b16 %v1108_v18  ;;  %2158 = vmatpush.bf16.msrb.mxu0 %v3900_v25 }
 0x19e   : > { %v721_v14 = vpop.f32.mrf.mxu0  ;;  %v1300_v30 = vpack.c.bf16 %v1256_v10, %v1256_v10  ;;  %v1043_v27 = vunpack.c.l.b16 %v979_v23  ;;  %v882_v63 = vpack.c.bf16 %v837_v51, %v837_v51 }
 0x19f   : > { %v722_v6 = vadd.f32 %v4980_v8, %v721_v14  ;;  %v1461_v14 = vunpack.c.l.b16 %v1397_v39 }
 0x1a0   : > { %v1332_v54 = vunpack.c.l.bf16 %v1300_v30  ;;  %v5000_v45 = vpack.c.b16 %v1043_v27, %v1042_v19  ;;  %v914_v43 = vunpack.c.l.bf16 %v882_v63 }
 0x1a1   : > { %v767_v3 = vmax.f32 %v722_v6, 0.0  ;;  %2159 = vmatpush.bf16.msrb.mxu0 %v3899_v57 }
 0x1a2   : > { %v1366_v36 = vmul.f32 %v4711_v55, %v1332_v54  ;;  %v948_v21 = vmul.f32 %v4653_v50, %v914_v43 }
 0x1a3   : > { %v818_v42 = vrot.slane %v767_v3, 7  ;;  %v1237_v48 = vrot.slane %v767_v3, 1  ;;  %v1109_v28 = vpack.c.bf16 %v767_v3, %v767_v3 }
 0x1a4   : > { %v5003_v10 = vpop.f32.mrf.mxu2  ;;  %v1398_v23 = vpack.c.bf16 %v1366_v36, %v1366_v36 }
 0x1a5   : > { %v5005_v51 = vpop.f32.mrf.mxu3  ;;  %v1173_v11 = vunpack.c.l.b16 %v1109_v28  ;;  %v1255_v30 = vsel %vm1246_vm2, %v1236_v35, %v1237_v48  ;;  %v836_v54 = vsel %vm827_vm1, %v817_v52, %v818_v42 }
 0x1a6   : > { %v724_v19 = vpop.f32.mrf.mxu0  ;;  %v1462_v27 = vunpack.c.l.b16 %v1398_v23  ;;  %v1301_v63 = vpack.c.bf16 %v1255_v30, %v1255_v30  ;;  %v883_v3 = vpack.c.bf16 %v836_v54, %v836_v54  ;;  %v980_v23 = vpack.c.bf16 %v948_v21, %v948_v21 }
 0x1a7   : > { %v725_v18 = vadd.f32 %v4980_v8, %v724_v19  ;;  %v5013_v6 = vpack.c.b16 %v1173_v11, %v1172_v32  ;;  %v3898_v19 = vld [vmem:[#allocation8 + $0x20] sm:$0xff] }
 0x1a8   : > { %v5015_v36 = vpack.c.b16 %v1462_v27, %v1461_v14  ;;  %v915_v39 = vunpack.c.l.bf16 %v883_v3  ;;  %v1333_v35 = vunpack.c.l.bf16 %v1301_v63  ;;  %v1044_v21 = vunpack.c.l.b16 %v980_v23  ;;  %2160 = vmatpush.bf16.msrb.mxu0 %v3898_v19 }
 0x1a9   : > { %6102 = vst [vmem:[#allocation55_spill] sm:$0xff] %v5013_v6  ;;  %v768_v28 = vmax.f32 %v725_v18, 0.0  ;;  %1898 = vmatmul.bf16.gmra.mxu2 %v5013_v6 }
 0x1aa   : > { %6103 = vst [vmem:[#allocation56_spill] sm:$0xff] %v5015_v36  ;;  %1982 = vmatmul.bf16.gmra.mxu3 %v5015_v36  ;;  %v949_v52 = vmul.f32 %v4701_v34, %v915_v39  ;;  %v1367_v25 = vmul.f32 %v1333_v35, %v4701_v34  ;;  %v3897_v35 = vld [vmem:[#allocation8 + $0x18] sm:$0xff] }
 0x1ab   : > { %v819_v30 = vrot.slane %v768_v28, 7  ;;  %v1238_v43 = vrot.slane %v768_v28, 1 }
 0x1ac   : > { %v5020_v54 = vpop.f32.mrf.mxu2  ;;  %v981_v32 = vpack.c.bf16 %v949_v52, %v949_v52  ;;  %v1110_v52 = vpack.c.bf16 %v768_v28, %v768_v28  ;;  %2161 = vmatpush.bf16.msrb.mxu0 %v3897_v35 }
 0x1ad   : > { %6104 = vst [vmem:[#allocation57_spill] sm:$0xff] %v5020_v54  ;;  %v5022_v11 = vpop.f32.mrf.mxu3  ;;  %v1254_v14 = vsel %vm1246_vm2, %v1237_v48, %v1238_v43  ;;  %v835_v27 = vsel %vm827_vm1, %v818_v42, %v819_v30  ;;  %v1399_v48 = vpack.c.bf16 %v1367_v25, %v1367_v25 }
 0x1ae   : > { %v726_v63 = vpop.f32.mrf.mxu0  ;;  %v1302_v3 = vpack.c.bf16 %v1254_v14, %v1254_v14  ;;  %v1045_v18 = vunpack.c.l.b16 %v981_v32  ;;  %v884_v39 = vpack.c.bf16 %v835_v27, %v835_v27  ;;  %v1174_v32 = vunpack.c.l.b16 %v1110_v52 }
 0x1af   : > { %v727_v57 = vadd.f32 %v4980_v8, %v726_v63  ;;  %v1463_v63 = vunpack.c.l.b16 %v1399_v48 }
 0x1b0   : > { %v1334_v6 = vunpack.c.l.bf16 %v1302_v3  ;;  %v5030_v49 = vpack.c.b16 %v1045_v18, %v1044_v21  ;;  %v916_v36 = vunpack.c.l.bf16 %v884_v39  ;;  %v3924_v3 = vld [vmem:[#allocation8 + $0xf0] sm:$0xff] }
 0x1b1   : > { %v769_v26 = vmax.f32 %v727_v57, 0.0  ;;  %v3896_v21 = vld [vmem:[#allocation8 + $0x10] sm:$0xff]  ;;  %1747 = vmatpush.bf16.msra.mxu1 %v3924_v3 }
 0x1b2   : > { %6105 = vst [vmem:[#allocation58_spill] sm:$0xff] %v5030_v49  ;;  %v1368_v29 = vmul.f32 %v4711_v55, %v1334_v6  ;;  %v950_v57 = vmul.f32 %v4653_v50, %v916_v36  ;;  %2162 = vmatpush.bf16.msrb.mxu0 %v3896_v21  ;;  %v3916_v3 = vld [vmem:[#allocation8 + $0xb0] sm:$0xff] }
 0x1b3   : > { %v820_v42 = vrot.slane %v769_v26, 7  ;;  %v1239_v54 = vrot.slane %v769_v26, 1  ;;  %v1111_v14 = vpack.c.bf16 %v769_v26, %v769_v26 }
 0x1b4   : > { %v5033_v23 = vpop.f32.mrf.mxu2  ;;  %v1400_v19 = vpack.c.bf16 %v1368_v29, %v1368_v29 }
 0x1b5   : > { %6106 = vst [vmem:[#allocation59_spill] sm:$0xff] %v5033_v23  ;;  %v5035_v28 = vpop.f32.mrf.mxu3  ;;  %v1175_v27 = vunpack.c.l.b16 %v1111_v14  ;;  %v1253_v25 = vsel %vm1246_vm2, %v1238_v43, %v1239_v54  ;;  %v834_v6 = vsel %vm827_vm1, %v819_v30, %v820_v42  ;;  %v3917_v43 = vld [vmem:[#allocation8 + $0xb8] sm:$0xff]  ;;  %v3923_v23 = vld [vmem:[#allocation8 + $0xe8] sm:$0xff] }
 0x1b6   : > { %6107 = vst [vmem:[#allocation60_spill] sm:$0xff] %v5035_v28  ;;  %v729_v18 = vpop.f32.mrf.mxu0  ;;  %v1464_v26 = vunpack.c.l.b16 %v1400_v19  ;;  %v1303_v47 = vpack.c.bf16 %v1253_v25, %v1253_v25  ;;  %v885_v39 = vpack.c.bf16 %v834_v6, %v834_v6  ;;  %v3895_v19 = vld [vmem:[#allocation8 + $0x8] sm:$0xff]  ;;  %2335 = vmatpush.bf16.msrb.mxu2 %v3917_v43  ;;  %v982_v25 = vpack.c.bf16 %v950_v57, %v950_v57 }
 0x1b7   : > { %v730_v29 = vadd.f32 %v4980_v8, %v729_v18  ;;  %v5043_v52 = vpack.c.b16 %v1175_v27, %v1174_v32  ;;  %1748 = vmatpush.bf16.msra.mxu1 %v3923_v23  ;;  %2163 = vmatpush.bf16.msrb.mxu0 %v3895_v19  ;;  %v6027_v28 = vmov 0  }
 0x1b8   : > { %v5045_v48 = vpack.c.b16 %v1464_v26, %v1463_v63  ;;  %v917_v35 = vunpack.c.l.bf16 %v885_v39  ;;  %v1335_v30 = vunpack.c.l.bf16 %v1303_v47  ;;  %v3922_v47 = vld [vmem:[#allocation8 + $0xe0] sm:$0xff]  ;;  %v1046_v23 = vunpack.c.l.b16 %v982_v25 }
 0x1b9   : > { %6108 = vst [vmem:[#allocation61_spill] sm:$0xff] %v5043_v52  ;;  %v770_v14 = vmax.f32 %v730_v29, 0.0  ;;  %1903 = vmatmul.bf16.gmra.mxu2 %v5043_v52  ;;  %v3894_v39 = vld [vmem:[#allocation8] sm:$0xff] }
 0x1ba   : > { %6109 = vst [vmem:[#allocation62_spill] sm:$0xff] %v5045_v48  ;;  %1987 = vmatmul.bf16.gmra.mxu3 %v5045_v48  ;;  %v951_v36 = vmul.f32 %v4701_v34, %v917_v35  ;;  %v1369_v26 = vmul.f32 %v1335_v30, %v4701_v34  ;;  %2336 = vmatpush.bf16.msrb.mxu2 %v3916_v3 }
 0x1bb   : > { %v821_v32 = vrot.slane %v770_v14, 7  ;;  %v1240_v27 = vrot.slane %v770_v14, 1  ;;  %1749 = vmatpush.bf16.msra.mxu1 %v3922_v47  ;;  %2164 = vmatpush.bf16.msrb.mxu0 %v3894_v39  ;;  %v1112_v52 = vpack.c.bf16 %v770_v14, %v770_v14 }
 0x1bc   : > { %v5050_v63 = vpop.f32.mrf.mxu2  ;;  %v983_v21 = vpack.c.bf16 %v951_v36, %v951_v36  ;;  %v1401_v49 = vpack.c.bf16 %v1369_v26, %v1369_v26 }
 0x1bd   : > { %6110 = vst [vmem:[#allocation63_spill] sm:$0xff] %v5050_v63  ;;  %v5052_v6 = vpop.f32.mrf.mxu3  ;;  %v1252_v18 = vsel %vm1246_vm2, %v1239_v54, %v1240_v27  ;;  %v833_v57 = vsel %vm827_vm1, %v820_v42, %v821_v32  ;;  %v3915_v54 = vld [vmem:[#allocation8 + $0xa8] sm:$0xff]  ;;  %v1176_v14 = vunpack.c.l.b16 %v1112_v52 }
 0x1be   : > { %6111 = vst [vmem:[#allocation64_spill] sm:$0xff] %v5052_v6  ;;  %v731_v29 = vpop.f32.mrf.mxu0  ;;  %v1304_v43 = vpack.c.bf16 %v1252_v18, %v1252_v18  ;;  %v1047_v35 = vunpack.c.l.b16 %v983_v21  ;;  %v886_v19 = vpack.c.bf16 %v833_v57, %v833_v57  ;;  %v3921_v6 = vld [vmem:[#allocation8 + $0xd8] sm:$0xff]  ;;  %2165 = vmatmul.bf16.vlgmr.msrb.gmra.mxu0 %v6027_v28  ;;  %2337 = vmatpush.bf16.msrb.mxu2 %v3915_v54  ;;  %v3914_v57 = vld [vmem:[#allocation8 + $0xa0] sm:$0xff] }
 0x1bf   : > { %v732_v36 = vadd.f32 %v4980_v8, %v731_v29  ;;  %1750 = vmatpush.bf16.msra.mxu1 %v3921_v6 }
 0x1c0   : > { %v1336_v48 = vunpack.c.l.bf16 %v1304_v43  ;;  %v5060_v63 = vpack.c.b16 %v1047_v35, %v1046_v23  ;;  %v918_v25 = vunpack.c.l.bf16 %v886_v19  ;;  %v1465_v43 = vunpack.c.l.b16 %v1401_v49  ;;  %v3920_v23 = vld [vmem:[#allocation8 + $0xd0] sm:$0xff] }
 0x1c1   : > { %v771_v30 = vmax.f32 %v732_v36, 0.0 }
 0x1c2   : > { %6112 = vst [vmem:[#allocation65_spill] sm:$0xff] %v5060_v63  ;;  %v1370_v42 = vmul.f32 %v4711_v55, %v1336_v48  ;;  %2338 = vmatpush.bf16.msrb.mxu2 %v3914_v57  ;;  %v952_v52 = vmul.f32 %v4653_v50, %v918_v25 }
 0x1c3   : > { %v822_v3 = vrot.slane %v771_v30, 7  ;;  %v1241_v21 = vrot.slane %v771_v30, 1  ;;  %v1113_v18 = vpack.c.bf16 %v771_v30, %v771_v30  ;;  %1751 = vmatpush.bf16.msra.mxu1 %v3920_v23 }
 0x1c4   : > { %v5064_v47 = vpop.f32.mrf.mxu2  ;;  %v1402_v39 = vpack.c.bf16 %v1370_v42, %v1370_v42  ;;  %v984_v57 = vpack.c.bf16 %v952_v52, %v952_v52 }
 0x1c5   : > { %6113 = vst [vmem:[#allocation66_spill] sm:$0xff] %v5064_v47  ;;  %v5066_v29 = vpop.f32.mrf.mxu3  ;;  %v1177_v26 = vunpack.c.l.b16 %v1113_v18  ;;  %v1251_v48 = vsel %vm1246_vm2, %v1240_v27, %v1241_v21  ;;  %v832_v35 = vsel %vm827_vm1, %v821_v32, %v822_v3  ;;  %v3913_v18 = vld [vmem:[#allocation8 + $0x98] sm:$0xff]  ;;  %v3919_v47 = vld [vmem:[#allocation8 + $0xc8] sm:$0xff] }
 0x1c6   : > { %6114 = vst [vmem:[#allocation67_spill] sm:$0xff] %v5066_v29  ;;  %v734_v19 = vpop.f32.mrf.mxu0  ;;  %v1466_v36 = vunpack.c.l.b16 %v1402_v39  ;;  %v1305_v54 = vpack.c.bf16 %v1251_v48, %v1251_v48  ;;  %v887_v6 = vpack.c.bf16 %v832_v35, %v832_v35  ;;  %v3949_v39 = vld [vmem:[#allocation8 + $0x1b8] sm:$0xff]  ;;  %2339 = vmatpush.bf16.msrb.mxu2 %v3913_v18 }
 0x1c7   : > { %v735_v30 = vadd.f32 %v4980_v8, %v734_v19  ;;  %v5074_v42 = vpack.c.b16 %v1177_v26, %v1176_v14  ;;  %1752 = vmatpush.bf16.msra.mxu1 %v3919_v47  ;;  %2617 = vmatpush.bf16.msrb.mxu3 %v3949_v39  ;;  %v1048_v47 = vunpack.c.l.b16 %v984_v57  ;;  %v3909_v29 = vld [vmem:[#allocation8 + $0x78] sm:$0xff] }
 0x1c8   : > { %v5076_v49 = vpack.c.b16 %v1466_v36, %v1465_v43  ;;  %v919_v27 = vunpack.c.l.bf16 %v887_v6  ;;  %v1337_v32 = vunpack.c.l.bf16 %v1305_v54  ;;  %v3912_v43 = vld [vmem:[#allocation8 + $0x90] sm:$0xff]  ;;  %v3918_v54 = vld [vmem:[#allocation8 + $0xc0] sm:$0xff] }
 0x1c9   : > { %6115 = vst [vmem:[#allocation68_spill] sm:$0xff] %v5074_v42  ;;  %v772_v28 = vmax.f32 %v735_v30, 0.0  ;;  %1908 = vmatmul.bf16.gmra.mxu2 %v5074_v42  ;;  %v3948_v6 = vld [vmem:[#allocation8 + $0x1b0] sm:$0xff] }
 0x1ca   : > { %6116 = vst [vmem:[#allocation69_spill] sm:$0xff] %v5076_v49  ;;  %1992 = vmatmul.bf16.gmra.mxu3 %v5076_v49  ;;  %v953_v25 = vmul.f32 %v4701_v34, %v919_v27  ;;  %v1371_v36 = vmul.f32 %v1337_v32, %v4701_v34  ;;  %2340 = vmatpush.bf16.msrb.mxu2 %v3912_v43 }
 0x1cb   : > { %v823_v48 = vrot.slane %v772_v28, 7  ;;  %v1242_v14 = vrot.slane %v772_v28, 1  ;;  %1753 = vmatpush.bf16.msra.mxu1 %v3918_v54  ;;  %2618 = vmatpush.bf16.msrb.mxu3 %v3948_v6  ;;  %v1114_v42 = vpack.c.bf16 %v772_v28, %v772_v28  ;;  %v3910_v6 = vld [vmem:[#allocation8 + $0x80] sm:$0xff] }
 0x1cc   : > { %v5081_v26 = vpop.f32.mrf.mxu2  ;;  %v985_v23 = vpack.c.bf16 %v953_v25, %v953_v25  ;;  %v1403_v63 = vpack.c.bf16 %v1371_v36, %v1371_v36 }
 0x1cd   : > { %6117 = vst [vmem:[#allocation70_spill] sm:$0xff] %v5081_v26  ;;  %v5083_v35 = vpop.f32.mrf.mxu3  ;;  %v1250_v19 = vsel %vm1246_vm2, %v1241_v21, %v1242_v14  ;;  %v831_v52 = vsel %vm827_vm1, %v822_v3, %v823_v48  ;;  %v3911_v21 = vld [vmem:[#allocation8 + $0x88] sm:$0xff]  ;;  %v1178_v54 = vunpack.c.l.b16 %v1114_v42 }
 0x1ce   : > { %6118 = vst [vmem:[#allocation71_spill] sm:$0xff] %v5083_v35  ;;  %v736_v30 = vpop.f32.mrf.mxu0  ;;  %v1306_v18 = vpack.c.bf16 %v1250_v19, %v1250_v19  ;;  %v1049_v27 = vunpack.c.l.b16 %v985_v23  ;;  %v888_v39 = vpack.c.bf16 %v831_v52, %v831_v52  ;;  %v3947_v35 = vld [vmem:[#allocation8 + $0x1a8] sm:$0xff]  ;;  %2341 = vmatpush.bf16.msrb.mxu2 %v3911_v21  ;;  %v1467_v36 = vunpack.c.l.b16 %v1403_v63 }
 0x1cf   : > { %v737_v25 = vadd.f32 %v4980_v8, %v736_v30  ;;  %2619 = vmatpush.bf16.msrb.mxu3 %v3947_v35  ;;  %2246 = vmatpush.bf16.msrb.mxu1 %v3909_v29 }
 0x1d0   : > { %v1338_v49 = vunpack.c.l.bf16 %v1306_v18  ;;  %v5091_v26 = vpack.c.b16 %v1049_v27, %v1048_v47  ;;  %v920_v43 = vunpack.c.l.bf16 %v888_v39  ;;  %v3946_v47 = vld [vmem:[#allocation8 + $0x1a0] sm:$0xff] }
 0x1d1   : > { %v773_v32 = vmax.f32 %v737_v25, 0.0 }
 0x1d2   : > { %6119 = vst [vmem:[#allocation72_spill] sm:$0xff] %v5091_v26  ;;  %v1372_v3 = vmul.f32 %v4711_v55, %v1338_v49  ;;  %2342 = vmatpush.bf16.msrb.mxu2 %v3910_v6  ;;  %v954_v42 = vmul.f32 %v4653_v50, %v920_v43  ;;  %v3943_v26 = vld [vmem:[#allocation8 + $0x188] sm:$0xff] }
 0x1d3   : > { %v824_v57 = vrot.slane %v773_v32, 7  ;;  %v1243_v23 = vrot.slane %v773_v32, 1  ;;  %v1115_v19 = vpack.c.bf16 %v773_v32, %v773_v32  ;;  %2620 = vmatpush.bf16.msrb.mxu3 %v3946_v47 }
 0x1d4   : > { %v5094_v52 = vpop.f32.mrf.mxu2  ;;  %v1404_v28 = vpack.c.bf16 %v1372_v3, %v1372_v3  ;;  %v986_v6 = vpack.c.bf16 %v954_v42, %v954_v42 }
 0x1d5   : > { %6120 = vst [vmem:[#allocation73_spill] sm:$0xff] %v5094_v52  ;;  %v5096_v30 = vpop.f32.mrf.mxu3  ;;  %v1179_v18 = vunpack.c.l.b16 %v1115_v19  ;;  %v1249_v49 = vsel %vm1246_vm2, %v1242_v14, %v1243_v23  ;;  %v830_v27 = vsel %vm827_vm1, %v823_v48, %v824_v57  ;;  %v3945_v48 = vld [vmem:[#allocation8 + $0x198] sm:$0xff] }
 0x1d6   : > { %6121 = vst [vmem:[#allocation74_spill] sm:$0xff] %v5096_v30  ;;  %v739_v39 = vpop.f32.mrf.mxu0  ;;  %v1468_v25 = vunpack.c.l.b16 %v1404_v28  ;;  %v1307_v35 = vpack.c.bf16 %v1249_v49, %v1249_v49  ;;  %v889_v21 = vpack.c.bf16 %v830_v27, %v830_v27 }
 0x1d7   : > { %v740_v29 = vadd.f32 %v4980_v8, %v739_v39  ;;  %v5104_v32 = vpack.c.b16 %v1179_v18, %v1178_v54  ;;  %v861_v54 = vpack.c.bf16 %v4691_v22, %v4691_v22  ;;  %2621 = vmatpush.bf16.msrb.mxu3 %v3945_v48 }
 0x1d8   : > { %v5106_v63 = vpack.c.b16 %v1468_v25, %v1467_v36  ;;  %v1339_v3 = vunpack.c.l.bf16 %v1307_v35  ;;  %v921_v14 = vunpack.c.l.bf16 %v889_v21  ;;  %v3944_v25 = vld [vmem:[#allocation8 + $0x190] sm:$0xff] }
 0x1d9   : > { %6122 = vst [vmem:[#allocation75_spill] sm:$0xff] %v5104_v32  ;;  %v774_v19 = vmax.f32 %v740_v29, 0.0  ;;  %1913 = vmatmul.bf16.gmra.mxu2 %v5104_v32  ;;  %v1050_v29 = vunpack.c.l.b16 %v986_v6  ;;  %v893_v32 = vunpack.c.l.bf16 %v861_v54 }
 0x1da   : > { %6123 = vst [vmem:[#allocation76_spill] sm:$0xff] %v5106_v63  ;;  %1997 = vmatmul.bf16.gmra.mxu3 %v5106_v63  ;;  %v955_v28 = vmul.f32 %v4701_v34, %v921_v14  ;;  %v1373_v36 = vmul.f32 %v1339_v3, %v4701_v34 }
 0x1db   : > { %v825_v49 = vrot.slane %v774_v19, 7  ;;  %v1244_v43 = vrot.slane %v774_v19, 1  ;;  %v1116_v22 = vpack.c.bf16 %v774_v19, %v774_v19  ;;  %2622 = vmatpush.bf16.msrb.mxu3 %v3944_v25  ;;  %v927_v6 = vmul.f32 %v4701_v34, %v893_v32 }
 0x1dc   : > { %v5113_v18 = vpop.f32.mrf.mxu2  ;;  %v987_v47 = vpack.c.bf16 %v955_v28, %v955_v28  ;;  %v1405_v28 = vpack.c.bf16 %v1373_v36, %v1373_v36  ;;  %v6127_v32 = vrot.slane %v4670_v0, 1 }
 0x1dd   : > { %6124 = vst [vmem:[#allocation77_spill] sm:$0xff] %v5113_v18  ;;  %v5116_v27 = vpop.f32.mrf.mxu3  ;;  %v1248_v39 = vsel %vm1246_vm2, %v1243_v23, %v1244_v43  ;;  %v829_v35 = vsel %vm827_vm1, %v824_v57, %v825_v49  ;;  %v1180_v19 = vunpack.c.l.b16 %v1116_v22 }
 0x1de   : > { %6125 = vst [vmem:[#allocation78_spill] sm:$0xff] %v5116_v27  ;;  %v741_v21 = vpop.f32.mrf.mxu0  ;;  %v1308_v42 = vpack.c.bf16 %v1248_v39, %v1248_v39  ;;  %v1051_v14 = vunpack.c.l.b16 %v987_v47  ;;  %v890_v18 = vpack.c.bf16 %v829_v35, %v829_v35  ;;  %v1469_v54 = vunpack.c.l.b16 %v1405_v28 }
 0x1df   : > { %v742_v48 = vadd.f32 %v4980_v8, %v741_v21  ;;  %2623 = vmatpush.bf16.msrb.mxu3 %v3943_v26  ;;  %v6126_v35 = vrot.slane %v4670_v0, 7 }
 0x1e0   : > { %v1340_v3 = vunpack.c.l.bf16 %v1308_v42  ;;  %v5123_v63 = vpack.c.b16 %v1051_v14, %v1050_v29  ;;  %v922_v39 = vunpack.c.l.bf16 %v890_v18  ;;  %v3942_v29 = vld [vmem:[#allocation8 + $0x180] sm:$0xff] }
 0x1e1   : > { %v775_v52 = vmax.f32 %v742_v48, 0.0 }
 0x1e2   : > { %v1374_v23 = vmul.f32 %v4711_v55, %v1340_v3 }
 0x1e3   : > { %v826_v27 = vrot.slane %v775_v52, 7  ;;  %v1245_v57 = vrot.slane %v775_v52, 1  ;;  %v1117_v30 = vpack.c.bf16 %v775_v52, %v775_v52  ;;  %2624 = vmatpush.bf16.msrb.mxu3 %v3942_v29 }
 0x1e4   : > { %v5127_v47 = vpop.f32.mrf.mxu2  ;;  %v1406_v8 = vpack.c.bf16 %v1374_v23, %v1374_v23 }
 0x1e5   : > { %v5129_v36 = vpop.f32.mrf.mxu3  ;;  %v1181_v25 = vunpack.c.l.b16 %v1117_v30  ;;  %v859_v21 = vsel %vm827_vm1, %v826_v27, %v6126_v35  ;;  %v1247_v52 = vsel %vm1246_vm2, %v1244_v43, %v1245_v57  ;;  %v1278_v42 = vsel %vm1246_vm2, %v1245_v57, %v6127_v32 }
 0x1e6   : > { %v1470_v14 = vunpack.c.l.b16 %v1406_v8  ;;  %v860_v26 = vpack.c.bf16 %v859_v21, %v859_v21  ;;  %v1309_v18 = vpack.c.bf16 %v1247_v52, %v1247_v52  ;;  %v1310_v22 = vpack.c.bf16 %v1278_v42, %v1278_v42 }
 0x1e7   : > { %v5141_v48 = vpack.c.b16 %v1181_v25, %v1180_v19  ;;  %v828_v30 = vsel %vm827_vm1, %v825_v49, %v826_v27  ;;  %v956_v57 = vmul.f32 %v4653_v50, %v922_v39  ;;  %v959_v19 = vpack.c.bf16 %v927_v6, %v927_v6 }
 0x1e8   : > { %v5145_v3 = vpack.c.b16 %v1470_v14, %v1469_v54  ;;  %v892_v28 = vunpack.c.l.bf16 %v860_v26  ;;  %v1341_v23 = vunpack.c.l.bf16 %v1309_v18  ;;  %v1342_v43 = vunpack.c.l.bf16 %v1310_v22  ;;  %v3908_v18 = vld [vmem:[#allocation8 + $0x70] sm:$0xff] }
 0x1e9   : > { %6128 = vst [vmem:[#allocation79_spill] sm:$0xff] %v5141_v48  ;;  %1918 = vmatmul.bf16.gmra.mxu2 %v5141_v48  ;;  %v891_v0 = vpack.c.bf16 %v828_v30, %v828_v30  ;;  %v988_v21 = vpack.c.bf16 %v956_v57, %v956_v57  ;;  %v1023_v39 = vunpack.c.l.b16 %v959_v19  ;;  %2247 = vmatpush.bf16.msrb.mxu1 %v3908_v18 }
 0x1ea   : > { %6129 = vst [vmem:[#allocation80_spill] sm:$0xff] %v5145_v3  ;;  %2002 = vmatmul.bf16.gmra.mxu3 %v5145_v3  ;;  %v926_v8 = vmul.f32 %v4653_v50, %v892_v28  ;;  %v1375_v44 = vmul.f32 %v1341_v23, %v4701_v34  ;;  %v1376_v49 = vmul.f32 %v4711_v55, %v1342_v43  ;;  %v6131_v43 = vmov 0  }
 0x1eb   : > { %v923_v25 = vunpack.c.l.bf16 %v891_v0  ;;  %v1052_v6 = vunpack.c.l.b16 %v988_v21 }
 0x1ec   : > { %v958_v35 = vpack.c.bf16 %v926_v8, %v926_v8  ;;  %v5156_v52 = vpop.f32.mrf.mxu2  ;;  %v1407_v14 = vpack.c.bf16 %v1375_v44, %v1375_v44  ;;  %v1408_v50 = vpack.c.bf16 %v1376_v49, %v1376_v49 }
 0x1ed   : > { %v5153_v27 = vpop.f32.mrf.mxu3  ;;  %v957_v54 = vmul.f32 %v4701_v34, %v923_v25  ;;  %v3907_v25 = vld [vmem:[#allocation8 + $0x68] sm:$0xff] }
 0x1ee   : > { %v1022_v32 = vunpack.c.l.b16 %v958_v35  ;;  %v1471_v55 = vunpack.c.l.b16 %v1407_v14  ;;  %v1472_v30 = vunpack.c.l.b16 %v1408_v50  ;;  %2248 = vmatpush.bf16.msrb.mxu1 %v3907_v25 }
 0x1ef   : > { %v989_v42 = vpack.c.bf16 %v957_v54, %v957_v54 }
 0x1f0   : > { %v1054_v29 = vpack.c.b16 %v1023_v39, %v1022_v32  ;;  %v5164_v23 = vpack.c.b16 %v1472_v30, %v1471_v55 }
 0x1f1   : > { %v1053_v26 = vunpack.c.l.b16 %v989_v42 }
 0x1f2   : > { %1754 = vmatmul.bf16.vlgmr.msra.gmra.mxu1 %v1054_v29  ;;  %2170 = vmatmul.bf16.gmra.mxu0 %v1054_v29  ;;  %6130 = vst [vmem:[#allocation81_spill] sm:$0xff] %v5164_v23 }
 0x1f3   : > { %v5158_v22 = vpack.c.b16 %v1053_v26, %v1052_v6 }
 0x1f4   : > { %v5162_v28 = vpop.f32.mrf.mxu2 }
 0x1f5   : > { %v5160_v34 = vpop.f32.mrf.mxu3 }
 0x1f9   : > { %2343 = vmatmul.bf16.vlgmr.msrb.gmra.mxu2 %v6131_v43 }
 0x1fa   : > { %2007 = vmatmul.bf16.gmra.mxu3 %v5164_v23 }
 0x1fc   : > { %v5170_v57 = vpop.f32.mrf.mxu2 }
 0x1fd   : > { %v5168_v0 = vpop.f32.mrf.mxu3 }
 0x202   : > { %1759 = vmatmul.bf16.gmra.mxu1 %v4742_v12  ;;  %2175 = vmatmul.bf16.gmra.mxu0 %v4742_v12 }
 0x204   : > { %v5178_v19 = vpop.f32.mrf.mxu2 }
 0x205   : > { %v5175_v8 = vpop.f32.mrf.mxu3 }
 0x209   : > { %2348 = vmatmul.bf16.gmra.mxu2 %v4727_v31 }
 0x20a   : > { %2625 = vmatmul.bf16.vlgmr.msrb.gmra.mxu3 %v4742_v12 }
 0x20c   : > { %v5184_v44 = vpop.f32.mrf.mxu2 }
 0x20d   : > { %v5182_v35 = vpop.f32.mrf.mxu3 }
 0x212   : > { %1764 = vmatmul.bf16.gmra.mxu1 %v4773_v33  ;;  %2180 = vmatmul.bf16.gmra.mxu0 %v4773_v33 }
 0x214   : > { %v5190_v49 = vpop.f32.mrf.mxu2 }
 0x215   : > { %v5188_v31 = vpop.f32.mrf.mxu3 }
 0x219   : > { %2353 = vmatmul.bf16.gmra.mxu2 %v4758_v53 }
 0x21a   : > { %2630 = vmatmul.bf16.gmra.mxu3 %v4773_v33  ;;  %v3906_v33 = vld [vmem:[#allocation8 + $0x60] sm:$0xff] }
 0x21b   : > { %2249 = vmatpush.bf16.msrb.mxu1 %v3906_v33 }
 0x21c   : > { %v5197_v54 = vpop.f32.mrf.mxu2 }
 0x21d   : > { %v5194_v12 = vpop.f32.mrf.mxu3 }
 0x222   : > { %1769 = vmatmul.bf16.gmra.mxu1 %v4804_v5  ;;  %2185 = vmatmul.bf16.gmra.mxu0 %v4804_v5 }
 0x224   : > { %v5204_v32 = vpop.f32.mrf.mxu2 }
 0x225   : > { %v5200_v21 = vpop.f32.mrf.mxu3 }
 0x229   : > { %2358 = vmatmul.bf16.gmra.mxu2 %v4789_v2 }
 0x22a   : > { %2635 = vmatmul.bf16.gmra.mxu3 %v4804_v5 }
 0x22c   : > { %v5210_v42 = vpop.f32.mrf.mxu2 }
 0x22d   : > { %v5208_v39 = vpop.f32.mrf.mxu3 }
 0x232   : > { %1774 = vmatmul.bf16.gmra.mxu1 %v4835_v41  ;;  %2190 = vmatmul.bf16.gmra.mxu0 %v4835_v41 }
 0x234   : > { %v5216_v29 = vpop.f32.mrf.mxu2 }
 0x235   : > { %v5214_v5 = vpop.f32.mrf.mxu3 }
 0x239   : > { %2363 = vmatmul.bf16.gmra.mxu2 %v4820_v58 }
 0x23a   : > { %2640 = vmatmul.bf16.gmra.mxu3 %v4835_v41  ;;  %v3905_v41 = vld [vmem:[#allocation8 + $0x58] sm:$0xff] }
 0x23b   : > { %2250 = vmatpush.bf16.msrb.mxu1 %v3905_v41  ;;  %v2166_v26 = vpop.f32.mrf.mxu0 }
 0x23c   : > { %v5222_v50 = vpop.f32.mrf.mxu2 }
 0x23d   : > { %v5220_v14 = vpop.f32.mrf.mxu3 }
 0x242   : > { %1779 = vmatmul.bf16.gmra.mxu1 %v4866_v59  ;;  %2195 = vmatmul.bf16.gmra.mxu0 %v4866_v59 }
 0x243   : > { %v2168_v55 = vpop.f32.mrf.mxu0 }
 0x244   : > { %v5230_v18 = vpop.f32.mrf.mxu2 }
 0x245   : > { %v5227_v6 = vpop.f32.mrf.mxu3 }
 0x249   : > { %2368 = vmatmul.bf16.gmra.mxu2 %v4851_v13  ;;  %v3904_v13 = vld [vmem:[#allocation8 + $0x50] sm:$0xff] }
 0x24a   : > { %2645 = vmatmul.bf16.gmra.mxu3 %v4866_v59  ;;  %2251 = vmatpush.bf16.msrb.mxu1 %v3904_v13 }
 0x24c   : > { %v5236_v30 = vpop.f32.mrf.mxu2 }
 0x24d   : > { %v5234_v59 = vpop.f32.mrf.mxu3 }
 0x252   : > { %1784 = vmatmul.bf16.gmra.mxu1 %v4891_v38  ;;  %2200 = vmatmul.bf16.gmra.mxu0 %v4891_v38 }
 0x254   : > { %v5242_v41 = vpop.f32.mrf.mxu2 }
 0x255   : > { %v5240_v25 = vpop.f32.mrf.mxu3 }
 0x259   : > { %2373 = vmatmul.bf16.gmra.mxu2 %v4879_v46 }
 0x25a   : > { %2650 = vmatmul.bf16.gmra.mxu3 %v4891_v38 }
 0x25c   : > { %v5254_v48 = vpop.f32.mrf.mxu2 }
 0x25d   : > { %v5250_v2 = vpop.f32.mrf.mxu3 }
 0x262   : > { %1789 = vmatmul.bf16.gmra.mxu1 %v4913_v24  ;;  %2205 = vmatmul.bf16.gmra.mxu0 %v4913_v24 }
 0x269   : > { %2378 = vmatmul.bf16.gmra.mxu2 %v4902_v37 }
 0x26a   : > { %2655 = vmatmul.bf16.gmra.mxu3 %v4913_v24 }
 0x26f   : > { %v1755_v33 = vpop.f32.mrf.mxu1  ;;  %v2171_v38 = vpop.f32.mrf.mxu0 }
 0x270   : > { %v1845_v23 = vadd.f32 %v4929_v4, %v1755_v33 }
 0x272   : > { %v1934_v46 = vadd.f32 %v4957_v61, %v1845_v23  ;;  %1794 = vmatmul.bf16.gmra.mxu1 %v4937_v56  ;;  %2210 = vmatmul.bf16.gmra.mxu0 %v4937_v56 }
 0x274   : > { %v5248_v58 = vadd.f32 %v2166_v26, %v1934_v46  ;;  %v5261_v26 = vpop.f32.mrf.mxu3 }
 0x277   : > { %v1757_v37 = vpop.f32.mrf.mxu1  ;;  %v2173_v24 = vpop.f32.mrf.mxu0 }
 0x278   : > { %v1847_v53 = vadd.f32 %v4940_v9, %v1757_v37  ;;  %v5266_v37 = vpop.f32.mrf.mxu2 }
 0x279   : > { %2383 = vmatmul.bf16.gmra.mxu2 %v4924_v62 }
 0x27a   : > { %v1936_v4 = vadd.f32 %v4970_v15, %v1847_v53  ;;  %2660 = vmatmul.bf16.gmra.mxu3 %v4937_v56 }
 0x27c   : > { %v5258_v61 = vadd.f32 %v2168_v55, %v1936_v4  ;;  %v5274_v55 = vpop.f32.mrf.mxu3 }
 0x27e   : > { %6132 = vst [vmem:[#allocation82_spill] sm:$0xff] %v5258_v61  ;;  %v3951_v61 = vld [vmem:[#allocation8 + $0x1c8] sm:$0xff] }
 0x27f   : > { %v1760_v23 = vpop.f32.mrf.mxu1  ;;  %v2176_v13 = vpop.f32.mrf.mxu0 }
 0x280   : > { %v1850_v46 = vadd.f32 %v4955_v17, %v1760_v23  ;;  %v5278_v4 = vpop.f32.mrf.mxu2 }
 0x282   : > { %v1939_v33 = vadd.f32 %v4992_v40, %v1850_v46  ;;  %1799 = vmatmul.bf16.gmra.mxu1 %v4965_v7  ;;  %2215 = vmatmul.bf16.gmra.mxu0 %v4965_v7 }
 0x284   : > { %v5268_v9 = vadd.f32 %v2171_v38, %v1939_v33 }
 0x286   : > { %6133 = vst [vmem:[#allocation83_spill] sm:$0xff] %v5268_v9  ;;  %v6141_v9 = vld [vmem:[#allocation58_spill] sm:$0xff] }
 0x287   : > { %v1762_v53 = vpop.f32.mrf.mxu1  ;;  %v2178_v56 = vpop.f32.mrf.mxu0 }
 0x288   : > { %v1852_v15 = vadd.f32 %v4968_v16, %v1762_v53  ;;  %v3903_v16 = vld [vmem:[#allocation8 + $0x48] sm:$0xff] }
 0x289   : > { %2388 = vmatmul.bf16.gmra.mxu2 %v4950_v60  ;;  %2252 = vmatpush.bf16.msrb.mxu1 %v3903_v16 }
 0x28a   : > { %v1941_v17 = vadd.f32 %v5005_v51, %v1852_v15  ;;  %2665 = vmatmul.bf16.gmra.mxu3 %v4965_v7  ;;  %v5286_v7 = vpop.f32.mrf.mxu3  ;;  %v5288_v15 = vpop.f32.mrf.mxu2 }
 0x28c   : > { %v5276_v40 = vadd.f32 %v2173_v24, %v1941_v17 }
 0x28e   : > { %6134 = vst [vmem:[#allocation84_spill] sm:$0xff] %v5276_v40 }
 0x28f   : > { %v1765_v23 = vpop.f32.mrf.mxu1  ;;  %v2181_v46 = vpop.f32.mrf.mxu0 }
 0x290   : > { %v1855_v38 = vadd.f32 %v4990_v20, %v1765_v23  ;;  %v6136_v20 = vld [vmem:[#allocation60_spill] sm:$0xff] }
 0x292   : > { %v1944_v33 = vadd.f32 %v5022_v11, %v1855_v38  ;;  %1804 = vmatmul.bf16.gmra.mxu1 %v5000_v45  ;;  %2220 = vmatmul.bf16.gmra.mxu0 %v5000_v45  ;;  %v5299_v62 = vpop.f32.mrf.mxu2 }
 0x294   : > { %v5284_v51 = vadd.f32 %v2176_v13, %v1944_v33  ;;  %v5296_v13 = vpop.f32.mrf.mxu3  ;;  %v6138_v33 = vld [vmem:[#allocation57_spill] sm:$0xff] }
 0x295   : > { %6139 = vst [vmem:[#allocation57_spill] sm:$0xff] %v5299_v62 }
 0x296   : > { %6135 = vst [vmem:[#allocation85_spill] sm:$0xff] %v5284_v51  ;;  %v6140_v51 = vld [vmem:[#allocation64_spill] sm:$0xff] }
 0x297   : > { %v1767_v24 = vpop.f32.mrf.mxu1  ;;  %v2183_v53 = vpop.f32.mrf.mxu0 }
 0x298   : > { %v1857_v17 = vadd.f32 %v5003_v10, %v1767_v24  ;;  %v3957_v10 = vld [vmem:[#allocation8 + $0x1f8] sm:$0xff] }
 0x299   : > { %2393 = vmatmul.bf16.gmra.mxu2 %v4985_v1  ;;  %2706 = vmatpush.bf16.msra.mxu0 %v3957_v10  ;;  %v6144_v1 = vld [vmem:[#allocation56_spill] sm:$0xff] }
 0x29a   : > { %v1946_v11 = vadd.f32 %v6136_v20, %v1857_v17  ;;  %2670 = vmatmul.bf16.gmra.mxu3 %v5000_v45  ;;  %v3956_v45 = vld [vmem:[#allocation8 + $0x1f0] sm:$0xff]  ;;  %v6143_v20 = vld [vmem:[#allocation59_spill] sm:$0xff]  ;;  %v5312_v62 = vpop.f32.mrf.mxu2 }
 0x29b   : > { %6146 = vst [vmem:[#allocation58_spill] sm:$0xff] %v5312_v62 }
 0x29c   : > { %v5294_v23 = vadd.f32 %v2178_v56, %v1946_v11 }
 0x29d   : > { %2707 = vmatpush.bf16.msra.mxu0 %v3956_v45  ;;  %v6149_v45 = vld [vmem:[#allocation71_spill] sm:$0xff] }
 0x29e   : > { %6137 = vst [vmem:[#allocation60_spill] sm:$0xff] %v5294_v23  ;;  %v6148_v23 = vld [vmem:[#allocation63_spill] sm:$0xff] }
 0x29f   : > { %v1770_v38 = vpop.f32.mrf.mxu1  ;;  %v2186_v16 = vpop.f32.mrf.mxu0 }
 0x2a0   : > { %v1860_v60 = vadd.f32 %v6138_v33, %v1770_v38  ;;  %v5308_v38 = vpop.f32.mrf.mxu3  ;;  %v6145_v33 = vld [vmem:[#allocation67_spill] sm:$0xff] }
 0x2a2   : > { %v1949_v40 = vadd.f32 %v6140_v51, %v1860_v60  ;;  %1809 = vmatmul.bf16.gmra.mxu1 %v6141_v9  ;;  %2225 = vmatmul.bf16.gmra.mxu0 %v6141_v9  ;;  %v3955_v51 = vld [vmem:[#allocation8 + $0x1e8] sm:$0xff] }
 0x2a3   : > { %2708 = vmatpush.bf16.msra.mxu0 %v3955_v51  ;;  %v3952_v51 = vld [vmem:[#allocation8 + $0x1d0] sm:$0xff] }
 0x2a4   : > { %v5304_v24 = vadd.f32 %v2181_v46, %v1949_v40  ;;  %v3954_v46 = vld [vmem:[#allocation8 + $0x1e0] sm:$0xff] }
 0x2a6   : > { %6142 = vst [vmem:[#allocation64_spill] sm:$0xff] %v5304_v24 }
 0x2a7   : > { %v1772_v56 = vpop.f32.mrf.mxu1  ;;  %v2188_v17 = vpop.f32.mrf.mxu0  ;;  %2709 = vmatpush.bf16.msra.mxu0 %v3954_v46  ;;  %v6154_v46 = vld [vmem:[#allocation66_spill] sm:$0xff] }
 0x2a8   : > { %v1862_v11 = vadd.f32 %v6143_v20, %v1772_v56 }
 0x2a9   : > { %2398 = vmatmul.bf16.gmra.mxu2 %v6144_v1  ;;  %v6150_v1 = vld [vmem:[#allocation65_spill] sm:$0xff] }
 0x2aa   : > { %v1951_v60 = vadd.f32 %v6145_v33, %v1862_v11  ;;  %2675 = vmatmul.bf16.gmra.mxu3 %v6141_v9  ;;  %v3902_v11 = vld [vmem:[#allocation8 + $0x40] sm:$0xff]  ;;  %v3953_v9 = vld [vmem:[#allocation8 + $0x1d8] sm:$0xff]  ;;  %v5320_v33 = vpop.f32.mrf.mxu3 }
 0x2ab   : > { %6151 = vst [vmem:[#allocation67_spill] sm:$0xff] %v5320_v33  ;;  %2253 = vmatpush.bf16.msrb.mxu1 %v3902_v11  ;;  %2710 = vmatpush.bf16.msra.mxu0 %v3953_v9 }
 0x2ac   : > { %v5314_v40 = vadd.f32 %v2183_v53, %v1951_v60  ;;  %v5324_v60 = vpop.f32.mrf.mxu2 }
 0x2ad   : > { %6153 = vst [vmem:[#allocation71_spill] sm:$0xff] %v5324_v60 }
 0x2ae   : > { %6147 = vst [vmem:[#allocation59_spill] sm:$0xff] %v5314_v40 }
 0x2af   : > { %v1775_v10 = vpop.f32.mrf.mxu1  ;;  %v2191_v24 = vpop.f32.mrf.mxu0  ;;  %2711 = vmatpush.bf16.msra.mxu0 %v3952_v51  ;;  %v6160_v51 = vld [vmem:[#allocation78_spill] sm:$0xff] }
 0x2b0   : > { %v1865_v56 = vadd.f32 %v6148_v23, %v1775_v10 }
 0x2b2   : > { %v1954_v20 = vadd.f32 %v6149_v45, %v1865_v56  ;;  %1814 = vmatmul.bf16.gmra.mxu1 %v6150_v1  ;;  %2230 = vmatmul.bf16.gmra.mxu0 %v6150_v1  ;;  %v6155_v56 = vld [vmem:[#allocation62_spill] sm:$0xff] }
 0x2b3   : > { %v6156_v45 = vld [vmem:[#allocation74_spill] sm:$0xff]  ;;  %2712 = vmatpush.bf16.msra.mxu0 %v3951_v61 }
 0x2b4   : > { %v5322_v53 = vadd.f32 %v2186_v16, %v1954_v20  ;;  %v5332_v16 = vpop.f32.mrf.mxu3  ;;  %v3950_v20 = vld [vmem:[#allocation8 + $0x1c0] sm:$0xff]  ;;  %v5334_v33 = vpop.f32.mrf.mxu2 }
 0x2b5   : > { %6157 = vst [vmem:[#allocation65_spill] sm:$0xff] %v5332_v16  ;;  %v6164_v16 = vld [vmem:[#allocation69_spill] sm:$0xff] }
 0x2b6   : > { %6152 = vst [vmem:[#allocation63_spill] sm:$0xff] %v5322_v53  ;;  %v6159_v53 = vld [vmem:[#allocation70_spill] sm:$0xff] }
 0x2b7   : > { %v1777_v62 = vpop.f32.mrf.mxu1  ;;  %v2193_v23 = vpop.f32.mrf.mxu0  ;;  %6158 = vst [vmem:[#allocation66_spill] sm:$0xff] %v5334_v33  ;;  %2713 = vmatpush.bf16.msra.mxu0 %v3950_v20 }
 0x2b8   : > { %v1867_v10 = vadd.f32 %v6154_v46, %v1777_v62 }
 0x2b9   : > { %2403 = vmatmul.bf16.gmra.mxu2 %v6155_v56  ;;  %v6161_v56 = vld [vmem:[#allocation72_spill] sm:$0xff] }
 0x2ba   : > { %v1956_v40 = vadd.f32 %v6156_v45, %v1867_v10  ;;  %2680 = vmatmul.bf16.gmra.mxu3 %v6150_v1  ;;  %v6163_v10 = vld [vmem:[#allocation73_spill] sm:$0xff] }
 0x2bc   : > { %v5330_v11 = vadd.f32 %v2188_v17, %v1956_v40  ;;  %v5342_v40 = vpop.f32.mrf.mxu3  ;;  %v5346_v33 = vpop.f32.mrf.mxu2 }
 0x2bd   : > { %6162 = vst [vmem:[#allocation74_spill] sm:$0xff] %v5342_v40 }
 0x2bf   : > { %v1780_v9 = vpop.f32.mrf.mxu1  ;;  %v2196_v60 = vpop.f32.mrf.mxu0 }
 0x2c0   : > { %v1870_v62 = vadd.f32 %v6159_v53, %v1780_v9 }
 0x2c2   : > { %v1959_v46 = vadd.f32 %v6160_v51, %v1870_v62  ;;  %1819 = vmatmul.bf16.gmra.mxu1 %v6161_v56  ;;  %2235 = vmatmul.bf16.gmra.mxu0 %v6161_v56 }
 0x2c4   : > { %v5340_v1 = vadd.f32 %v2191_v24, %v1959_v46  ;;  %v6165_v24 = vld [vmem:[#allocation77_spill] sm:$0xff]  ;;  %v5353_v46 = vpop.f32.mrf.mxu3 }
 0x2c7   : > { %v1782_v61 = vpop.f32.mrf.mxu1  ;;  %v2198_v17 = vpop.f32.mrf.mxu0 }
 0x2c8   : > { %v1872_v45 = vadd.f32 %v6163_v10, %v1782_v61  ;;  %v3965_v61 = vld [vmem:[#allocation8 + $0x238] sm:$0xff]  ;;  %v5358_v10 = vpop.f32.mrf.mxu2 }
 0x2c9   : > { %2408 = vmatmul.bf16.gmra.mxu2 %v6164_v16  ;;  %2795 = vmatpush.bf16.msra.mxu1 %v3965_v61 }
 0x2ca   : > { %v1961_v53 = vadd.f32 %v5129_v36, %v1872_v45  ;;  %2685 = vmatmul.bf16.gmra.mxu3 %v6161_v56 }
 0x2cc   : > { %v5350_v20 = vadd.f32 %v2193_v23, %v1961_v53  ;;  %v6166_v53 = vld [vmem:[#allocation76_spill] sm:$0xff] }
 0x2cf   : > { %v1785_v9 = vpop.f32.mrf.mxu1  ;;  %v2201_v62 = vpop.f32.mrf.mxu0 }
 0x2d0   : > { %v1875_v51 = vadd.f32 %v6165_v24, %v1785_v9 }
 0x2d2   : > { %v1964_v40 = vadd.f32 %v5153_v27, %v1875_v51  ;;  %1824 = vmatmul.bf16.gmra.mxu1 %v5123_v63  ;;  %2240 = vmatmul.bf16.gmra.mxu0 %v5123_v63  ;;  %v5366_v27 = vpop.f32.mrf.mxu3  ;;  %v5370_v51 = vpop.f32.mrf.mxu2 }
 0x2d4   : > { %v5360_v36 = vadd.f32 %v2196_v60, %v1964_v40 }
 0x2d7   : > { %v1787_v23 = vpop.f32.mrf.mxu1  ;;  %v2203_v56 = vpop.f32.mrf.mxu0 }
 0x2d8   : > { %v1877_v45 = vadd.f32 %v5127_v47, %v1787_v23  ;;  %v6167_v47 = vld [vmem:[#allocation31_spill] sm:$0xff] }
 0x2d9   : > { %2413 = vmatmul.bf16.gmra.mxu2 %v6166_v53 }
 0x2da   : > { %v1966_v9 = vadd.f32 %v5160_v34, %v1877_v45  ;;  %2690 = vmatmul.bf16.gmra.mxu3 %v5123_v63  ;;  %v5378_v34 = vpop.f32.mrf.mxu3 }
 0x2dc   : > { %v5368_v24 = vadd.f32 %v2198_v17, %v1966_v9  ;;  %v5381_v9 = vpop.f32.mrf.mxu2 }
 0x2dd   : > { %6168 = vst [vmem:[#allocation70_spill] sm:$0xff] %v5381_v9 }
 0x2df   : > { %v1790_v16 = vpop.f32.mrf.mxu1  ;;  %v2206_v61 = vpop.f32.mrf.mxu0 }
 0x2e0   : > { %v1880_v60 = vadd.f32 %v5156_v52, %v1790_v16 }
 0x2e2   : > { %v1969_v40 = vadd.f32 %v5168_v0, %v1880_v60  ;;  %1829 = vmatmul.bf16.gmra.mxu1 %v5158_v22  ;;  %2714 = vmatmul.bf16.vlgmr.msra.gmra.mxu0 %v6167_v47 }
 0x2e4   : > { %v5376_v23 = vadd.f32 %v2201_v62, %v1969_v40  ;;  %v5388_v62 = vpop.f32.mrf.mxu3 }
 0x2e7   : > { %v1792_v63 = vpop.f32.mrf.mxu1  ;;  %v2208_v45 = vpop.f32.mrf.mxu0 }
 0x2e8   : > { %v1882_v17 = vadd.f32 %v5162_v28, %v1792_v63  ;;  %v6169_v28 = vld [vmem:[#allocation33_spill] sm:$0xff] }
 0x2e9   : > { %2418 = vmatmul.bf16.gmra.mxu2 %v5145_v3  ;;  %v3964_v63 = vld [vmem:[#allocation8 + $0x230] sm:$0xff] }
 0x2ea   : > { %v1971_v52 = vadd.f32 %v5175_v8, %v1882_v17  ;;  %2695 = vmatmul.bf16.gmra.mxu3 %v5158_v22  ;;  %2796 = vmatpush.bf16.msra.mxu1 %v3964_v63 }
 0x2ec   : > { %v5386_v0 = vadd.f32 %v2203_v56, %v1971_v52  ;;  %v5397_v17 = vpop.f32.mrf.mxu3 }
 0x2ed   : > { %6170 = vst [vmem:[#allocation78_spill] sm:$0xff] %v5397_v17 }
 0x2ef   : > { %v1795_v16 = vpop.f32.mrf.mxu1  ;;  %v2211_v60 = vpop.f32.mrf.mxu0 }
 0x2f0   : > { %v1885_v40 = vadd.f32 %v5170_v57, %v1795_v16 }
 0x2f2   : > { %v1974_v53 = vadd.f32 %v5182_v35, %v1885_v40  ;;  %2254 = vmatmul.bf16.vlgmr.msrb.gmra.mxu1 %v6131_v43  ;;  %2719 = vmatmul.bf16.gmra.mxu0 %v6169_v28 }
 0x2f4   : > { %v5394_v3 = vadd.f32 %v2206_v61, %v1974_v53  ;;  %v6171_v53 = vld [vmem:[#allocation29_spill] sm:$0xff]  ;;  %v6172_v61 = vld [vmem:[#allocation36_spill] sm:$0xff] }
 0x2f7   : > { %v1797_v8 = vpop.f32.mrf.mxu1  ;;  %v2213_v22 = vpop.f32.mrf.mxu0 }
 0x2f8   : > { %v1887_v56 = vadd.f32 %v5178_v19, %v1797_v8 }
 0x2fa   : > { %v1976_v52 = vadd.f32 %v5188_v31, %v1887_v56  ;;  %2700 = vmatmul.bf16.gmra.mxu3 %v6131_v43 }
 0x2fc   : > { %v5401_v57 = vadd.f32 %v2208_v45, %v1976_v52 }
 0x2ff   : > { %v1800_v35 = vpop.f32.mrf.mxu1  ;;  %v2216_v16 = vpop.f32.mrf.mxu0 }
 0x300   : > { %v1890_v40 = vadd.f32 %v5184_v44, %v1800_v35  ;;  %v6173_v35 = vld [vmem:[#allocation39_spill] sm:$0xff] }
 0x302   : > { %v1979_v63 = vadd.f32 %v5194_v12, %v1890_v40  ;;  %2259 = vmatmul.bf16.gmra.mxu1 %v6171_v53  ;;  %2724 = vmatmul.bf16.gmra.mxu0 %v6172_v61 }
 0x304   : > { %v5407_v9 = vadd.f32 %v2211_v60, %v1979_v63  ;;  %v3963_v60 = vld [vmem:[#allocation8 + $0x228] sm:$0xff] }
 0x305   : > { %2797 = vmatpush.bf16.msra.mxu1 %v3963_v60 }
 0x307   : > { %v1802_v19 = vpop.f32.mrf.mxu1  ;;  %v2218_v8 = vpop.f32.mrf.mxu0 }
 0x308   : > { %v1892_v31 = vadd.f32 %v5190_v49, %v1802_v19 }
 0x30a   : > { %v1981_v56 = vadd.f32 %v5200_v21, %v1892_v31 }
 0x30c   : > { %v5411_v45 = vadd.f32 %v2213_v22, %v1981_v56 }
 0x30f   : > { %v1805_v52 = vpop.f32.mrf.mxu1  ;;  %v2221_v44 = vpop.f32.mrf.mxu0 }
 0x310   : > { %v1895_v17 = vadd.f32 %v5197_v54, %v1805_v52 }
 0x312   : > { %v1984_v12 = vadd.f32 %v5208_v39, %v1895_v17  ;;  %2264 = vmatmul.bf16.gmra.mxu1 %v6167_v47  ;;  %2729 = vmatmul.bf16.gmra.mxu0 %v6173_v35  ;;  %v6174_v47 = vld [vmem:[#allocation42_spill] sm:$0xff] }
 0x314   : > { %v5417_v40 = vadd.f32 %v2216_v16, %v1984_v12 }
 0x317   : > { %v1807_v63 = vpop.f32.mrf.mxu1  ;;  %v2223_v22 = vpop.f32.mrf.mxu0 }
 0x318   : > { %v1897_v49 = vadd.f32 %v5204_v32, %v1807_v63 }
 0x31a   : > { %v1986_v21 = vadd.f32 %v5214_v5, %v1897_v49 }
 0x31c   : > { %v5421_v53 = vadd.f32 %v2218_v8, %v1986_v21 }
 0x31f   : > { %v1810_v54 = vpop.f32.mrf.mxu1  ;;  %v2226_v16 = vpop.f32.mrf.mxu0 }
 0x320   : > { %v1900_v19 = vadd.f32 %v5210_v42, %v1810_v54 }
 0x322   : > { %v1989_v39 = vadd.f32 %v5220_v14, %v1900_v19  ;;  %2269 = vmatmul.bf16.gmra.mxu1 %v6169_v28  ;;  %2734 = vmatmul.bf16.gmra.mxu0 %v6174_v47  ;;  %v6175_v28 = vld [vmem:[#allocation45_spill] sm:$0xff] }
 0x324   : > { %v5427_v17 = vadd.f32 %v2221_v44, %v1989_v39  ;;  %v3962_v44 = vld [vmem:[#allocation8 + $0x220] sm:$0xff] }
 0x325   : > { %2798 = vmatpush.bf16.msra.mxu1 %v3962_v44  ;;  %v6178_v44 = vld [vmem:[#allocation51_spill] sm:$0xff] }
 0x327   : > { %v1812_v31 = vpop.f32.mrf.mxu1  ;;  %v2228_v8 = vpop.f32.mrf.mxu0 }
 0x328   : > { %v1902_v32 = vadd.f32 %v5216_v29, %v1812_v31 }
 0x32a   : > { %v1991_v5 = vadd.f32 %v5227_v6, %v1902_v32  ;;  %v3961_v32 = vld [vmem:[#allocation8 + $0x218] sm:$0xff] }
 0x32b   : > { %2799 = vmatpush.bf16.msra.mxu1 %v3961_v32 }
 0x32c   : > { %v5431_v56 = vadd.f32 %v2223_v22, %v1991_v5 }
 0x32f   : > { %v1815_v52 = vpop.f32.mrf.mxu1  ;;  %v2231_v6 = vpop.f32.mrf.mxu0 }
 0x330   : > { %v1905_v42 = vadd.f32 %v5222_v50, %v1815_v52 }
 0x332   : > { %v1994_v14 = vadd.f32 %v5234_v59, %v1905_v42  ;;  %2274 = vmatmul.bf16.gmra.mxu1 %v6172_v61  ;;  %2739 = vmatmul.bf16.gmra.mxu0 %v6175_v28  ;;  %v6176_v61 = vld [vmem:[#allocation47_spill] sm:$0xff] }
 0x334   : > { %v5437_v12 = vadd.f32 %v2226_v16, %v1994_v14 }
 0x337   : > { %v1817_v60 = vpop.f32.mrf.mxu1  ;;  %v2233_v22 = vpop.f32.mrf.mxu0 }
 0x338   : > { %v1907_v29 = vadd.f32 %v5230_v18, %v1817_v60  ;;  %v3981_v60 = vld [vmem:[#allocation11 + $0x38] sm:$0xff] }
 0x339   : > { %3080 = vmatpush.bf16.msra.mxu2 %v3981_v60 }
 0x33a   : > { %v1996_v63 = vadd.f32 %v5240_v25, %v1907_v29  ;;  %v3973_v29 = vld [vmem:[#allocation10 + $0x38] sm:$0xff] }
 0x33b   : > { %3217 = vmatpush.bf16.msra.mxu3 %v3973_v29 }
 0x33c   : > { %v5441_v49 = vadd.f32 %v2228_v8, %v1996_v63 }
 0x33f   : > { %v1820_v21 = vpop.f32.mrf.mxu1  ;;  %v2236_v16 = vpop.f32.mrf.mxu0 }
 0x340   : > { %v1910_v50 = vadd.f32 %v5236_v30, %v1820_v21 }
 0x342   : > { %v1999_v59 = vadd.f32 %v5250_v2, %v1910_v50  ;;  %2279 = vmatmul.bf16.gmra.mxu1 %v6173_v35  ;;  %2744 = vmatmul.bf16.gmra.mxu0 %v6176_v61  ;;  %v6177_v35 = vld [vmem:[#allocation49_spill] sm:$0xff] }
 0x344   : > { %v5447_v54 = vadd.f32 %v2231_v6, %v1999_v59  ;;  %v3960_v59 = vld [vmem:[#allocation8 + $0x210] sm:$0xff] }
 0x345   : > { %2800 = vmatpush.bf16.msra.mxu1 %v3960_v59  ;;  %v6189_v59 = vld [vmem:[#allocation59_spill] sm:$0xff] }
 0x347   : > { %v1822_v19 = vpop.f32.mrf.mxu1  ;;  %v2238_v8 = vpop.f32.mrf.mxu0 }
 0x348   : > { %v1912_v18 = vadd.f32 %v5242_v41, %v1822_v19  ;;  %v6180_v19 = vld [vmem:[#allocation82_spill] sm:$0xff] }
 0x34a   : > { %v2001_v39 = vadd.f32 %v5261_v26, %v1912_v18 }
 0x34c   : > { %v5451_v25 = vadd.f32 %v2233_v22, %v2001_v39  ;;  %v6181_v39 = vld [vmem:[#allocation83_spill] sm:$0xff] }
 0x34f   : > { %v1825_v31 = vpop.f32.mrf.mxu1 }
 0x350   : > { %v1915_v30 = vadd.f32 %v5254_v48, %v1825_v31  ;;  %v3972_v31 = vld [vmem:[#allocation10 + $0x30] sm:$0xff] }
 0x351   : > { %3218 = vmatpush.bf16.msra.mxu3 %v3972_v31  ;;  %v6191_v31 = vld [vmem:[#allocation75_spill] sm:$0xff] }
 0x352   : > { %v2004_v2 = vadd.f32 %v5274_v55, %v1915_v30  ;;  %2284 = vmatmul.bf16.gmra.mxu1 %v6174_v47  ;;  %2749 = vmatmul.bf16.gmra.mxu0 %v6177_v35  ;;  %v2241_v55 = vpop.f32.mrf.mxu0  ;;  %v6183_v30 = vld [vmem:[#allocation84_spill] sm:$0xff] }
 0x354   : > { %v5457_v5 = vadd.f32 %v2236_v16, %v2004_v2  ;;  %v6182_v16 = vld [vmem:[#allocation55_spill] sm:$0xff] }
 0x357   : > { %v1827_v41 = vpop.f32.mrf.mxu1 }
 0x358   : > { %v1917_v26 = vadd.f32 %v5266_v37, %v1827_v41  ;;  %v6184_v41 = vld [vmem:[#allocation85_spill] sm:$0xff] }
 0x35a   : > { %v2006_v52 = vadd.f32 %v5286_v7, %v1917_v26  ;;  %v2243_v21 = vpop.f32.mrf.mxu0 }
 0x35c   : > { %v5461_v42 = vadd.f32 %v2238_v8, %v2006_v52  ;;  %v6185_v52 = vld [vmem:[#allocation61_spill] sm:$0xff] }
 0x35f   : > { %v1830_v14 = vpop.f32.mrf.mxu1 }
 0x360   : > { %v1920_v48 = vadd.f32 %v5278_v4, %v1830_v14 }
 0x362   : > { %v2009_v47 = vadd.f32 %v5296_v13, %v1920_v48  ;;  %2289 = vmatmul.bf16.gmra.mxu1 %v6175_v28  ;;  %2754 = vmatmul.bf16.gmra.mxu0 %v6178_v44  ;;  %v6179_v28 = vld [vmem:[#allocation53_spill] sm:$0xff]  ;;  %v5489_v32 = vpop.f32.mrf.mxu0 }
 0x364   : > { %v5467_v6 = vadd.f32 %v2241_v55, %v2009_v47  ;;  %v6186_v55 = vld [vmem:[#allocation60_spill] sm:$0xff] }
 0x367   : > { %v1832_v37 = vpop.f32.mrf.mxu1 }
 0x368   : > { %v1922_v7 = vadd.f32 %v5288_v15, %v1832_v37  ;;  %v6187_v37 = vld [vmem:[#allocation64_spill] sm:$0xff] }
 0x36a   : > { %v2011_v63 = vadd.f32 %v5308_v38, %v1922_v7  ;;  %v5496_v14 = vpop.f32.mrf.mxu0 }
 0x36c   : > { %v5471_v4 = vadd.f32 %v2243_v21, %v2011_v63  ;;  %v6188_v63 = vld [vmem:[#allocation68_spill] sm:$0xff] }
 0x36d   : > { %v3971_v21 = vld [vmem:[#allocation10 + $0x28] sm:$0xff] }
 0x36e   : > { %3219 = vmatpush.bf16.msra.mxu3 %v3971_v21 }
 0x36f   : > { %v2255_v50 = vpop.f32.mrf.mxu1 }
 0x370   : > { %v5474_v13 = vadd.f32 %v2255_v50, %v5248_v58  ;;  %v3980_v58 = vld [vmem:[#allocation11 + $0x30] sm:$0xff] }
 0x371   : > { %3081 = vmatpush.bf16.msra.mxu2 %v3980_v58 }
 0x372   : > { %2294 = vmatmul.bf16.gmra.mxu1 %v6176_v61  ;;  %2759 = vmatmul.bf16.gmra.mxu0 %v6179_v28  ;;  %v5501_v29 = vpop.f32.mrf.mxu0 }
 0x377   : > { %v2257_v22 = vpop.f32.mrf.mxu1 }
 0x378   : > { %v5479_v18 = vadd.f32 %v2257_v22, %v6180_v19 }
 0x37a   : > { %v5511_v19 = vpop.f32.mrf.mxu0 }
 0x37f   : > { %v2260_v15 = vpop.f32.mrf.mxu1 }
 0x380   : > { %v5482_v38 = vadd.f32 %v2260_v15, %v6181_v39  ;;  %v6190_v39 = vld [vmem:[#allocation63_spill] sm:$0xff] }
 0x382   : > { %2299 = vmatmul.bf16.gmra.mxu1 %v6177_v35  ;;  %2764 = vmatmul.bf16.gmra.mxu0 %v6182_v16  ;;  %v3959_v35 = vld [vmem:[#allocation8 + $0x208] sm:$0xff] }
 0x383   : > { %2801 = vmatpush.bf16.msra.mxu1 %v3959_v35 }
 0x387   : > { %v2262_v61 = vpop.f32.mrf.mxu1 }
 0x388   : > { %v5487_v2 = vadd.f32 %v2262_v61, %v6183_v30  ;;  %v5518_v61 = vpop.f32.mrf.mxu0 }
 0x38f   : > { %v2265_v8 = vpop.f32.mrf.mxu1 }
 0x390   : > { %v5492_v26 = vadd.f32 %v2265_v8, %v6184_v41  ;;  %v5523_v41 = vpop.f32.mrf.mxu0 }
 0x392   : > { %2304 = vmatmul.bf16.gmra.mxu1 %v6178_v44  ;;  %2769 = vmatmul.bf16.gmra.mxu0 %v6185_v52  ;;  %v3979_v44 = vld [vmem:[#allocation11 + $0x28] sm:$0xff] }
 0x393   : > { %3082 = vmatpush.bf16.msra.mxu2 %v3979_v44 }
 0x397   : > { %v2267_v48 = vpop.f32.mrf.mxu1 }
 0x398   : > { %v5499_v47 = vadd.f32 %v2267_v48, %v6186_v55  ;;  %v6192_v55 = vld [vmem:[#allocation79_spill] sm:$0xff]  ;;  %v5530_v44 = vpop.f32.mrf.mxu0 }
 0x39f   : > { %v2270_v60 = vpop.f32.mrf.mxu1 }
 0x3a0   : > { %v5504_v7 = vadd.f32 %v2270_v60, %v6187_v37  ;;  %v3970_v60 = vld [vmem:[#allocation10 + $0x20] sm:$0xff] }
 0x3a1   : > { %3220 = vmatpush.bf16.msra.mxu3 %v3970_v60 }
 0x3a2   : > { %2309 = vmatmul.bf16.gmra.mxu1 %v6179_v28  ;;  %2774 = vmatmul.bf16.gmra.mxu0 %v6188_v63  ;;  %v3958_v28 = vld [vmem:[#allocation8 + $0x200] sm:$0xff] }
 0x3a3   : > { %2802 = vmatpush.bf16.msra.mxu1 %v3958_v28  ;;  %v3969_v28 = vld [vmem:[#allocation10 + $0x18] sm:$0xff] }
 0x3a5   : > { %3221 = vmatpush.bf16.msra.mxu3 %v3969_v28 }
 0x3a7   : > { %v2272_v50 = vpop.f32.mrf.mxu1 }
 0x3a8   : > { %v5509_v22 = vadd.f32 %v2272_v50, %v6189_v59 }
 0x3af   : > { %v2275_v15 = vpop.f32.mrf.mxu1 }
 0x3b0   : > { %v5514_v58 = vadd.f32 %v2275_v15, %v6190_v39 }
 0x3b2   : > { %2314 = vmatmul.bf16.gmra.mxu1 %v6182_v16  ;;  %2779 = vmatmul.bf16.gmra.mxu0 %v6191_v31  ;;  %v3978_v16 = vld [vmem:[#allocation11 + $0x20] sm:$0xff] }
 0x3b3   : > { %3083 = vmatpush.bf16.msra.mxu2 %v3978_v16 }
 0x3b7   : > { %v2277_v30 = vpop.f32.mrf.mxu1 }
 0x3b8   : > { %v5521_v8 = vadd.f32 %v2277_v30, %v5330_v11 }
 0x3bf   : > { %v2280_v35 = vpop.f32.mrf.mxu1 }
 0x3c0   : > { %v5526_v48 = vadd.f32 %v2280_v35, %v5340_v1  ;;  %v5538_v1 = vpop.f32.mrf.mxu0  ;;  %v5552_v35 = vpop.f32.mrf.mxu2 }
 0x3c2   : > { %2319 = vmatmul.bf16.gmra.mxu1 %v6185_v52  ;;  %2784 = vmatmul.bf16.gmra.mxu0 %v6192_v55  ;;  %v6194_v55 = vld [vmem:[#allocation34_spill] sm:$0xff] }
 0x3c7   : > { %v2282_v37 = vpop.f32.mrf.mxu1 }
 0x3c8   : > { %v5533_v11 = vadd.f32 %v2282_v37, %v5350_v20  ;;  %v3977_v20 = vld [vmem:[#allocation11 + $0x18] sm:$0xff] }
 0x3c9   : > { %3084 = vmatpush.bf16.msra.mxu2 %v3977_v20 }
 0x3cf   : > { %v2285_v21 = vpop.f32.mrf.mxu1 }
 0x3d0   : > { %v5536_v50 = vadd.f32 %v2285_v21, %v5360_v36  ;;  %v3976_v21 = vld [vmem:[#allocation11 + $0x10] sm:$0xff] }
 0x3d1   : > { %3085 = vmatpush.bf16.msra.mxu2 %v3976_v21 }
 0x3d2   : > { %2324 = vmatmul.bf16.gmra.mxu1 %v6188_v63  ;;  %2789 = vmatmul.bf16.gmra.mxu0 %v6131_v43 }
 0x3d7   : > { %v2287_v52 = vpop.f32.mrf.mxu1 }
 0x3d8   : > { %v5543_v59 = vadd.f32 %v2287_v52, %v5368_v24  ;;  %v3968_v52 = vld [vmem:[#allocation10 + $0x10] sm:$0xff] }
 0x3d9   : > { %3222 = vmatpush.bf16.msra.mxu3 %v3968_v52  ;;  %v6203_v52 = vld [vmem:[#allocation43_spill] sm:$0xff] }
 0x3df   : > { %v2290_v15 = vpop.f32.mrf.mxu1 }
 0x3e0   : > { %v5546_v39 = vadd.f32 %v2290_v15, %v5376_v23 }
 0x3e2   : > { %2329 = vmatmul.bf16.gmra.mxu1 %v6191_v31  ;;  %v5561_v31 = vpop.f32.mrf.mxu2 }
 0x3e7   : > { %v2292_v36 = vpop.f32.mrf.mxu1 }
 0x3e8   : > { %v5550_v30 = vadd.f32 %v2292_v36, %v5386_v0  ;;  %v6197_v0 = vld [vmem:[#allocation37_spill] sm:$0xff] }
 0x3ea   : > { %v5567_v15 = vpop.f32.mrf.mxu2 }
 0x3ef   : > { %v2295_v63 = vpop.f32.mrf.mxu1 }
 0x3f0   : > { %v5555_v24 = vadd.f32 %v2295_v63, %v5394_v3 }
 0x3f2   : > { %6193 = vst [vmem:[#allocation72_spill] sm:$0xff] %v5555_v24  ;;  %2803 = vmatmul.bf16.vlgmr.msra.gmra.mxu1 %v6194_v55  ;;  %v5682_v24 = vpop.f32.mrf.mxu0 }
 0x3f7   : > { %v2297_v23 = vpop.f32.mrf.mxu1 }
 0x3f8   : > { %v5559_v16 = vadd.f32 %v2297_v23, %v5401_v57  ;;  %v5572_v57 = vpop.f32.mrf.mxu2 }
 0x3fa   : > { %6195 = vst [vmem:[#allocation73_spill] sm:$0xff] %v5559_v16  ;;  %v6217_v16 = vld [vmem:[#allocation20_spill] sm:$0xff] }
 0x3ff   : > { %v2300_v60 = vpop.f32.mrf.mxu1 }
 0x400   : > { %v5564_v37 = vadd.f32 %v2300_v60, %v5407_v9  ;;  %v6200_v9 = vld [vmem:[#allocation40_spill] sm:$0xff]  ;;  %v5578_v55 = vpop.f32.mrf.mxu2  ;;  %v5583_v60 = vpop.f32.mrf.mxu3 }
 0x402   : > { %6196 = vst [vmem:[#allocation77_spill] sm:$0xff] %v5564_v37  ;;  %2808 = vmatmul.bf16.gmra.mxu1 %v6197_v0  ;;  %v6211_v37 = vld [vmem:[#allocation19_spill] sm:$0xff] }
 0x407   : > { %v2302_v3 = vpop.f32.mrf.mxu1 }
 0x408   : > { %v5570_v20 = vadd.f32 %v2302_v3, %v5411_v45  ;;  %v5588_v21 = vpop.f32.mrf.mxu2  ;;  %v3967_v3 = vld [vmem:[#allocation10 + $0x8] sm:$0xff] }
 0x409   : > { %3223 = vmatpush.bf16.msra.mxu3 %v3967_v3 }
 0x40a   : > { %6198 = vst [vmem:[#allocation31_spill] sm:$0xff] %v5570_v20 }
 0x40f   : > { %v2305_v28 = vpop.f32.mrf.mxu1 }
 0x410   : > { %v5575_v36 = vadd.f32 %v2305_v28, %v5417_v40  ;;  %v3975_v40 = vld [vmem:[#allocation11 + $0x8] sm:$0xff]  ;;  %v5591_v28 = vpop.f32.mrf.mxu3 }
 0x411   : > { %3086 = vmatpush.bf16.msra.mxu2 %v3975_v40 }
 0x412   : > { %6199 = vst [vmem:[#allocation33_spill] sm:$0xff] %v5575_v36  ;;  %2813 = vmatmul.bf16.gmra.mxu1 %v6200_v9 }
 0x417   : > { %v2307_v63 = vpop.f32.mrf.mxu1 }
 0x418   : > { %v5581_v23 = vadd.f32 %v2307_v63, %v5421_v53  ;;  %v5596_v63 = vpop.f32.mrf.mxu2 }
 0x41a   : > { %6201 = vst [vmem:[#allocation29_spill] sm:$0xff] %v5581_v23  ;;  %v5598_v23 = vpop.f32.mrf.mxu3 }
 0x41f   : > { %v2310_v0 = vpop.f32.mrf.mxu1 }
 0x420   : > { %v5586_v45 = vadd.f32 %v2310_v0, %v5427_v17 }
 0x422   : > { %6202 = vst [vmem:[#allocation36_spill] sm:$0xff] %v5586_v45  ;;  %2818 = vmatmul.bf16.gmra.mxu1 %v6203_v52  ;;  %v6206_v45 = vld [vmem:[#allocation46_spill] sm:$0xff]  ;;  %v5604_v52 = vpop.f32.mrf.mxu2  ;;  %v5606_v36 = vpop.f32.mrf.mxu3 }
 0x427   : > { %v2312_v9 = vpop.f32.mrf.mxu1 }
 0x428   : > { %v5594_v53 = vadd.f32 %v2312_v9, %v5431_v56 }
 0x42a   : > { %6204 = vst [vmem:[#allocation39_spill] sm:$0xff] %v5594_v53  ;;  %v5611_v9 = vpop.f32.mrf.mxu2  ;;  %v5616_v20 = vpop.f32.mrf.mxu3 }
 0x42b   : > { %6208 = vst [vmem:[#allocation47_spill] sm:$0xff] %v5611_v9  ;;  %v6228_v9 = vld [vmem:[#allocation54_spill] sm:$0xff] }
 0x42f   : > { %v2315_v17 = vpop.f32.mrf.mxu1 }
 0x430   : > { %v5601_v0 = vadd.f32 %v2315_v17, %v5437_v12  ;;  %v6210_v12 = vld [vmem:[#allocation48_spill] sm:$0xff]  ;;  %v3974_v17 = vld [vmem:[#allocation11] sm:$0xff] }
 0x431   : > { %3087 = vmatpush.bf16.msra.mxu2 %v3974_v17 }
 0x432   : > { %6205 = vst [vmem:[#allocation42_spill] sm:$0xff] %v5601_v0  ;;  %2823 = vmatmul.bf16.gmra.mxu1 %v6206_v45  ;;  %v3966_v45 = vld [vmem:[#allocation10] sm:$0xff] }
 0x433   : > { %3224 = vmatpush.bf16.msra.mxu3 %v3966_v45 }
 0x434   : > { %3088 = vmatmul.bf16.vlgmr.msra.gmra.mxu2 %v6211_v37 }
 0x437   : > { %v2317_v40 = vpop.f32.mrf.mxu1 }
 0x438   : > { %v5609_v3 = vadd.f32 %v2317_v40, %v5441_v49  ;;  %v5623_v40 = vpop.f32.mrf.mxu2 }
 0x439   : > { %6213 = vst [vmem:[#allocation53_spill] sm:$0xff] %v5623_v40  ;;  %v6226_v40 = vld [vmem:[#allocation57_spill] sm:$0xff] }
 0x43a   : > { %6207 = vst [vmem:[#allocation45_spill] sm:$0xff] %v5609_v3  ;;  %v5625_v3 = vpop.f32.mrf.mxu3 }
 0x43f   : > { %v2320_v56 = vpop.f32.mrf.mxu1 }
 0x440   : > { %v5614_v53 = vadd.f32 %v2320_v56, %v5447_v54 }
 0x442   : > { %6209 = vst [vmem:[#allocation49_spill] sm:$0xff] %v5614_v53  ;;  %2828 = vmatmul.bf16.gmra.mxu1 %v6210_v12  ;;  %v6215_v53 = vld [vmem:[#allocation50_spill] sm:$0xff]  ;;  %v5631_v12 = vpop.f32.mrf.mxu2  ;;  %v5633_v17 = vpop.f32.mrf.mxu3 }
 0x443   : > { %6216 = vst [vmem:[#allocation83_spill] sm:$0xff] %v5631_v12 }
 0x444   : > { %3093 = vmatmul.bf16.gmra.mxu2 %v6217_v16 }
 0x447   : > { %v2322_v0 = vpop.f32.mrf.mxu1 }
 0x448   : > { %v5621_v49 = vadd.f32 %v2322_v0, %v5451_v25 }
 0x44a   : > { %6212 = vst [vmem:[#allocation51_spill] sm:$0xff] %v5621_v49  ;;  %v5639_v37 = vpop.f32.mrf.mxu2  ;;  %v5641_v0 = vpop.f32.mrf.mxu3 }
 0x44b   : > { %6219 = vst [vmem:[#allocation84_spill] sm:$0xff] %v5639_v37 }
 0x44f   : > { %v2325_v54 = vpop.f32.mrf.mxu1 }
 0x450   : > { %v5628_v56 = vadd.f32 %v2325_v54, %v5457_v5  ;;  %v6221_v54 = vld [vmem:[#allocation52_spill] sm:$0xff] }
 0x452   : > { %6214 = vst [vmem:[#allocation82_spill] sm:$0xff] %v5628_v56  ;;  %2833 = vmatmul.bf16.gmra.mxu1 %v6215_v53  ;;  %v6222_v56 = vld [vmem:[#allocation21_spill] sm:$0xff]  ;;  %v5648_v12 = vpop.f32.mrf.mxu2 }
 0x453   : > { %6223 = vst [vmem:[#allocation61_spill] sm:$0xff] %v5648_v12  ;;  %v6230_v12 = vld [vmem:[#allocation65_spill] sm:$0xff] }
 0x454   : > { %3098 = vmatmul.bf16.gmra.mxu2 %v6222_v56 }
 0x457   : > { %v2327_v45 = vpop.f32.mrf.mxu1 }
 0x458   : > { %v5637_v25 = vadd.f32 %v2327_v45, %v5461_v42  ;;  %v5653_v42 = vpop.f32.mrf.mxu3  ;;  %v6225_v45 = vld [vmem:[#allocation67_spill] sm:$0xff] }
 0x45a   : > { %6218 = vst [vmem:[#allocation55_spill] sm:$0xff] %v5637_v25  ;;  %v2716_v25 = vadd.f32 %v5489_v32, %v6225_v45  ;;  %v6231_v45 = vld [vmem:[#allocation22_spill] sm:$0xff] }
 0x45f   : > { %v2330_v49 = vpop.f32.mrf.mxu1 }
 0x460   : > { %v5644_v5 = vadd.f32 %v2330_v49, %v5467_v6  ;;  %v2345_v6 = vadd.f32 %v6226_v40, %v5474_v13  ;;  %v5662_v56 = vpop.f32.mrf.mxu3  ;;  %v6232_v13 = vld [vmem:[#allocation58_spill] sm:$0xff] }
 0x461   : > { %6229 = vst [vmem:[#allocation68_spill] sm:$0xff] %v5662_v56  ;;  %v2347_v40 = vadd.f32 %v6232_v13, %v5479_v18  ;;  %v6235_v18 = vld [vmem:[#allocation71_spill] sm:$0xff] }
 0x462   : > { %6220 = vst [vmem:[#allocation85_spill] sm:$0xff] %v5644_v5  ;;  %2838 = vmatmul.bf16.gmra.mxu1 %v6221_v54  ;;  %v5659_v5 = vpop.f32.mrf.mxu2 }
 0x463   : > { %6227 = vst [vmem:[#allocation64_spill] sm:$0xff] %v5659_v5 }
 0x464   : > { %3103 = vmatmul.bf16.gmra.mxu2 %v6231_v45 }
 0x467   : > { %v2332_v53 = vpop.f32.mrf.mxu1 }
 0x468   : > { %v5651_v16 = vadd.f32 %v2332_v53, %v5471_v4  ;;  %v2718_v4 = vadd.f32 %v5496_v14, %v6230_v12  ;;  %v5669_v53 = vld [vmem:[%s5975_s6] ss:$0 sm:$0xff]  ;;  %v5678_v14 = vpop.f32.mrf.mxu3 }
 0x469   : > { %v6234_v12 = vld [vmem:[#allocation74_spill] sm:$0xff] }
 0x46a   : > { %6224 = vst [vmem:[#allocation60_spill] sm:$0xff] %v5651_v16  ;;  %v2721_v16 = vadd.f32 %v5501_v29, %v6234_v12  ;;  %v6238_v12 = vld [vmem:[#allocation66_spill] sm:$0xff] }
 0x46f   : > { %v2804_v37 = vpop.f32.mrf.mxu1 }
 0x470   : > { %v2805_v49 = vadd.f32 %v2804_v37, %v2716_v25  ;;  %v5691_v29 = vpop.f32.mrf.mxu3 }
 0x472   : > { %v2884_v54 = vadd.f32 %v2805_v49, %v2345_v6  ;;  %2843 = vmatmul.bf16.gmra.mxu1 %v6228_v9  ;;  %v5675_v6 = vpop.f32.mrf.mxu2 }
 0x473   : > { %6233 = vst [vmem:[#allocation59_spill] sm:$0xff] %v5675_v6  ;;  %v2352_v6 = vadd.f32 %v6238_v12, %v5487_v2  ;;  %v2357_v12 = vadd.f32 %v5358_v10, %v5499_v47  ;;  %v2360_v10 = vadd.f32 %v5370_v51, %v5504_v7 }
 0x474   : > { %v2920_v37 = vadd.f32 %v5669_v53, %v2884_v54 }
 0x476   : > { %v2952_v5 = vmax.f32 %v2920_v37, 0.0 }
 0x477   : > { %v2806_v32 = vpop.f32.mrf.mxu1 }
 0x478   : > { %v2807_v25 = vadd.f32 %v2806_v32, %v2718_v4  ;;  %v2350_v4 = vadd.f32 %v6235_v18, %v5482_v38  ;;  %v2726_v18 = vadd.f32 %v5518_v61, %v5366_v27  ;;  %v2728_v27 = vadd.f32 %v5523_v41, %v5378_v34 }
 0x479   : > { %v2731_v34 = vadd.f32 %v5530_v44, %v5388_v62 }
 0x47a   : > { %v2885_v9 = vadd.f32 %v2807_v25, %v2347_v40  ;;  %v6236_v40 = vld [vmem:[#allocation56_spill] sm:$0xff]  ;;  %v5687_v25 = vpop.f32.mrf.mxu2 }
 0x47c   : > { %v2921_v49 = vadd.f32 %v5669_v53, %v2885_v9  ;;  %v2723_v9 = vadd.f32 %v5511_v19, %v5353_v46 }
 0x47e   : > { %v2953_v56 = vmax.f32 %v2921_v49, 0.0  ;;  %v6237_v49 = vld [vmem:[#allocation23_spill] sm:$0xff] }
 0x47f   : > { %v2809_v45 = vpop.f32.mrf.mxu1  ;;  %3108 = vmatmul.bf16.gmra.mxu2 %v6237_v49  ;;  %v6240_v49 = vld [vmem:[#allocation24_spill] sm:$0xff] }
 0x480   : > { %v2984_v32 = vpack.c.bf16 %v2953_v56, %v2952_v5  ;;  %v2810_v54 = vadd.f32 %v2809_v45, %v2721_v16  ;;  %v2737_v5 = vpop.f32.mrf.mxu0 }
 0x482   : > { %v2886_v13 = vadd.f32 %v2810_v54, %v2350_v4  ;;  %2848 = vmatmul.bf16.gmra.mxu1 %v6236_v40  ;;  %3225 = vmatmul.bf16.vlgmr.msra.gmra.mxu3 %v2984_v32  ;;  %v5700_v32 = vpop.f32.mrf.mxu2  ;;  %v2355_v54 = vadd.f32 %v5346_v33, %v5492_v26 }
 0x484   : > { %v2922_v16 = vadd.f32 %v5669_v53, %v2886_v13  ;;  %v6239_v13 = vld [vmem:[#allocation62_spill] sm:$0xff] }
 0x486   : > { %v2954_v4 = vmax.f32 %v2922_v16, 0.0 }
 0x487   : > { %v2811_v37 = vpop.f32.mrf.mxu1 }
 0x488   : > { %v2812_v38 = vadd.f32 %v2811_v37, %v2723_v9  ;;  %v5704_v9 = vpop.f32.mrf.mxu3 }
 0x48a   : > { %v2887_v56 = vadd.f32 %v2812_v38, %v2352_v6  ;;  %v2740_v6 = vpop.f32.mrf.mxu0  ;;  %v5712_v33 = vpop.f32.mrf.mxu2 }
 0x48c   : > { %v2923_v45 = vadd.f32 %v5669_v53, %v2887_v56 }
 0x48e   : > { %v2955_v46 = vmax.f32 %v2923_v45, 0.0 }
 0x48f   : > { %v2814_v19 = vpop.f32.mrf.mxu1  ;;  %3113 = vmatmul.bf16.gmra.mxu2 %v6240_v49  ;;  %v6244_v49 = vld [vmem:[#allocation70_spill] sm:$0xff] }
 0x490   : > { %v2815_v40 = vadd.f32 %v2814_v19, %v2726_v18  ;;  %v2985_v2 = vpack.c.bf16 %v2955_v46, %v2954_v4  ;;  %v5715_v56 = vpop.f32.mrf.mxu3  ;;  %v2362_v51 = vadd.f32 %v6244_v49, %v5509_v22  ;;  %v6245_v22 = vld [vmem:[#allocation76_spill] sm:$0xff] }
 0x492   : > { %v2888_v37 = vadd.f32 %v2815_v40, %v2355_v54  ;;  %2853 = vmatmul.bf16.gmra.mxu1 %v6239_v13  ;;  %3230 = vmatmul.bf16.gmra.mxu3 %v2985_v2  ;;  %v2742_v18 = vpop.f32.mrf.mxu0  ;;  %v6241_v40 = vld [vmem:[#allocation69_spill] sm:$0xff]  ;;  %v5723_v2 = vpop.f32.mrf.mxu2  ;;  %v6242_v13 = vld [vmem:[#allocation78_spill] sm:$0xff] }
 0x494   : > { %v2924_v26 = vadd.f32 %v5669_v53, %v2888_v37 }
 0x496   : > { %v2956_v41 = vmax.f32 %v2924_v26, 0.0 }
 0x497   : > { %v2816_v61 = vpop.f32.mrf.mxu1 }
 0x498   : > { %v2817_v38 = vadd.f32 %v2816_v61, %v2728_v27  ;;  %v5725_v37 = vpop.f32.mrf.mxu3  ;;  %v2733_v27 = vadd.f32 %v5538_v1, %v6242_v13  ;;  %v6243_v61 = vld [vmem:[#allocation25_spill] sm:$0xff] }
 0x49a   : > { %v2889_v16 = vadd.f32 %v2817_v38, %v2357_v12  ;;  %v2745_v62 = vpop.f32.mrf.mxu0 }
 0x49c   : > { %v2925_v45 = vadd.f32 %v5669_v53, %v2889_v16  ;;  %v5734_v16 = vpop.f32.mrf.mxu2 }
 0x49e   : > { %v2957_v4 = vmax.f32 %v2925_v45, 0.0 }
 0x49f   : > { %v2819_v46 = vpop.f32.mrf.mxu1  ;;  %3118 = vmatmul.bf16.gmra.mxu2 %v6243_v61 }
 0x4a0   : > { %v2820_v47 = vadd.f32 %v2819_v46, %v2731_v34  ;;  %v2986_v19 = vpack.c.bf16 %v2957_v4, %v2956_v41  ;;  %v5736_v41 = vpop.f32.mrf.mxu3  ;;  %v2736_v4 = vadd.f32 %v5682_v24, %v5583_v60  ;;  %v2367_v24 = vadd.f32 %v5561_v31, %v5521_v8 }
 0x4a1   : > { %v2370_v31 = vadd.f32 %v5567_v15, %v5526_v48 }
 0x4a2   : > { %v2890_v54 = vadd.f32 %v2820_v47, %v2360_v10  ;;  %2858 = vmatmul.bf16.gmra.mxu1 %v6241_v40  ;;  %3235 = vmatmul.bf16.gmra.mxu3 %v2986_v19  ;;  %v2747_v10 = vpop.f32.mrf.mxu0  ;;  %v2365_v19 = vadd.f32 %v5552_v35, %v5514_v58 }
 0x4a4   : > { %v2926_v12 = vadd.f32 %v5669_v53, %v2890_v54  ;;  %v2738_v54 = vadd.f32 %v2737_v5, %v5591_v28 }
 0x4a6   : > { %v2958_v45 = vmax.f32 %v2926_v12, 0.0  ;;  %v2741_v12 = vadd.f32 %v2740_v6, %v5598_v23  ;;  %v2372_v23 = vadd.f32 %v5572_v57, %v5533_v11  ;;  %v2375_v11 = vadd.f32 %v5578_v55, %v5536_v50 }
 0x4a7   : > { %v2821_v44 = vpop.f32.mrf.mxu1 }
 0x4a8   : > { %v2822_v7 = vadd.f32 %v2821_v44, %v2733_v27  ;;  %v6246_v27 = vld [vmem:[#allocation26_spill] sm:$0xff]  ;;  %v5745_v44 = vpop.f32.mrf.mxu2  ;;  %v5749_v61 = vpop.f32.mrf.mxu3 }
 0x4aa   : > { %v2891_v38 = vadd.f32 %v2822_v7, %v2362_v51  ;;  %v2750_v7 = vpop.f32.mrf.mxu0 }
 0x4ac   : > { %v2927_v26 = vadd.f32 %v5669_v53, %v2891_v38 }
 0x4ae   : > { %v2959_v34 = vmax.f32 %v2927_v26, 0.0 }
 0x4af   : > { %v2824_v1 = vpop.f32.mrf.mxu1  ;;  %3123 = vmatmul.bf16.gmra.mxu2 %v6246_v27 }
 0x4b0   : > { %v2987_v46 = vpack.c.bf16 %v2959_v34, %v2958_v45  ;;  %v2825_v47 = vadd.f32 %v2824_v1, %v2736_v4  ;;  %v5754_v26 = vpop.f32.mrf.mxu2  ;;  %v6247_v34 = vld [vmem:[#allocation80_spill] sm:$0xff]  ;;  %v5757_v8 = vpop.f32.mrf.mxu3  ;;  %v2743_v4 = vadd.f32 %v2742_v18, %v5606_v36 }
 0x4b2   : > { %2863 = vmatmul.bf16.gmra.mxu1 %v6245_v22  ;;  %3240 = vmatmul.bf16.gmra.mxu3 %v2987_v46  ;;  %v2892_v40 = vadd.f32 %v2825_v47, %v2365_v19  ;;  %v2752_v1 = vpop.f32.mrf.mxu0  ;;  %v6248_v22 = vld [vmem:[#allocation27_spill] sm:$0xff] }
 0x4b4   : > { %v2928_v49 = vadd.f32 %v5669_v53, %v2892_v40 }
 0x4b6   : > { %v2960_v35 = vmax.f32 %v2928_v49, 0.0 }
 0x4b7   : > { %v2826_v13 = vpop.f32.mrf.mxu1 }
 0x4b8   : > { %v2827_v60 = vadd.f32 %v2826_v13, %v2738_v54  ;;  %v5766_v40 = vpop.f32.mrf.mxu2  ;;  %v5769_v27 = vpop.f32.mrf.mxu3 }
 0x4ba   : > { %v2893_v51 = vadd.f32 %v2827_v60, %v2367_v24  ;;  %v2755_v36 = vpop.f32.mrf.mxu0  ;;  %v2746_v24 = vadd.f32 %v2745_v62, %v5616_v20  ;;  %v2377_v20 = vadd.f32 %v5588_v21, %v5543_v59  ;;  %v2380_v21 = vadd.f32 %v5596_v63, %v5546_v39 }
 0x4bc   : > { %v2929_v58 = vadd.f32 %v5669_v53, %v2893_v51  ;;  %v6249_v51 = vld [vmem:[#allocation81_spill] sm:$0xff] }
 0x4be   : > { %v2961_v28 = vmax.f32 %v2929_v58, 0.0  ;;  %v2748_v58 = vadd.f32 %v2747_v10, %v5625_v3  ;;  %v2751_v10 = vadd.f32 %v2750_v7, %v5633_v17  ;;  %v2382_v17 = vadd.f32 %v5604_v52, %v5550_v30  ;;  %v6252_v30 = vld [vmem:[#allocation72_spill] sm:$0xff]  ;;  %v6253_v52 = vld [vmem:[#allocation47_spill] sm:$0xff] }
 0x4bf   : > { %v2829_v5 = vpop.f32.mrf.mxu1  ;;  %3128 = vmatmul.bf16.gmra.mxu2 %v6248_v22 }
 0x4c0   : > { %v2988_v38 = vpack.c.bf16 %v2961_v28, %v2960_v35  ;;  %v2830_v45 = vadd.f32 %v2829_v5, %v2741_v12  ;;  %v5775_v57 = vpop.f32.mrf.mxu2  ;;  %v5778_v28 = vpop.f32.mrf.mxu3  ;;  %v6250_v12 = vld [vmem:[#allocation28_spill] sm:$0xff] }
 0x4c2   : > { %2868 = vmatmul.bf16.gmra.mxu1 %v6247_v34  ;;  %3245 = vmatmul.bf16.gmra.mxu3 %v2988_v38  ;;  %v2894_v46 = vadd.f32 %v2830_v45, %v2370_v31  ;;  %v2757_v38 = vpop.f32.mrf.mxu0 }
 0x4c4   : > { %v2930_v19 = vadd.f32 %v5669_v53, %v2894_v46 }
 0x4c6   : > { %v2962_v48 = vmax.f32 %v2930_v19, 0.0 }
 0x4c7   : > { %v2831_v47 = vpop.f32.mrf.mxu1 }
 0x4c8   : > { %v2832_v6 = vadd.f32 %v2831_v47, %v2743_v4  ;;  %v3089_v4 = vpop.f32.mrf.mxu2  ;;  %v5786_v47 = vpop.f32.mrf.mxu3 }
 0x4ca   : > { %v2895_v54 = vadd.f32 %v2832_v6, %v2372_v23  ;;  %v2760_v59 = vpop.f32.mrf.mxu0  ;;  %v2753_v23 = vadd.f32 %v2752_v1, %v5641_v0 }
 0x4cc   : > { %v2931_v13 = vadd.f32 %v5669_v53, %v2895_v54 }
 0x4ce   : > { %v2963_v15 = vmax.f32 %v2931_v13, 0.0  ;;  %v6251_v13 = vld [vmem:[#allocation30_spill] sm:$0xff] }
 0x4cf   : > { %v2834_v18 = vpop.f32.mrf.mxu1  ;;  %3133 = vmatmul.bf16.gmra.mxu2 %v6250_v12 }
 0x4d0   : > { %v2989_v60 = vpack.c.bf16 %v2963_v15, %v2962_v48  ;;  %v2835_v49 = vadd.f32 %v2834_v18, %v2746_v24  ;;  %v3091_v19 = vpop.f32.mrf.mxu2 }
 0x4d2   : > { %2873 = vmatmul.bf16.gmra.mxu1 %v6249_v51  ;;  %3250 = vmatmul.bf16.gmra.mxu3 %v2989_v60  ;;  %v2896_v35 = vadd.f32 %v2835_v49, %v2375_v11  ;;  %v2762_v24 = vpop.f32.mrf.mxu0  ;;  %v2756_v60 = vadd.f32 %v2755_v36, %v5653_v42 }
 0x4d4   : > { %v2932_v45 = vadd.f32 %v5669_v53, %v2896_v35  ;;  %v6254_v35 = vld [vmem:[#allocation68_spill] sm:$0xff] }
 0x4d6   : > { %v2964_v55 = vmax.f32 %v2932_v45, 0.0 }
 0x4d7   : > { %v2836_v5 = vpop.f32.mrf.mxu1 }
 0x4d8   : > { %v2837_v62 = vadd.f32 %v2836_v5, %v2748_v58  ;;  %v3094_v0 = vpop.f32.mrf.mxu2  ;;  %v2385_v58 = vadd.f32 %v6253_v52, %v6252_v30  ;;  %v2758_v5 = vadd.f32 %v2757_v38, %v6254_v35  ;;  %v6261_v30 = vld [vmem:[#allocation31_spill] sm:$0xff]  ;;  %v6262_v52 = vld [vmem:[#allocation84_spill] sm:$0xff] }
 0x4da   : > { %v2897_v34 = vadd.f32 %v2837_v62, %v2377_v20  ;;  %v2765_v62 = vpop.f32.mrf.mxu0 }
 0x4dc   : > { %v2933_v50 = vadd.f32 %v5669_v53, %v2897_v34  ;;  %v6255_v34 = vld [vmem:[#allocation32_spill] sm:$0xff] }
 0x4de   : > { %v2965_v31 = vmax.f32 %v2933_v50, 0.0  ;;  %v6256_v50 = vld [vmem:[#allocation73_spill] sm:$0xff] }
 0x4df   : > { %v2839_v3 = vpop.f32.mrf.mxu1  ;;  %3138 = vmatmul.bf16.gmra.mxu2 %v6251_v13 }
 0x4e0   : > { %v2990_v46 = vpack.c.bf16 %v2965_v31, %v2964_v55  ;;  %v2840_v22 = vadd.f32 %v2839_v3, %v2751_v10  ;;  %v5805_v20 = vpop.f32.mrf.mxu2  ;;  %v6257_v55 = vld [vmem:[#allocation53_spill] sm:$0xff] }
 0x4e1   : > { %v2387_v42 = vadd.f32 %v6257_v55, %v6256_v50  ;;  %v2766_v55 = vadd.f32 %v2765_v62, %v5704_v9  ;;  %v6266_v9 = vld [vmem:[#allocation29_spill] sm:$0xff]  ;;  %v6267_v62 = vld [vmem:[#allocation64_spill] sm:$0xff] }
 0x4e2   : > { %2878 = vmatmul.bf16.gmra.mxu1 %v6131_v43  ;;  %3255 = vmatmul.bf16.gmra.mxu3 %v2990_v46  ;;  %v2898_v6 = vadd.f32 %v2840_v22, %v2380_v21  ;;  %v5796_v43 = vpop.f32.mrf.mxu3  ;;  %v2767_v13 = vpop.f32.mrf.mxu0 }
 0x4e4   : > { %v2934_v48 = vadd.f32 %v5669_v53, %v2898_v6  ;;  %v2761_v6 = vadd.f32 %v2760_v59, %v5678_v14  ;;  %v2392_v14 = vadd.f32 %v6262_v52, %v6261_v30 }
 0x4e6   : > { %v2966_v39 = vmax.f32 %v2934_v48, 0.0  ;;  %v6259_v48 = vld [vmem:[#allocation83_spill] sm:$0xff] }
 0x4e7   : > { %v2841_v54 = vpop.f32.mrf.mxu1 }
 0x4e8   : > { %v2842_v7 = vadd.f32 %v2841_v54, %v2753_v23  ;;  %v5814_v21 = vpop.f32.mrf.mxu2 }
 0x4ea   : > { %v2899_v15 = vadd.f32 %v2842_v7, %v2382_v17  ;;  %v5800_v11 = vpop.f32.mrf.mxu3  ;;  %v6258_v7 = vld [vmem:[#allocation77_spill] sm:$0xff] }
 0x4ec   : > { %v2935_v18 = vadd.f32 %v5669_v53, %v2899_v15  ;;  %v2390_v15 = vadd.f32 %v6259_v48, %v6258_v7  ;;  %v6265_v7 = vld [vmem:[#allocation38_spill] sm:$0xff]  ;;  %v2397_v48 = vadd.f32 %v6267_v62, %v6266_v9 }
 0x4ed   : > { %v6272_v9 = vld [vmem:[#allocation42_spill] sm:$0xff] }
 0x4ee   : > { %v2967_v63 = vmax.f32 %v2935_v18, 0.0  ;;  %v2405_v62 = vadd.f32 %v5700_v32, %v6272_v9 }
 0x4ef   : > { %v2844_v1 = vpop.f32.mrf.mxu1  ;;  %3143 = vmatmul.bf16.gmra.mxu2 %v6255_v34 }
 0x4f0   : > { %v2991_v49 = vpack.c.bf16 %v2967_v63, %v2966_v39  ;;  %v2845_v51 = vadd.f32 %v2844_v1, %v2756_v60  ;;  %v2763_v39 = vadd.f32 %v2762_v24, %v5691_v29  ;;  %v5820_v60 = vpop.f32.mrf.mxu2  ;;  %v2770_v24 = vpop.f32.mrf.mxu0 }
 0x4f1   : > { %v2771_v52 = vadd.f32 %v2770_v24, %v5725_v37  ;;  %v6271_v37 = vld [vmem:[#allocation39_spill] sm:$0xff] }
 0x4f2   : > { %3260 = vmatmul.bf16.gmra.mxu3 %v2991_v49  ;;  %v2900_v12 = vadd.f32 %v2845_v51, %v2385_v58  ;;  %v5812_v46 = vpop.f32.mrf.mxu3  ;;  %v6260_v51 = vld [vmem:[#allocation35_spill] sm:$0xff]  ;;  %v2402_v24 = vadd.f32 %v5687_v25, %v6271_v37 }
 0x4f4   : > { %v2936_v31 = vadd.f32 %v5669_v53, %v2900_v12 }
 0x4f6   : > { %v2968_v22 = vmax.f32 %v2936_v31, 0.0  ;;  %v6263_v31 = vld [vmem:[#allocation33_spill] sm:$0xff] }
 0x4f7   : > { %v2846_v45 = vpop.f32.mrf.mxu1 }
 0x4f8   : > { %v2847_v36 = vadd.f32 %v2846_v45, %v2758_v5  ;;  %v5832_v34 = vpop.f32.mrf.mxu2 }
 0x4fa   : > { %v2901_v3 = vadd.f32 %v2847_v36, %v2387_v42 }
 0x4fc   : > { %v2937_v10 = vadd.f32 %v5669_v53, %v2901_v3  ;;  %v6264_v3 = vld [vmem:[#allocation61_spill] sm:$0xff] }
 0x4fe   : > { %v2969_v38 = vmax.f32 %v2937_v10, 0.0  ;;  %v2395_v10 = vadd.f32 %v6264_v3, %v6263_v31 }
 0x4ff   : > { %v2849_v23 = vpop.f32.mrf.mxu1  ;;  %3148 = vmatmul.bf16.gmra.mxu2 %v6260_v51 }
 0x500   : > { %v2992_v54 = vpack.c.bf16 %v2969_v38, %v2968_v22  ;;  %v2850_v17 = vadd.f32 %v2849_v23, %v2761_v6  ;;  %v2772_v22 = vpop.f32.mrf.mxu0  ;;  %v2768_v23 = vadd.f32 %v2767_v13, %v5715_v56 }
 0x502   : > { %3265 = vmatmul.bf16.gmra.mxu3 %v2992_v54  ;;  %v2902_v63 = vadd.f32 %v2850_v17, %v2390_v15 }
 0x504   : > { %v2938_v58 = vadd.f32 %v5669_v53, %v2902_v63 }
 0x505   : > { %v3226_v18 = vpop.f32.mrf.mxu3 }
 0x506   : > { %v3227_v1 = vadd.f32 %v3226_v18, %v3089_v4  ;;  %v2970_v5 = vmax.f32 %v2938_v58, 0.0  ;;  %v6268_v58 = vld [vmem:[#allocation36_spill] sm:$0xff] }
 0x507   : > { %v2851_v49 = vpop.f32.mrf.mxu1 }
 0x508   : > { %3306 = vst [vmem:[%s5827_s28] sm:$0xff] %v3227_v1  ;;  %v2852_v59 = vadd.f32 %v2851_v49, %v2763_v39  ;;  %v2775_v51 = vpop.f32.mrf.mxu0 }
 0x50a   : > { %v2903_v29 = vadd.f32 %v2852_v59, %v2392_v14 }
 0x50c   : > { %v2939_v4 = vadd.f32 %v5669_v53, %v2903_v29  ;;  %v6269_v29 = vld [vmem:[#allocation59_spill] sm:$0xff] }
 0x50d   : > { %v3228_v35 = vpop.f32.mrf.mxu3 }
 0x50e   : > { %v2971_v12 = vmax.f32 %v2939_v4, 0.0  ;;  %v3229_v45 = vadd.f32 %v3228_v35, %v3091_v19  ;;  %v5839_v19 = vpop.f32.mrf.mxu2  ;;  %v2400_v4 = vadd.f32 %v6269_v29, %v6268_v58 }
 0x50f   : > { %v2854_v50 = vpop.f32.mrf.mxu1  ;;  %3153 = vmatmul.bf16.gmra.mxu2 %v6265_v7 }
 0x510   : > { %3307 = vst [vmem:[%s5827_s28 + $0x8] sm:$0xff] %v3229_v45  ;;  %v2993_v42 = vpack.c.bf16 %v2971_v12, %v2970_v5  ;;  %v2855_v36 = vadd.f32 %v2854_v50, %v2766_v55  ;;  %v2773_v5 = vadd.f32 %v2772_v22, %v5736_v41  ;;  %v6270_v55 = vld [vmem:[#allocation41_spill] sm:$0xff] }
 0x512   : > { %3270 = vmatmul.bf16.gmra.mxu3 %v2993_v42  ;;  %v2904_v6 = vadd.f32 %v2855_v36, %v2395_v10  ;;  %v2777_v36 = vpop.f32.mrf.mxu0 }
 0x514   : > { %v2940_v18 = vadd.f32 %v5669_v53, %v2904_v6 }
 0x515   : > { %v3231_v38 = vpop.f32.mrf.mxu3 }
 0x516   : > { %v3232_v54 = vadd.f32 %v3231_v38, %v3094_v0  ;;  %v2972_v56 = vmax.f32 %v2940_v18, 0.0  ;;  %v5848_v49 = vpop.f32.mrf.mxu2 }
 0x517   : > { %v2856_v17 = vpop.f32.mrf.mxu1 }
 0x518   : > { %3308 = vst [vmem:[%s5827_s28 + $0x10] sm:$0xff] %v3232_v54  ;;  %v2857_v15 = vadd.f32 %v2856_v17, %v2768_v23  ;;  %v2776_v54 = vadd.f32 %v2775_v51, %v5749_v61  ;;  %v6274_v61 = vld [vmem:[#allocation45_spill] sm:$0xff] }
 0x51a   : > { %v2905_v39 = vadd.f32 %v2857_v15, %v2397_v48  ;;  %v2780_v7 = vpop.f32.mrf.mxu0  ;;  %v2778_v15 = vadd.f32 %v2777_v36, %v5757_v8 }
 0x51b   : > { %v2781_v29 = vadd.f32 %v2780_v7, %v5769_v27 }
 0x51c   : > { %v2941_v63 = vadd.f32 %v5669_v53, %v2905_v39 }
 0x51d   : > { %v3233_v1 = vpop.f32.mrf.mxu3 }
 0x51e   : > { %v2973_v13 = vmax.f32 %v2941_v63, 0.0  ;;  %v3234_v0 = vadd.f32 %v3233_v1, %v5805_v20  ;;  %v5856_v45 = vpop.f32.mrf.mxu2  ;;  %v6273_v1 = vld [vmem:[#allocation44_spill] sm:$0xff] }
 0x51f   : > { %v2859_v30 = vpop.f32.mrf.mxu1  ;;  %3158 = vmatmul.bf16.gmra.mxu2 %v6270_v55 }
 0x520   : > { %3309 = vst [vmem:[%s5827_s28 + $0x18] sm:$0xff] %v3234_v0  ;;  %v2994_v14 = vpack.c.bf16 %v2973_v13, %v2972_v56  ;;  %v2860_v59 = vadd.f32 %v2859_v30, %v2771_v52  ;;  %v2407_v56 = vadd.f32 %v5712_v33, %v6274_v61 }
 0x522   : > { %3275 = vmatmul.bf16.gmra.mxu3 %v2994_v14  ;;  %v2906_v12 = vadd.f32 %v2860_v59, %v2400_v4  ;;  %v2782_v8 = vpop.f32.mrf.mxu0 }
 0x524   : > { %v2942_v31 = vadd.f32 %v5669_v53, %v2906_v12 }
 0x525   : > { %v3236_v35 = vpop.f32.mrf.mxu3 }
 0x526   : > { %v3237_v20 = vadd.f32 %v3236_v35, %v5814_v21  ;;  %v2974_v22 = vmax.f32 %v2942_v31, 0.0  ;;  %v5865_v23 = vpop.f32.mrf.mxu2  ;;  %v6275_v35 = vld [vmem:[#allocation49_spill] sm:$0xff] }
 0x527   : > { %v2861_v50 = vpop.f32.mrf.mxu1 }
 0x528   : > { %3310 = vst [vmem:[%s5827_s28 + $0x20] sm:$0xff] %v3237_v20  ;;  %v2862_v42 = vadd.f32 %v2861_v50, %v2773_v5  ;;  %v2410_v5 = vadd.f32 %v5723_v2, %v6275_v35  ;;  %v2783_v20 = vadd.f32 %v2782_v8, %v5778_v28 }
 0x52a   : > { %v2907_v3 = vadd.f32 %v2862_v42, %v2402_v24  ;;  %v6276_v24 = vld [vmem:[#allocation51_spill] sm:$0xff] }
 0x52b   : > { %v2412_v42 = vadd.f32 %v5734_v16, %v6276_v24 }
 0x52c   : > { %v2943_v41 = vadd.f32 %v5669_v53, %v2907_v3 }
 0x52d   : > { %v3238_v10 = vpop.f32.mrf.mxu3 }
 0x52e   : > { %v2975_v21 = vmax.f32 %v2943_v41, 0.0  ;;  %v3239_v38 = vadd.f32 %v3238_v10, %v5820_v60  ;;  %v5873_v39 = vpop.f32.mrf.mxu2 }
 0x52f   : > { %v2864_v6 = vpop.f32.mrf.mxu1  ;;  %3163 = vmatmul.bf16.gmra.mxu2 %v6273_v1 }
 0x530   : > { %3311 = vst [vmem:[%s5827_s28 + $0x28] sm:$0xff] %v3239_v38  ;;  %v2995_v25 = vpack.c.bf16 %v2975_v21, %v2974_v22  ;;  %v2865_v17 = vadd.f32 %v2864_v6, %v2776_v54 }
 0x532   : > { %3280 = vmatmul.bf16.gmra.mxu3 %v2995_v25  ;;  %v2908_v18 = vadd.f32 %v2865_v17, %v2405_v62  ;;  %v6277_v25 = vld [vmem:[#allocation82_spill] sm:$0xff] }
 0x533   : > { %v2415_v17 = vadd.f32 %v5745_v44, %v6277_v25 }
 0x534   : > { %v2944_v0 = vadd.f32 %v5669_v53, %v2908_v18 }
 0x535   : > { %v3241_v48 = vpop.f32.mrf.mxu3 }
 0x536   : > { %v3242_v60 = vadd.f32 %v3241_v48, %v5832_v34  ;;  %v2976_v52 = vmax.f32 %v2944_v0, 0.0  ;;  %v3119_v58 = vpop.f32.mrf.mxu2 }
 0x537   : > { %v2866_v63 = vpop.f32.mrf.mxu1 }
 0x538   : > { %3312 = vst [vmem:[%s5827_s28 + $0x30] sm:$0xff] %v3242_v60  ;;  %v2867_v13 = vadd.f32 %v2866_v63, %v2778_v15  ;;  %v6278_v15 = vld [vmem:[#allocation55_spill] sm:$0xff] }
 0x53a   : > { %v2909_v32 = vadd.f32 %v2867_v13, %v2407_v56 }
 0x53c   : > { %v2945_v51 = vadd.f32 %v5669_v53, %v2909_v32 }
 0x53d   : > { %v3243_v30 = vpop.f32.mrf.mxu3 }
 0x53e   : > { %v2977_v34 = vmax.f32 %v2945_v51, 0.0  ;;  %v3244_v14 = vadd.f32 %v3243_v30, %v5839_v19  ;;  %v2785_v19 = vpop.f32.mrf.mxu0  ;;  %v3121_v36 = vpop.f32.mrf.mxu2  ;;  %v6279_v51 = vld [vmem:[#allocation85_spill] sm:$0xff] }
 0x53f   : > { %v2869_v59 = vpop.f32.mrf.mxu1  ;;  %v2786_v21 = vadd.f32 %v2785_v19, %v5786_v47  ;;  %v2417_v47 = vadd.f32 %v5754_v26, %v6278_v15  ;;  %v2420_v26 = vadd.f32 %v5766_v40, %v6279_v51 }
 0x540   : > { %3313 = vst [vmem:[%s5827_s28 + $0x38] sm:$0xff] %v3244_v14  ;;  %v2996_v33 = vpack.c.bf16 %v2977_v34, %v2976_v52  ;;  %v2870_v4 = vadd.f32 %v2869_v59, %v2781_v29 }
 0x542   : > { %3285 = vmatmul.bf16.gmra.mxu3 %v2996_v33  ;;  %v2910_v50 = vadd.f32 %v2870_v4, %v2410_v5  ;;  %v6280_v4 = vld [vmem:[#allocation60_spill] sm:$0xff] }
 0x544   : > { %v2946_v31 = vadd.f32 %v5669_v53, %v2910_v50 }
 0x545   : > { %v3246_v12 = vpop.f32.mrf.mxu3 }
 0x546   : > { %v3247_v55 = vadd.f32 %v3246_v12, %v5848_v49  ;;  %v2978_v10 = vmax.f32 %v2946_v31, 0.0  ;;  %v2787_v16 = vpop.f32.mrf.mxu0  ;;  %v3124_v54 = vpop.f32.mrf.mxu2 }
 0x547   : > { %v2871_v37 = vpop.f32.mrf.mxu1  ;;  %v2788_v9 = vadd.f32 %v2787_v16, %v5796_v43 }
 0x548   : > { %3314 = vst [vmem:[%s5827_s28 + $0x40] sm:$0xff] %v3247_v55  ;;  %v2872_v27 = vadd.f32 %v2871_v37, %v2783_v20 }
 0x54a   : > { %v2911_v3 = vadd.f32 %v2872_v27, %v2412_v42 }
 0x54c   : > { %v2947_v2 = vadd.f32 %v5669_v53, %v2911_v3 }
 0x54d   : > { %v3248_v41 = vpop.f32.mrf.mxu3 }
 0x54e   : > { %v2979_v28 = vmax.f32 %v2947_v2, 0.0  ;;  %v3249_v22 = vadd.f32 %v3248_v41, %v5856_v45  ;;  %v2790_v60 = vpop.f32.mrf.mxu0  ;;  %v3126_v56 = vpop.f32.mrf.mxu2 }
 0x54f   : > { %v2874_v49 = vpop.f32.mrf.mxu1  ;;  %v2791_v43 = vadd.f32 %v2790_v60, %v5800_v11 }
 0x550   : > { %3315 = vst [vmem:[%s5827_s28 + $0x48] sm:$0xff] %v3249_v22  ;;  %v2997_v38 = vpack.c.bf16 %v2979_v28, %v2978_v10  ;;  %v2875_v6 = vadd.f32 %v2874_v49, %v2786_v21 }
 0x552   : > { %3290 = vmatmul.bf16.gmra.mxu3 %v2997_v38  ;;  %v2912_v62 = vadd.f32 %v2875_v6, %v2415_v17 }
 0x554   : > { %v2948_v63 = vadd.f32 %v5669_v53, %v2912_v62 }
 0x555   : > { %v3251_v7 = vpop.f32.mrf.mxu3 }
 0x556   : > { %v3252_v48 = vadd.f32 %v3251_v7, %v5865_v23  ;;  %v2980_v13 = vmax.f32 %v2948_v63, 0.0  ;;  %v2792_v34 = vpop.f32.mrf.mxu0  ;;  %v3129_v33 = vpop.f32.mrf.mxu2 }
 0x557   : > { %v2876_v45 = vpop.f32.mrf.mxu1  ;;  %v2793_v59 = vadd.f32 %v2792_v34, %v5812_v46 }
 0x558   : > { %3316 = vst [vmem:[%s5827_s28 + $0x50] sm:$0xff] %v3252_v48  ;;  %v2877_v18 = vadd.f32 %v2876_v45, %v2788_v9 }
 0x55a   : > { %v2913_v1 = vadd.f32 %v2877_v18, %v2417_v47 }
 0x55c   : > { %v2949_v61 = vadd.f32 %v5669_v53, %v2913_v1 }
 0x55d   : > { %v3253_v44 = vpop.f32.mrf.mxu3 }
 0x55e   : > { %v2981_v0 = vmax.f32 %v2949_v61, 0.0  ;;  %v3254_v23 = vadd.f32 %v3253_v44, %v5873_v39  ;;  %v2422_v39 = vadd.f32 %v5775_v57, %v6280_v4  ;;  %v3131_v19 = vpop.f32.mrf.mxu2 }
 0x55f   : > { %v2879_v32 = vpop.f32.mrf.mxu1 }
 0x560   : > { %3317 = vst [vmem:[%s5827_s28 + $0x58] sm:$0xff] %v3254_v23  ;;  %v2880_v8 = vadd.f32 %v2879_v32, %v2791_v43  ;;  %v2998_v30 = vpack.c.bf16 %v2981_v0, %v2980_v13 }
 0x562   : > { %v2914_v52 = vadd.f32 %v2880_v8, %v2420_v26  ;;  %3295 = vmatmul.bf16.gmra.mxu3 %v2998_v30 }
 0x564   : > { %v2950_v40 = vadd.f32 %v5669_v53, %v2914_v52 }
 0x565   : > { %v3256_v14 = vpop.f32.mrf.mxu3 }
 0x566   : > { %v3257_v11 = vadd.f32 %v3256_v14, %v3119_v58  ;;  %v2982_v50 = vmax.f32 %v2950_v40, 0.0  ;;  %v3134_v24 = vpop.f32.mrf.mxu2 }
 0x567   : > { %v2881_v29 = vpop.f32.mrf.mxu1 }
 0x568   : > { %3318 = vst [vmem:[%s5827_s28 + $0x60] sm:$0xff] %v3257_v11  ;;  %v2882_v35 = vadd.f32 %v2881_v29, %v2793_v59 }
 0x56a   : > { %v2915_v5 = vadd.f32 %v2882_v35, %v2422_v39 }
 0x56c   : > { %v2951_v12 = vadd.f32 %v5669_v53, %v2915_v5 }
 0x56d   : > { %v3258_v20 = vpop.f32.mrf.mxu3 }
 0x56e   : > { %v2983_v55 = vmax.f32 %v2951_v12, 0.0  ;;  %v3259_v46 = vadd.f32 %v3258_v20, %v3121_v36  ;;  %v3136_v31 = vpop.f32.mrf.mxu2 }
 0x570   : > { %3319 = vst [vmem:[%s5827_s28 + $0x68] sm:$0xff] %v3259_v46  ;;  %v2999_v58 = vpack.c.bf16 %v2983_v55, %v2982_v50 }
 0x572   : > { %3300 = vmatmul.bf16.gmra.mxu3 %v2999_v58 }
 0x575   : > { %v3261_v57 = vpop.f32.mrf.mxu3 }
 0x576   : > { %v3262_v37 = vadd.f32 %v3261_v57, %v3124_v54  ;;  %v3139_v41 = vpop.f32.mrf.mxu2 }
 0x578   : > { %3320 = vst [vmem:[%s5827_s28 + $0x70] sm:$0xff] %v3262_v37 }
 0x57d   : > { %v3263_v42 = vpop.f32.mrf.mxu3 }
 0x57e   : > { %v3264_v27 = vadd.f32 %v3263_v42, %v3126_v56  ;;  %v3141_v22 = vpop.f32.mrf.mxu2 }
 0x580   : > { %3321 = vst [vmem:[%s5827_s28 + $0x78] sm:$0xff] %v3264_v27 }
 0x585   : > { %v3266_v53 = vpop.f32.mrf.mxu3 }
 0x586   : > { %v3267_v3 = vadd.f32 %v3266_v53, %v3129_v33  ;;  %v3144_v38 = vpop.f32.mrf.mxu2 }
 0x588   : > { %3322 = vst [vmem:[%s5827_s28 + $0x80] sm:$0xff] %v3267_v3 }
 0x58d   : > { %v3268_v36 = vpop.f32.mrf.mxu3 }
 0x58e   : > { %v3269_v2 = vadd.f32 %v3268_v36, %v3131_v19  ;;  %v3146_v25 = vpop.f32.mrf.mxu2 }
 0x590   : > { %3323 = vst [vmem:[%s5827_s28 + $0x88] sm:$0xff] %v3269_v2 }
 0x595   : > { %v3271_v10 = vpop.f32.mrf.mxu3 }
 0x596   : > { %v3272_v28 = vadd.f32 %v3271_v10, %v3134_v24  ;;  %v3149_v62 = vpop.f32.mrf.mxu2 }
 0x598   : > { %3324 = vst [vmem:[%s5827_s28 + $0x90] sm:$0xff] %v3272_v28 }
 0x59d   : > { %v3273_v49 = vpop.f32.mrf.mxu3 }
 0x59e   : > { %v3274_v21 = vadd.f32 %v3273_v49, %v3136_v31  ;;  %v3151_v15 = vpop.f32.mrf.mxu2 }
 0x5a0   : > { %3325 = vst [vmem:[%s5827_s28 + $0x98] sm:$0xff] %v3274_v21 }
 0x5a5   : > { %v3276_v16 = vpop.f32.mrf.mxu3 }
 0x5a6   : > { %v3277_v6 = vadd.f32 %v3276_v16, %v3139_v41  ;;  %v3154_v60 = vpop.f32.mrf.mxu2 }
 0x5a8   : > { %3326 = vst [vmem:[%s5827_s28 + $0xa0] sm:$0xff] %v3277_v6 }
 0x5ad   : > { %v3278_v54 = vpop.f32.mrf.mxu3 }
 0x5ae   : > { %v3279_v17 = vadd.f32 %v3278_v54, %v3141_v22  ;;  %v3156_v61 = vpop.f32.mrf.mxu2 }
 0x5b0   : > { %3327 = vst [vmem:[%s5827_s28 + $0xa8] sm:$0xff] %v3279_v17 }
 0x5b5   : > { %v3281_v7 = vpop.f32.mrf.mxu3 }
 0x5b6   : > { %v3282_v9 = vadd.f32 %v3281_v7, %v3144_v38  ;;  %v3159_v0 = vpop.f32.mrf.mxu2 }
 0x5b8   : > { %3328 = vst [vmem:[%s5827_s28 + $0xb0] sm:$0xff] %v3282_v9 }
 0x5bd   : > { %v3283_v48 = vpop.f32.mrf.mxu3 }
 0x5be   : > { %v3284_v45 = vadd.f32 %v3283_v48, %v3146_v25  ;;  %v3161_v51 = vpop.f32.mrf.mxu2 }
 0x5c0   : > { %3329 = vst [vmem:[%s5827_s28 + $0xb8] sm:$0xff] %v3284_v45 }
 0x5c5   : > { %v3286_v47 = vpop.f32.mrf.mxu3 }
 0x5c6   : > { %v3287_v18 = vadd.f32 %v3286_v47, %v3149_v62  ;;  %v3164_v30 = vpop.f32.mrf.mxu2 }
 0x5c8   : > { %3330 = vst [vmem:[%s5827_s28 + $0xc0] sm:$0xff] %v3287_v18 }
 0x5cd   : > { %v3288_v63 = vpop.f32.mrf.mxu3 }
 0x5ce   : > { %v3289_v1 = vadd.f32 %v3288_v63, %v3151_v15  ;;  %v3166_v14 = vpop.f32.mrf.mxu2 }
 0x5d0   : > { %3331 = vst [vmem:[%s5827_s28 + $0xc8] sm:$0xff] %v3289_v1 }
 0x5d5   : > { %v3291_v44 = vpop.f32.mrf.mxu3 }
 0x5d6   : > { %v3292_v56 = vadd.f32 %v3291_v44, %v3154_v60 }
 0x5d8   : > { %3332 = vst [vmem:[%s5827_s28 + $0xd0] sm:$0xff] %v3292_v56 }
 0x5dd   : > { %v3293_v43 = vpop.f32.mrf.mxu3 }
 0x5de   : > { %v3294_v13 = vadd.f32 %v3293_v43, %v3156_v61 }
 0x5e0   : > { %3333 = vst [vmem:[%s5827_s28 + $0xd8] sm:$0xff] %v3294_v13 }
 0x5e5   : > { %v3296_v23 = vpop.f32.mrf.mxu3 }
 0x5e6   : > { %v3297_v32 = vadd.f32 %v3296_v23, %v3159_v0 }
 0x5e8   : > { %3334 = vst [vmem:[%s5827_s28 + $0xe0] sm:$0xff] %v3297_v32 }
 0x5ed   : > { %v3298_v26 = vpop.f32.mrf.mxu3 }
 0x5ee   : > { %v3299_v8 = vadd.f32 %v3298_v26, %v3161_v51 }
 0x5f0   : > { %3335 = vst [vmem:[%s5827_s28 + $0xe8] sm:$0xff] %v3299_v8 }
 0x5f5   : > { %v3301_v52 = vpop.f32.mrf.mxu3 }
 0x5f6   : > { %v3302_v34 = vadd.f32 %v3301_v52, %v3164_v30 }
 0x5f8   : > { %3336 = vst [vmem:[%s5827_s28 + $0xf0] sm:$0xff] %v3302_v34 }
 0x5fd   : > { %v3303_v59 = vpop.f32.mrf.mxu3 }
 0x5fe   : > { %v3304_v11 = vadd.f32 %v3303_v59, %v3166_v14 }
 0x600   : > { %3337 = vst [vmem:[%s5827_s28 + $0xf8] sm:$0xff] %v3304_v11 }
 0x601   : > { %4301 = shalt.err (!%p4298_p9)
}
 0x602   : > { %s4366_s24 = smov 128   ;;  %s4367_s27 = smov 8  }
 0x603   : > { %4005 = dma.vmem_to_hbm [thread:$0]  (%p4508_p0), %s3352_s7, 4096, %s3354_s25, %s3339_s1, %s4366_s24, %s4366_s24, %s4367_s27  }
 0x604 PF: > { %s3368_s28 = sand.u32 1, %s4340_s30   ;;  %p6281_p10 = scmp.ge.s32.totalorder %s4352_s12, 2 }
 0x605   : > { %s3369_s15 = scalar_lea.sflag [#allocation4], %s3368_s28 }
 0x606   : > { %p4028_p11 = pnand %p6281_p10, %p4514_p6 }
 0x608   : > { %p4029_p12 = pneg %p4028_p11 }
 0x60a   : > { %4335 = dma.done.wait (%p4029_p12), %s3369_s15, 4096  }
 0x60b   : > { %4337 = vsyncadd (%p4029_p12), %s3369_s15, 4294963200  ;;  %p25_p2 = scmp.ge.s32.totalorder %s4484_s18, 4   ;;  %s6282_s30 = smov %s4344_s10 }
 0x60c   : > { %s6283_s10 = smov %s4348_s11  ;;  %s6284_s11 = smov %s4496_s20 }
 0x60d   : > { %s6285_s12 = smov %s4484_s18  ;;  %27 = sbr.rel (!%p25_p2) target bundleno = 13 (0xd), region = 123 }
 0x612   :  { %3375 = vsyncpa [#allocation3], 1 }
 0x613   :  { %3377 = vsyncpa [#allocation3 + $0x1], 1 }
 0x614   :  { %3378 = vsyncpa [#allocation6], 1 }
 0x615   :  { %3379 = vsyncpa [#allocation9], 1 }
 0x616   :  { %3380 = vsyncpa [#allocation12], 1 }
 0x617   :  { %3381 = vsyncpa [#allocation4], 1 }
 0x618   :  { %3383 = vsyncpa [#allocation4 + $0x1], 1 }

</bundles_post_ra>
